<compile_context>
chip_gen: v7x
topology: tpu7x:2x2x1
jax: 0.10.0
libtpu: 0.0.40
codegen_flags: <defaults>
</compile_context>

<pallas_src>
import functools

import jax
import jax.numpy as jnp
from jax.experimental import pallas as pl
from jax.experimental.pallas import tpu as pltpu


_LANE = 128
_SUBLANE = 8
_VMEM_LIMIT_BYTES = 32 * 1024 * 1024  # explicit, safe on v5e/v6e/v7x


# ----------------------------------------------------------------------------
# Small helpers
# ----------------------------------------------------------------------------
def _round_up(x, m):
    return (x + m - 1) // m * m


def _pick_tile(dim, candidates):
    for c in candidates:
        if dim % c == 0:
            return c
    return dim


def _pad_gates_last(w, h, h_pad):
    """Zero-pad a gate-blocked last dim (..., 3*h) -> (..., 3*h_pad) per gate."""
    lead = w.shape[:-1]
    w3 = w.reshape(lead + (3, h))
    pads = [(0, 0)] * (len(lead) + 1) + [(0, h_pad - h)]
    return jnp.pad(w3, pads).reshape(lead + (3 * h_pad,))


# ----------------------------------------------------------------------------
# Capability probe: single-buffered (invariant) BlockSpecs via pl.Buffered(1)
# ----------------------------------------------------------------------------
_SINGLE_BUFFER_OK = None


def _probe_kernel(x_ref, o_ref):
    o_ref[...] = x_ref[...] + 1.0


def _single_buffer_supported():
    global _SINGLE_BUFFER_OK
    if _SINGLE_BUFFER_OK is None:
        try:
            f = pl.pallas_call(
                _probe_kernel,
                out_shape=jax.ShapeDtypeStruct((8, 128), jnp.float32),
                grid=(2,),
                in_specs=[pl.BlockSpec((8, 128), lambda i: (0, 0),
                                       pipeline_mode=pl.Buffered(1))],
                out_specs=pl.BlockSpec((8, 128), lambda i: (0, 0)),
            )
            jax.block_until_ready(f(jnp.zeros((8, 128), jnp.float32)))
            _SINGLE_BUFFER_OK = True
        except Exception:
            _SINGLE_BUFFER_OK = False
    return _SINGLE_BUFFER_OK


def _invariant_spec(block_shape, index_map):
    """BlockSpec for a grid-invariant operand: single buffer if supported."""
    if _single_buffer_supported():
        return pl.BlockSpec(block_shape, index_map, pipeline_mode=pl.Buffered(1))
    return pl.BlockSpec(block_shape, index_map)


# ----------------------------------------------------------------------------
# Pallas kernels
# ----------------------------------------------------------------------------
def gru_kernel(gx_ref, whh_ref, bhhn_ref, h0_ref, y_ref, hf_ref):
    """One GRU layer over a block of Tb time steps.

    grid = (batch_blocks, time_blocks).  The time axis is 'arbitrary'
    (sequential); hf (constant block index over time) is VMEM-resident and is
    used directly as the hidden-state carry, so no scratch buffer is needed.

    gx_ref : (Tb, Bb, 3H)  precomputed W_ih x + b_ih (+ b_hh for r,z gates)
    whh_ref: (H, 3H)       hidden->gates weight (gate order r,z,n)
    bhhn_ref: (1, H)       hidden bias of the n gate only
    h0_ref : (Bb, H)       initial hidden state
    y_ref  : (Tb, Bb, H)   per-step outputs
    hf_ref : (Bb, H)       hidden-state carry / final hidden state
    """
    ti = pl.program_id(1)
    H = hf_ref.shape[-1]
    tb = gx_ref.shape[0]

    @pl.when(ti == 0)
    def _():
        hf_ref[...] = h0_ref[...]

    bhhn = bhhn_ref[...]  # tiny (1, H) invariant, hoisted out of the time loop

    def step(k, h):
        gx = gx_ref[k]                                            # (Bb, 3H)
        gh = jnp.dot(h.astype(whh_ref.dtype), whh_ref[...],
                     preferred_element_type=jnp.float32)          # (Bb, 3H)
        # Lane-aligned gate slices (H is padded to a multiple of 128).
        r = jax.nn.sigmoid(gx[:, 0:H] + gh[:, 0:H])
        z = jax.nn.sigmoid(gx[:, H:2 * H] + gh[:, H:2 * H])
        n = jnp.tanh(gx[:, 2 * H:3 * H] + r * (gh[:, 2 * H:3 * H] + bhhn))
        h_new = (1.0 - z) * n + z * h
        y_ref[k] = h_new
        return h_new

    hf_ref[...] = jax.lax.fori_loop(0, tb, step, hf_ref[...], unroll=True)


def dense_kernel(x_ref, w_ref, b_ref, o_ref, acc_ref):
    """K-tiled Linear: (tm, tk) @ (tk, tn), f32 VMEM accumulator, bias at end."""
    k = pl.program_id(2)

    @pl.when(k == 0)
    def _():
        acc_ref[...] = jnp.zeros_like(acc_ref)

    acc_ref[...] += jnp.dot(x_ref[...].astype(w_ref.dtype), w_ref[...],
                            preferred_element_type=jnp.float32)

    @pl.when(k == pl.num_programs(2) - 1)
    def _():
        o_ref[...] = (acc_ref[...] + b_ref[...]).astype(o_ref.dtype)


# ----------------------------------------------------------------------------
# Wrappers around pallas_call
# ----------------------------------------------------------------------------
def dense(x2d, w, b):
    """x2d: (N, K), w: (K, M), b: (M,) -> (N, M) float32.  Tiled (N, M, K)."""
    N, K = x2d.shape
    M = w.shape[1]
    tm = _pick_tile(N, (512, 256, 128, 64, 32, 16, 8))
    tn = _pick_tile(M, (512, 256, 128))
    tk = _pick_tile(K, (512, 256, 128))
    grid = (N // tm, M // tn, K // tk)
    return pl.pallas_call(
        dense_kernel,
        out_shape=jax.ShapeDtypeStruct((N, M), jnp.float32),
        grid_spec=pltpu.PrefetchScalarGridSpec(
            num_scalar_prefetch=0,
            grid=grid,
            in_specs=[
                pl.BlockSpec((tm, tk), lambda i, j, k: (i, k)),
                pl.BlockSpec((tk, tn), lambda i, j, k: (k, j)),
                pl.BlockSpec((1, tn), lambda i, j, k: (0, j)),
            ],
            out_specs=pl.BlockSpec((tm, tn), lambda i, j, k: (i, j)),
            scratch_shapes=[pltpu.VMEM((tm, tn), jnp.float32)],
        ),
        compiler_params=pltpu.CompilerParams(
            dimension_semantics=("parallel", "parallel", "arbitrary"),
            vmem_limit_bytes=_VMEM_LIMIT_BYTES),
    )(x2d, w, b.reshape(1, -1))


def gru_layer(gx, whh, bhh_n, h0):
    """gx: (T, B, 3H) precomputed input gates -> (y: (T, B, H), hf: (B, H))."""
    T, B, _ = gx.shape
    Hd = h0.shape[1]
    Tb = _pick_tile(T, (32, 16, 8, 4, 2))
    Bb = _pick_tile(B, (128, 64, 32, 16, 8))
    grid = (B // Bb, T // Tb)

    y, hf = pl.pallas_call(
        gru_kernel,
        out_shape=(jax.ShapeDtypeStruct((T, B, Hd), jnp.float32),
                   jax.ShapeDtypeStruct((B, Hd), jnp.float32)),
        grid_spec=pltpu.PrefetchScalarGridSpec(
            num_scalar_prefetch=0,
            grid=grid,
            in_specs=[
                pl.BlockSpec((Tb, Bb, 3 * Hd), lambda bi, ti: (ti, bi, 0)),
                _invariant_spec((Hd, 3 * Hd), lambda bi, ti: (0, 0)),
                _invariant_spec((1, Hd), lambda bi, ti: (0, 0)),
                pl.BlockSpec((Bb, Hd), lambda bi, ti: (bi, 0)),
            ],
            out_specs=[
                pl.BlockSpec((Tb, Bb, Hd), lambda bi, ti: (ti, bi, 0)),
                pl.BlockSpec((Bb, Hd), lambda bi, ti: (bi, 0)),
            ],
        ),
        compiler_params=pltpu.CompilerParams(
            dimension_semantics=("parallel", "arbitrary"),
            vmem_limit_bytes=_VMEM_LIMIT_BYTES),
    )(gx, whh, bhh_n.reshape(1, -1), h0)
    return y, hf


# ----------------------------------------------------------------------------
# Parameter preparation (padding to hardware tiles, optional bf16 weights)
# ----------------------------------------------------------------------------
def prepare_padded_params(params, num_layers, weights_dtype=jnp.float32):
    E = params["embedding"].shape[1]
    nh = params["dense_w_t"].shape[0]
    V = params["dense_w_t"].shape[1]
    H_pad = _round_up(nh, _LANE)
    V_pad = _round_up(V, _LANE)

    pp = {"embedding": params["embedding"],
          "dims": dict(E=E, nh=nh, V=V, H_pad=H_pad, V_pad=V_pad),
          "layers": []}

    for layer in range(num_layers):
        w_ih = params[f"w_ih_t_l{layer}"]      # (in, 3*nh), gate order r,z,n
        w_hh = params[f"w_hh_t_l{layer}"]      # (nh, 3*nh)
        b_ih = params[f"b_ih_l{layer}"]        # (3*nh,)
        b_hh = params[f"b_hh_l{layer}"]        # (3*nh,)
        in_size = w_ih.shape[0]
        in_pad = _round_up(in_size, _LANE)

        wih_p = _pad_gates_last(w_ih, nh, H_pad)
        wih_p = jnp.pad(wih_p, ((0, in_pad - in_size), (0, 0)))
        whh_p = _pad_gates_last(w_hh, nh, H_pad)
        whh_p = jnp.pad(whh_p, ((0, H_pad - nh), (0, 0)))

        # Fold b_hh for the r and z gates into the hoisted input-gate bias;
        # keep the n-gate hidden bias separate (scaled by r inside the cell).
        b_hh_rz = jnp.concatenate([b_hh[:2 * nh], jnp.zeros((nh,), b_hh.dtype)])
        gx_bias = _pad_gates_last(b_ih + b_hh_rz, nh, H_pad)     # (3*H_pad,)
        bhh_n = jnp.pad(b_hh[2 * nh:], (0, H_pad - nh))          # (H_pad,)

        pp["layers"].append(dict(
            wih=wih_p.astype(weights_dtype),
            whh=whh_p.astype(weights_dtype),
            gx_bias=gx_bias.astype(jnp.float32),
            bhh_n=bhh_n.astype(jnp.float32),
            in_size=in_size, in_pad=in_pad))

    dw = jnp.pad(params["dense_w_t"], ((0, H_pad - nh), (0, V_pad - V)))
    db = jnp.pad(params["dense_b"], (0, V_pad - V))
    pp["dense_w"] = dw.astype(weights_dtype)
    pp["dense_b"] = db.astype(jnp.float32)
    return pp


# ----------------------------------------------------------------------------
# DecoderGRU forward
# ----------------------------------------------------------------------------
def decoder_gru_forward(pp, X, H):
    """X: (batch, seq_len) int32; H: (num_layers, batch, num_hiddens) f32.

    Returns (O, H_new): O (batch, seq_len, vocab), H_new (L, batch, num_hiddens).
    """
    dims = pp["dims"]
    nh, H_pad, V, V_pad, E = dims["nh"], dims["H_pad"], dims["V"], dims["V_pad"], dims["E"]
    num_layers = len(pp["layers"])
    B, T = X.shape
    B_pad = _round_up(B, _SUBLANE)

    # TODO(synk): embedding gather + concat/pad/permute glue stay in plain JAX
    # (no clean Pallas gather for tiny vocab lookups).
    emb = jnp.take(pp["embedding"], X, axis=0)                 # (B, T, E)
    Xs = jnp.transpose(emb, (1, 0, 2))                         # (T, B, E)
    ctx = jnp.broadcast_to(H[-1][None], (T, B, nh))            # (T, B, nh)
    x = jnp.concatenate([Xs, ctx], axis=2)                     # (T, B, E+nh)

    in0 = E + nh
    in0_pad = pp["layers"][0]["in_pad"]
    x = jnp.pad(x, ((0, 0), (0, B_pad - B), (0, in0_pad - in0)))   # (T, B_pad, in0_pad)
    h0 = jnp.pad(H, ((0, 0), (0, B_pad - B), (0, H_pad - nh)))     # (L, B_pad, H_pad)

    new_h = []
    for layer in range(num_layers):
        lp = pp["layers"][layer]
        n_rows = T * B_pad
        # Hoisted input-to-gates matmul: one big (T*B, I) @ (I, 3H) + bias.
        gx = dense(x.reshape(n_rows, x.shape[2]), lp["wih"], lp["gx_bias"])
        gx = gx.reshape(T, B_pad, 3 * H_pad)
        # Recurrence (only h @ W_hh inside the time loop).
        y, hf = gru_layer(gx, lp["whh"], lp["bhh_n"], h0[layer])
        new_h.append(hf[:B, :nh])
        x = y                                                  # (T, B_pad, H_pad)
    H_new = jnp.stack(new_h, axis=0)                           # (L, B, nh)

    # Final Linear, tiled; permute back to (B, T, V) in the wrapper.
    logits = dense(x.reshape(T * B_pad, H_pad), pp["dense_w"], pp["dense_b"])
    logits = logits.reshape(T, B_pad, V_pad)[:, :B, :V]
    O = jnp.transpose(logits, (1, 0, 2))                       # (B, T, V)
    return O, H_new


# ----------------------------------------------------------------------------
# Pure-JAX reference (PyTorch GRU semantics) for the self-check
# ----------------------------------------------------------------------------
def decoder_gru_reference(params, X, H):
    num_layers = H.shape[0]
    emb = jnp.take(params["embedding"], X, axis=0)
    Xs = jnp.transpose(emb, (1, 0, 2))
    T, B, _ = Xs.shape
    context = jnp.broadcast_to(H[-1][None], (T,) + H[-1].shape)
    layer_in = jnp.concatenate([Xs, context], axis=2)

    new_h = []
    for layer in range(num_layers):
        w_ih_t = params[f"w_ih_t_l{layer}"]
        w_hh_t = params[f"w_hh_t_l{layer}"]
        b_ih = params[f"b_ih_l{layer}"]
        b_hh = params[f"b_hh_l{layer}"]
        nh = H.shape[2]
        h = H[layer]
        ys = []
        for t in range(T):
            x = layer_in[t]
            gx = x @ w_ih_t + b_ih
            gh = h @ w_hh_t + b_hh
            r = jax.nn.sigmoid(gx[:, :nh] + gh[:, :nh])
            z = jax.nn.sigmoid(gx[:, nh:2 * nh] + gh[:, nh:2 * nh])
            n = jnp.tanh(gx[:, 2 * nh:] + r * gh[:, 2 * nh:])
            h = (1.0 - z) * n + z * h
            ys.append(h)
        layer_in = jnp.stack(ys, axis=0)
        new_h.append(h)
    H_new = jnp.stack(new_h, axis=0)
    logits = layer_in @ params["dense_w_t"] + params["dense_b"]
    return jnp.transpose(logits, (1, 0, 2)), H_new


# ----------------------------------------------------------------------------
# Deterministic parameter construction
# ----------------------------------------------------------------------------
def make_params(vocab_size, embed_size, num_hiddens, num_layers, key):
    params = {}
    k = key
    k, sub = jax.random.split(k)
    params["embedding"] = jax.random.normal(
        sub, (vocab_size, embed_size), jnp.float32)

    bound = 1.0 / jnp.sqrt(num_hiddens)
    for layer in range(num_layers):
        in_size = embed_size + num_hiddens if layer == 0 else num_hiddens
        k, k1, k2, k3, k4 = jax.random.split(k, 5)
        # Stored pre-transposed: (in, 3H) / (H, 3H), gate order r,z,n.
        params[f"w_ih_t_l{layer}"] = jax.random.uniform(
            k1, (in_size, 3 * num_hiddens), jnp.float32, -bound, bound)
        params[f"w_hh_t_l{layer}"] = jax.random.uniform(
            k2, (num_hiddens, 3 * num_hiddens), jnp.float32, -bound, bound)
        params[f"b_ih_l{layer}"] = jax.random.uniform(
            k3, (3 * num_hiddens,), jnp.float32, -bound, bound)
        params[f"b_hh_l{layer}"] = jax.random.uniform(
            k4, (3 * num_hiddens,), jnp.float32, -bound, bound)

    k, k1, k2 = jax.random.split(k, 3)
    dbound = 1.0 / jnp.sqrt(num_hiddens)
    params["dense_w_t"] = jax.random.uniform(
        k1, (num_hiddens, vocab_size), jnp.float32, -dbound, dbound)
    params["dense_b"] = jax.random.uniform(
        k2, (vocab_size,), jnp.float32, -dbound, dbound)
    return params


# ----------------------------------------------------------------------------
if __name__ == "__main__":
    vocab_size = 20
    embed_size = 16
    num_hiddens = 32
    num_layers = 2
    seq_len = 8
    batch = 2

    key = jax.random.PRNGKey(0)
    kp, kx, kh = jax.random.split(key, 3)

    params = make_params(vocab_size, embed_size, num_hiddens, num_layers, kp)
    X = jax.random.randint(kx, (batch, seq_len), 0, vocab_size, jnp.int32)
    H0 = jax.random.normal(kh, (num_layers, batch, num_hiddens), jnp.float32)

    _single_buffer_supported()  # run the Buffered(1) capability probe once

    # f32 weights: matches PyTorch semantics; tight self-check.
    pp32 = prepare_padded_params(params, num_layers, jnp.float32)
    fwd32 = jax.jit(functools.partial(decoder_gru_forward, pp32))
    O, H_new = fwd32(X, H0)
    jax.block_until_ready((O, H_new))

    O_ref, H_ref = decoder_gru_reference(params, X, H0)
    assert O.shape == (batch, seq_len, vocab_size), O.shape
    assert H_new.shape == (num_layers, batch, num_hiddens), H_new.shape
    assert jnp.allclose(O, O_ref, atol=2e-3, rtol=2e-3), \
        float(jnp.max(jnp.abs(O - O_ref)))
    assert jnp.allclose(H_new, H_ref, atol=2e-3, rtol=2e-3), \
        float(jnp.max(jnp.abs(H_new - H_ref)))

    # bf16 weights (v6e/v7x fast path): f32 accumulation + f32 gate math.
    pp_bf16 = prepare_padded_params(params, num_layers, jnp.bfloat16)
    fwd_bf16 = jax.jit(functools.partial(decoder_gru_forward, pp_bf16))
    O_b, H_b = fwd_bf16(X, H0)
    jax.block_until_ready((O_b, H_b))
    assert O_b.shape == (batch, seq_len, vocab_size)
    assert jnp.allclose(O_b, O_ref, atol=0.2, rtol=0.2)

    print("KERNEL_OK")
</pallas_src>

<mosaic_0001>
module attributes {stable_mosaic.version = 11 : i64} {
  func.func @_probe_kernel(%arg0: i32, %arg1: memref<8x128xf32, #tpu.memory_space<vmem>>, %arg2: memref<8x128xf32, #tpu.memory_space<vmem>>) attributes {dimension_semantics = [#tpu.dimension_semantics<arbitrary>], iteration_bounds = array<i64: 2>, scalar_prefetch = 0 : i64, scratch_operands = 0 : i64, tpu.core_type = #tpu.core_type<tc>, window_params = [{pipeline_mode = #tpu.pipeline_mode<synchronous>, transform_indices = @transform_0, window_bounds = array<i64: 8, 128>}, {pipeline_mode = #tpu.pipeline_mode<synchronous>, transform_indices = @transform_1, window_bounds = array<i64: 8, 128>}]} {
    %c0 = arith.constant 0 : index
    %c0_0 = arith.constant 0 : index
    %0 = vector.load %arg1[%c0, %c0_0] : memref<8x128xf32, #tpu.memory_space<vmem>>, vector<8x128xf32>
    %cst = arith.constant 1.000000e+00 : f32
    %1 = vector.broadcast %cst : f32 to vector<8x128xf32>
    %2 = arith.addf %0, %1 : vector<8x128xf32>
    %c0_1 = arith.constant 0 : index
    %c0_2 = arith.constant 0 : index
    %3 = vector.load %arg2[%c0_1, %c0_2] : memref<8x128xf32, #tpu.memory_space<vmem>>, vector<8x128xf32>
    tpu.vector_store %arg2[%c0_1, %c0_2], %2 {strides = array<i32>} : memref<8x128xf32, #tpu.memory_space<vmem>>, vector<8x128xf32>,
    return
  }
  func.func @transform_0(%arg0: i32) -> (i32, i32) {
    %c0_i32 = arith.constant 0 : i32
    %c0_i32_0 = arith.constant 0 : i32
    %c0_i32_1 = arith.constant 0 : i32
    return %c0_i32, %c0_i32_0 : i32, i32
  }
  func.func @transform_1(%arg0: i32) -> (i32, i32) {
    %c0_i32 = arith.constant 0 : i32
    %c0_i32_0 = arith.constant 0 : i32
    %c0_i32_1 = arith.constant 0 : i32
    return %c0_i32, %c0_i32_0 : i32, i32
  }
}

module attributes {stable_mosaic.version = 11 : i64} {
  func.func @dense_kernel(%arg0: i32, %arg1: i32, %arg2: i32, %arg3: memref<64x128xf32, #tpu.memory_space<vmem>>, %arg4: memref<128x128xf32, #tpu.memory_space<vmem>>, %arg5: memref<1x128xf32, #tpu.memory_space<vmem>>, %arg6: memref<64x128xf32, #tpu.memory_space<vmem>>, %arg7: memref<64x128xf32, #tpu.memory_space<vmem>>) attributes {dimension_semantics = [#tpu.dimension_semantics<parallel>, #tpu.dimension_semantics<parallel>, #tpu.dimension_semantics<arbitrary>], iteration_bounds = array<i64: 1, 3, 1>, scalar_prefetch = 0 : i64, scratch_operands = 1 : i64, tpu.core_type = #tpu.core_type<tc>, window_params = [{transform_indices = @transform_0, window_bounds = array<i64: 64, 128>}, {transform_indices = @transform_1, window_bounds = array<i64: 128, 128>}, {transform_indices = @transform_2, window_bounds = array<i64: 1, 128>}, {transform_indices = @transform_3, window_bounds = array<i64: 64, 128>}]} {
    %c0_i32 = arith.constant 0 : i32
    %0 = arith.cmpi eq, %arg2, %c0_i32 : i32
    %1 = arith.extui %0 : i1 to i32
    %c0_i32_0 = arith.constant 0 : i32
    %2 = arith.cmpi ne, %1, %c0_i32_0 : i32
    scf.if %2 {
      %cst_10 = arith.constant 0.000000e+00 : f32
      %12 = vector.broadcast %cst_10 : f32 to vector<64x128xf32>
      %c0_11 = arith.constant 0 : index
      %c0_12 = arith.constant 0 : index
      %13 = vector.load %arg7[%c0_11, %c0_12] : memref<64x128xf32, #tpu.memory_space<vmem>>, vector<64x128xf32>
      tpu.vector_store %arg7[%c0_11, %c0_12], %12 {strides = array<i32>} : memref<64x128xf32, #tpu.memory_space<vmem>>, vector<64x128xf32>,
    } else {
    }
    %c0 = arith.constant 0 : index
    %c0_1 = arith.constant 0 : index
    %3 = vector.load %arg7[%c0, %c0_1] : memref<64x128xf32, #tpu.memory_space<vmem>>, vector<64x128xf32>
    %c0_2 = arith.constant 0 : index
    %c0_3 = arith.constant 0 : index
    %4 = vector.load %arg3[%c0_2, %c0_3] : memref<64x128xf32, #tpu.memory_space<vmem>>, vector<64x128xf32>
    %c0_4 = arith.constant 0 : index
    %c0_5 = arith.constant 0 : index
    %5 = vector.load %arg4[%c0_4, %c0_5] : memref<128x128xf32, #tpu.memory_space<vmem>>, vector<128x128xf32>
    %cst = arith.constant dense<0.000000e+00> : vector<64x128xf32>
    %6 = tpu.matmul %4, %5, %cst {dimension_numbers = #tpu.dot_dimension_numbers<[1], [0], [0], [1], [0, 0, 1, 1], [], []>} : vector<64x128xf32>, vector<128x128xf32>, vector<64x128xf32> -> vector<64x128xf32>
    %7 = arith.addf %3, %6 : vector<64x128xf32>
    %c0_6 = arith.constant 0 : index
    %c0_7 = arith.constant 0 : index
    %8 = vector.load %arg7[%c0_6, %c0_7] : memref<64x128xf32, #tpu.memory_space<vmem>>, vector<64x128xf32>
    tpu.vector_store %arg7[%c0_6, %c0_7], %7 {strides = array<i32>} : memref<64x128xf32, #tpu.memory_space<vmem>>, vector<64x128xf32>,
    %c0_i32_8 = arith.constant 0 : i32
    %9 = arith.cmpi eq, %arg2, %c0_i32_8 : i32
    %10 = arith.extui %9 : i1 to i32
    %c0_i32_9 = arith.constant 0 : i32
    %11 = arith.cmpi ne, %10, %c0_i32_9 : i32
    scf.if %11 {
      %c0_10 = arith.constant 0 : index
      %c0_11 = arith.constant 0 : index
      %12 = vector.load %arg7[%c0_10, %c0_11] : memref<64x128xf32, #tpu.memory_space<vmem>>, vector<64x128xf32>
      %c0_12 = arith.constant 0 : index
      %c0_13 = arith.constant 0 : index
      %13 = vector.load %arg5[%c0_12, %c0_13] : memref<1x128xf32, #tpu.memory_space<vmem>>, vector<1x128xf32>
      %14 = vector.broadcast %13 : vector<1x128xf32> to vector<64x128xf32>
      %15 = arith.addf %12, %14 : vector<64x128xf32>
      %c0_14 = arith.constant 0 : index
      %c0_15 = arith.constant 0 : index
      %16 = vector.load %arg6[%c0_14, %c0_15] : memref<64x128xf32, #tpu.memory_space<vmem>>, vector<64x128xf32>
      tpu.vector_store %arg6[%c0_14, %c0_15], %15 {strides = array<i32>} : memref<64x128xf32, #tpu.memory_space<vmem>>, vector<64x128xf32>,
    } else {
    }
    return
  }
  func.func @transform_0(%arg0: i32, %arg1: i32, %arg2: i32) -> (i32, i32) {
    %c0_i32 = arith.constant 0 : i32
    return %arg0, %arg2 : i32, i32
  }
  func.func @transform_1(%arg0: i32, %arg1: i32, %arg2: i32) -> (i32, i32) {
    %c0_i32 = arith.constant 0 : i32
    return %arg2, %arg1 : i32, i32
  }
  func.func @transform_2(%arg0: i32, %arg1: i32, %arg2: i32) -> (i32, i32) {
    %c0_i32 = arith.constant 0 : i32
    %c0_i32_0 = arith.constant 0 : i32
    return %c0_i32, %arg1 : i32, i32
  }
  func.func @transform_3(%arg0: i32, %arg1: i32, %arg2: i32) -> (i32, i32) {
    %c0_i32 = arith.constant 0 : i32
    return %arg0, %arg1 : i32, i32
  }
}

module attributes {stable_mosaic.version = 11 : i64} {
  func.func @dense_kernel(%arg0: i32, %arg1: i32, %arg2: i32, %arg3: memref<64x128xf32, #tpu.memory_space<vmem>>, %arg4: memref<128x128xf32, #tpu.memory_space<vmem>>, %arg5: memref<1x128xf32, #tpu.memory_space<vmem>>, %arg6: memref<64x128xf32, #tpu.memory_space<vmem>>, %arg7: memref<64x128xf32, #tpu.memory_space<vmem>>) attributes {dimension_semantics = [#tpu.dimension_semantics<parallel>, #tpu.dimension_semantics<parallel>, #tpu.dimension_semantics<arbitrary>], iteration_bounds = array<i64: 1, 1, 1>, scalar_prefetch = 0 : i64, scratch_operands = 1 : i64, tpu.core_type = #tpu.core_type<tc>, window_params = [{transform_indices = @transform_0, window_bounds = array<i64: 64, 128>}, {transform_indices = @transform_1, window_bounds = array<i64: 128, 128>}, {transform_indices = @transform_2, window_bounds = array<i64: 1, 128>}, {transform_indices = @transform_3, window_bounds = array<i64: 64, 128>}]} {
    %c0_i32 = arith.constant 0 : i32
    %0 = arith.cmpi eq, %arg2, %c0_i32 : i32
    %1 = arith.extui %0 : i1 to i32
    %c0_i32_0 = arith.constant 0 : i32
    %2 = arith.cmpi ne, %1, %c0_i32_0 : i32
    scf.if %2 {
      %cst_10 = arith.constant 0.000000e+00 : f32
      %12 = vector.broadcast %cst_10 : f32 to vector<64x128xf32>
      %c0_11 = arith.constant 0 : index
      %c0_12 = arith.constant 0 : index
      %13 = vector.load %arg7[%c0_11, %c0_12] : memref<64x128xf32, #tpu.memory_space<vmem>>, vector<64x128xf32>
      tpu.vector_store %arg7[%c0_11, %c0_12], %12 {strides = array<i32>} : memref<64x128xf32, #tpu.memory_space<vmem>>, vector<64x128xf32>,
    } else {
    }
    %c0 = arith.constant 0 : index
    %c0_1 = arith.constant 0 : index
    %3 = vector.load %arg7[%c0, %c0_1] : memref<64x128xf32, #tpu.memory_space<vmem>>, vector<64x128xf32>
    %c0_2 = arith.constant 0 : index
    %c0_3 = arith.constant 0 : index
    %4 = vector.load %arg3[%c0_2, %c0_3] : memref<64x128xf32, #tpu.memory_space<vmem>>, vector<64x128xf32>
    %c0_4 = arith.constant 0 : index
    %c0_5 = arith.constant 0 : index
    %5 = vector.load %arg4[%c0_4, %c0_5] : memref<128x128xf32, #tpu.memory_space<vmem>>, vector<128x128xf32>
    %cst = arith.constant dense<0.000000e+00> : vector<64x128xf32>
    %6 = tpu.matmul %4, %5, %cst {dimension_numbers = #tpu.dot_dimension_numbers<[1], [0], [0], [1], [0, 0, 1, 1], [], []>} : vector<64x128xf32>, vector<128x128xf32>, vector<64x128xf32> -> vector<64x128xf32>
    %7 = arith.addf %3, %6 : vector<64x128xf32>
    %c0_6 = arith.constant 0 : index
    %c0_7 = arith.constant 0 : index
    %8 = vector.load %arg7[%c0_6, %c0_7] : memref<64x128xf32, #tpu.memory_space<vmem>>, vector<64x128xf32>
    tpu.vector_store %arg7[%c0_6, %c0_7], %7 {strides = array<i32>} : memref<64x128xf32, #tpu.memory_space<vmem>>, vector<64x128xf32>,
    %c0_i32_8 = arith.constant 0 : i32
    %9 = arith.cmpi eq, %arg2, %c0_i32_8 : i32
    %10 = arith.extui %9 : i1 to i32
    %c0_i32_9 = arith.constant 0 : i32
    %11 = arith.cmpi ne, %10, %c0_i32_9 : i32
    scf.if %11 {
      %c0_10 = arith.constant 0 : index
      %c0_11 = arith.constant 0 : index
      %12 = vector.load %arg7[%c0_10, %c0_11] : memref<64x128xf32, #tpu.memory_space<vmem>>, vector<64x128xf32>
      %c0_12 = arith.constant 0 : index
      %c0_13 = arith.constant 0 : index
      %13 = vector.load %arg5[%c0_12, %c0_13] : memref<1x128xf32, #tpu.memory_space<vmem>>, vector<1x128xf32>
      %14 = vector.broadcast %13 : vector<1x128xf32> to vector<64x128xf32>
      %15 = arith.addf %12, %14 : vector<64x128xf32>
      %c0_14 = arith.constant 0 : index
      %c0_15 = arith.constant 0 : index
      %16 = vector.load %arg6[%c0_14, %c0_15] : memref<64x128xf32, #tpu.memory_space<vmem>>, vector<64x128xf32>
      tpu.vector_store %arg6[%c0_14, %c0_15], %15 {strides = array<i32>} : memref<64x128xf32, #tpu.memory_space<vmem>>, vector<64x128xf32>,
    } else {
    }
    return
  }
  func.func @transform_0(%arg0: i32, %arg1: i32, %arg2: i32) -> (i32, i32) {
    %c0_i32 = arith.constant 0 : i32
    return %arg0, %arg2 : i32, i32
  }
  func.func @transform_1(%arg0: i32, %arg1: i32, %arg2: i32) -> (i32, i32) {
    %c0_i32 = arith.constant 0 : i32
    return %arg2, %arg1 : i32, i32
  }
  func.func @transform_2(%arg0: i32, %arg1: i32, %arg2: i32) -> (i32, i32) {
    %c0_i32 = arith.constant 0 : i32
    %c0_i32_0 = arith.constant 0 : i32
    return %c0_i32, %arg1 : i32, i32
  }
  func.func @transform_3(%arg0: i32, %arg1: i32, %arg2: i32) -> (i32, i32) {
    %c0_i32 = arith.constant 0 : i32
    return %arg0, %arg1 : i32, i32
  }
}

module attributes {stable_mosaic.version = 11 : i64} {
  func.func @dense_kernel(%arg0: i32, %arg1: i32, %arg2: i32, %arg3: memref<64x128xf32, #tpu.memory_space<vmem>>, %arg4: memref<128x128xf32, #tpu.memory_space<vmem>>, %arg5: memref<1x128xf32, #tpu.memory_space<vmem>>, %arg6: memref<64x128xf32, #tpu.memory_space<vmem>>, %arg7: memref<64x128xf32, #tpu.memory_space<vmem>>) attributes {dimension_semantics = [#tpu.dimension_semantics<parallel>, #tpu.dimension_semantics<parallel>, #tpu.dimension_semantics<arbitrary>], iteration_bounds = array<i64: 1, 3, 1>, scalar_prefetch = 0 : i64, scratch_operands = 1 : i64, tpu.core_type = #tpu.core_type<tc>, window_params = [{transform_indices = @transform_0, window_bounds = array<i64: 64, 128>}, {transform_indices = @transform_1, window_bounds = array<i64: 128, 128>}, {transform_indices = @transform_2, window_bounds = array<i64: 1, 128>}, {transform_indices = @transform_3, window_bounds = array<i64: 64, 128>}]} {
    %c0_i32 = arith.constant 0 : i32
    %0 = arith.cmpi eq, %arg2, %c0_i32 : i32
    %1 = arith.extui %0 : i1 to i32
    %c0_i32_0 = arith.constant 0 : i32
    %2 = arith.cmpi ne, %1, %c0_i32_0 : i32
    scf.if %2 {
      %cst_10 = arith.constant 0.000000e+00 : f32
      %12 = vector.broadcast %cst_10 : f32 to vector<64x128xf32>
      %c0_11 = arith.constant 0 : index
      %c0_12 = arith.constant 0 : index
      %13 = vector.load %arg7[%c0_11, %c0_12] : memref<64x128xf32, #tpu.memory_space<vmem>>, vector<64x128xf32>
      tpu.vector_store %arg7[%c0_11, %c0_12], %12 {strides = array<i32>} : memref<64x128xf32, #tpu.memory_space<vmem>>, vector<64x128xf32>,
    } else {
    }
    %c0 = arith.constant 0 : index
    %c0_1 = arith.constant 0 : index
    %3 = vector.load %arg7[%c0, %c0_1] : memref<64x128xf32, #tpu.memory_space<vmem>>, vector<64x128xf32>
    %c0_2 = arith.constant 0 : index
    %c0_3 = arith.constant 0 : index
    %4 = vector.load %arg3[%c0_2, %c0_3] : memref<64x128xf32, #tpu.memory_space<vmem>>, vector<64x128xf32>
    %c0_4 = arith.constant 0 : index
    %c0_5 = arith.constant 0 : index
    %5 = vector.load %arg4[%c0_4, %c0_5] : memref<128x128xf32, #tpu.memory_space<vmem>>, vector<128x128xf32>
    %cst = arith.constant dense<0.000000e+00> : vector<64x128xf32>
    %6 = tpu.matmul %4, %5, %cst {dimension_numbers = #tpu.dot_dimension_numbers<[1], [0], [0], [1], [0, 0, 1, 1], [], []>} : vector<64x128xf32>, vector<128x128xf32>, vector<64x128xf32> -> vector<64x128xf32>
    %7 = arith.addf %3, %6 : vector<64x128xf32>
    %c0_6 = arith.constant 0 : index
    %c0_7 = arith.constant 0 : index
    %8 = vector.load %arg7[%c0_6, %c0_7] : memref<64x128xf32, #tpu.memory_space<vmem>>, vector<64x128xf32>
    tpu.vector_store %arg7[%c0_6, %c0_7], %7 {strides = array<i32>} : memref<64x128xf32, #tpu.memory_space<vmem>>, vector<64x128xf32>,
    %c0_i32_8 = arith.constant 0 : i32
    %9 = arith.cmpi eq, %arg2, %c0_i32_8 : i32
    %10 = arith.extui %9 : i1 to i32
    %c0_i32_9 = arith.constant 0 : i32
    %11 = arith.cmpi ne, %10, %c0_i32_9 : i32
    scf.if %11 {
      %c0_10 = arith.constant 0 : index
      %c0_11 = arith.constant 0 : index
      %12 = vector.load %arg7[%c0_10, %c0_11] : memref<64x128xf32, #tpu.memory_space<vmem>>, vector<64x128xf32>
      %c0_12 = arith.constant 0 : index
      %c0_13 = arith.constant 0 : index
      %13 = vector.load %arg5[%c0_12, %c0_13] : memref<1x128xf32, #tpu.memory_space<vmem>>, vector<1x128xf32>
      %14 = vector.broadcast %13 : vector<1x128xf32> to vector<64x128xf32>
      %15 = arith.addf %12, %14 : vector<64x128xf32>
      %c0_14 = arith.constant 0 : index
      %c0_15 = arith.constant 0 : index
      %16 = vector.load %arg6[%c0_14, %c0_15] : memref<64x128xf32, #tpu.memory_space<vmem>>, vector<64x128xf32>
      tpu.vector_store %arg6[%c0_14, %c0_15], %15 {strides = array<i32>} : memref<64x128xf32, #tpu.memory_space<vmem>>, vector<64x128xf32>,
    } else {
    }
    return
  }
  func.func @transform_0(%arg0: i32, %arg1: i32, %arg2: i32) -> (i32, i32) {
    %c0_i32 = arith.constant 0 : i32
    return %arg0, %arg2 : i32, i32
  }
  func.func @transform_1(%arg0: i32, %arg1: i32, %arg2: i32) -> (i32, i32) {
    %c0_i32 = arith.constant 0 : i32
    return %arg2, %arg1 : i32, i32
  }
  func.func @transform_2(%arg0: i32, %arg1: i32, %arg2: i32) -> (i32, i32) {
    %c0_i32 = arith.constant 0 : i32
    %c0_i32_0 = arith.constant 0 : i32
    return %c0_i32, %arg1 : i32, i32
  }
  func.func @transform_3(%arg0: i32, %arg1: i32, %arg2: i32) -> (i32, i32) {
    %c0_i32 = arith.constant 0 : i32
    return %arg0, %arg1 : i32, i32
  }
}

module attributes {stable_mosaic.version = 11 : i64} {
  func.func @gru_kernel(%arg0: i32, %arg1: i32, %arg2: memref<8x8x384xf32, #tpu.memory_space<vmem>>, %arg3: memref<128x384xf32, #tpu.memory_space<vmem>>, %arg4: memref<1x128xf32, #tpu.memory_space<vmem>>, %arg5: memref<8x128xf32, #tpu.memory_space<vmem>>, %arg6: memref<8x8x128xf32, #tpu.memory_space<vmem>>, %arg7: memref<8x128xf32, #tpu.memory_space<vmem>>) attributes {dimension_semantics = [#tpu.dimension_semantics<parallel>, #tpu.dimension_semantics<arbitrary>], iteration_bounds = array<i64: 1, 1>, scalar_prefetch = 0 : i64, scratch_operands = 0 : i64, tpu.core_type = #tpu.core_type<tc>, window_params = [{transform_indices = @transform_0, window_bounds = array<i64: 8, 8, 384>}, {pipeline_mode = #tpu.pipeline_mode<synchronous>, transform_indices = @transform_1, window_bounds = array<i64: 128, 384>}, {pipeline_mode = #tpu.pipeline_mode<synchronous>, transform_indices = @transform_2, window_bounds = array<i64: 1, 128>}, {transform_indices = @transform_3, window_bounds = array<i64: 8, 128>}, {transform_indices = @transform_4, window_bounds = array<i64: 8, 8, 128>}, {transform_indices = @transform_5, window_bounds = array<i64: 8, 128>}]} {
    %c0_i32 = arith.constant 0 : i32
    %0 = arith.cmpi eq, %arg1, %c0_i32 : i32
    %1 = arith.extui %0 : i1 to i32
    %c0_i32_0 = arith.constant 0 : i32
    %2 = arith.cmpi ne, %1, %c0_i32_0 : i32
    scf.if %2 {
      %c0_86 = arith.constant 0 : index
      %c0_87 = arith.constant 0 : index
      %302 = vector.load %arg5[%c0_86, %c0_87] : memref<8x128xf32, #tpu.memory_space<vmem>>, vector<8x128xf32>
      %c0_88 = arith.constant 0 : index
      %c0_89 = arith.constant 0 : index
      %303 = vector.load %arg7[%c0_88, %c0_89] : memref<8x128xf32, #tpu.memory_space<vmem>>, vector<8x128xf32>
      tpu.vector_store %arg7[%c0_88, %c0_89], %302 {strides = array<i32>} : memref<8x128xf32, #tpu.memory_space<vmem>>, vector<8x128xf32>,
    } else {
    }
    %c0 = arith.constant 0 : index
    %c0_1 = arith.constant 0 : index
    %3 = vector.load %arg4[%c0, %c0_1] : memref<1x128xf32, #tpu.memory_space<vmem>>, vector<1x128xf32>
    %c0_2 = arith.constant 0 : index
    %c0_3 = arith.constant 0 : index
    %4 = vector.load %arg7[%c0_2, %c0_3] : memref<8x128xf32, #tpu.memory_space<vmem>>, vector<8x128xf32>
    %c0_i32_4 = arith.constant 0 : i32
    %5 = arith.index_cast %c0_i32_4 : i32 to index
    %c0_5 = arith.constant 0 : index
    %c0_6 = arith.constant 0 : index
    %6 = vector.load %arg2[%5, %c0_5, %c0_6] : memref<8x8x384xf32, #tpu.memory_space<vmem>>, vector<1x8x384xf32>
    %7 = vector.shape_cast %6 : vector<1x8x384xf32> to vector<8x384xf32>
    %c0_7 = arith.constant 0 : index
    %c0_8 = arith.constant 0 : index
    %8 = vector.load %arg3[%c0_7, %c0_8] : memref<128x384xf32, #tpu.memory_space<vmem>>, vector<128x384xf32>
    %cst = arith.constant dense<0.000000e+00> : vector<8x384xf32>
    %9 = tpu.matmul %4, %8, %cst {dimension_numbers = #tpu.dot_dimension_numbers<[1], [0], [0], [1], [0, 0, 1, 1], [], []>} : vector<8x128xf32>, vector<128x384xf32>, vector<8x384xf32> -> vector<8x384xf32>
    %10 = vector.extract_strided_slice %7 {offsets = [0, 0], sizes = [8, 128], strides = [1, 1]} : vector<8x384xf32> to vector<8x128xf32>
    %11 = vector.extract_strided_slice %9 {offsets = [0, 0], sizes = [8, 128], strides = [1, 1]} : vector<8x384xf32> to vector<8x128xf32>
    %12 = arith.addf %10, %11 : vector<8x128xf32>
    %13 = arith.negf %12 : vector<8x128xf32>
    %14 = math.exp %13 : vector<8x128xf32>
    %cst_9 = arith.constant 1.000000e+00 : f32
    %15 = vector.broadcast %cst_9 : f32 to vector<8x128xf32>
    %16 = arith.addf %15, %14 : vector<8x128xf32>
    %17 = arith.divf %15, %16 : vector<8x128xf32>
    %18 = vector.extract_strided_slice %7 {offsets = [0, 128], sizes = [8, 128], strides = [1, 1]} : vector<8x384xf32> to vector<8x128xf32>
    %19 = vector.extract_strided_slice %9 {offsets = [0, 128], sizes = [8, 128], strides = [1, 1]} : vector<8x384xf32> to vector<8x128xf32>
    %20 = arith.addf %18, %19 : vector<8x128xf32>
    %21 = arith.negf %20 : vector<8x128xf32>
    %22 = math.exp %21 : vector<8x128xf32>
    %cst_10 = arith.constant 1.000000e+00 : f32
    %23 = vector.broadcast %cst_10 : f32 to vector<8x128xf32>
    %24 = arith.addf %23, %22 : vector<8x128xf32>
    %25 = arith.divf %23, %24 : vector<8x128xf32>
    %26 = vector.extract_strided_slice %7 {offsets = [0, 256], sizes = [8, 128], strides = [1, 1]} : vector<8x384xf32> to vector<8x128xf32>
    %27 = vector.extract_strided_slice %9 {offsets = [0, 256], sizes = [8, 128], strides = [1, 1]} : vector<8x384xf32> to vector<8x128xf32>
    %28 = vector.broadcast %3 : vector<1x128xf32> to vector<8x128xf32>
    %29 = arith.addf %27, %28 : vector<8x128xf32>
    %30 = arith.mulf %17, %29 : vector<8x128xf32>
    %31 = arith.addf %26, %30 : vector<8x128xf32>
    %32 = math.tanh %31 : vector<8x128xf32>
    %cst_11 = arith.constant 1.000000e+00 : f32
    %33 = vector.broadcast %cst_11 : f32 to vector<8x128xf32>
    %34 = arith.subf %33, %25 : vector<8x128xf32>
    %35 = arith.mulf %34, %32 : vector<8x128xf32>
    %36 = arith.mulf %25, %4 : vector<8x128xf32>
    %37 = arith.addf %35, %36 : vector<8x128xf32>
    %38 = arith.index_cast %c0_i32_4 : i32 to index
    %c0_12 = arith.constant 0 : index
    %c0_13 = arith.constant 0 : index
    %39 = vector.load %arg6[%38, %c0_12, %c0_13] : memref<8x8x128xf32, #tpu.memory_space<vmem>>, vector<1x8x128xf32>
    %40 = vector.shape_cast %39 : vector<1x8x128xf32> to vector<8x128xf32>
    %41 = vector.shape_cast %37 : vector<8x128xf32> to vector<1x8x128xf32>
    tpu.vector_store %arg6[%38, %c0_12, %c0_13], %41 {strides = array<i32>} : memref<8x8x128xf32, #tpu.memory_space<vmem>>, vector<1x8x128xf32>,
    %c1_i32 = arith.constant 1 : i32
    %42 = arith.index_cast %c1_i32 : i32 to index
    %c0_14 = arith.constant 0 : index
    %c0_15 = arith.constant 0 : index
    %43 = vector.load %arg2[%42, %c0_14, %c0_15] : memref<8x8x384xf32, #tpu.memory_space<vmem>>, vector<1x8x384xf32>
    %44 = vector.shape_cast %43 : vector<1x8x384xf32> to vector<8x384xf32>
    %c0_16 = arith.constant 0 : index
    %c0_17 = arith.constant 0 : index
    %45 = vector.load %arg3[%c0_16, %c0_17] : memref<128x384xf32, #tpu.memory_space<vmem>>, vector<128x384xf32>
    %cst_18 = arith.constant dense<0.000000e+00> : vector<8x384xf32>
    %46 = tpu.matmul %37, %45, %cst_18 {dimension_numbers = #tpu.dot_dimension_numbers<[1], [0], [0], [1], [0, 0, 1, 1], [], []>} : vector<8x128xf32>, vector<128x384xf32>, vector<8x384xf32> -> vector<8x384xf32>
    %47 = vector.extract_strided_slice %44 {offsets = [0, 0], sizes = [8, 128], strides = [1, 1]} : vector<8x384xf32> to vector<8x128xf32>
    %48 = vector.extract_strided_slice %46 {offsets = [0, 0], sizes = [8, 128], strides = [1, 1]} : vector<8x384xf32> to vector<8x128xf32>
    %49 = arith.addf %47, %48 : vector<8x128xf32>
    %50 = arith.negf %49 : vector<8x128xf32>
    %51 = math.exp %50 : vector<8x128xf32>
    %cst_19 = arith.constant 1.000000e+00 : f32
    %52 = vector.broadcast %cst_19 : f32 to vector<8x128xf32>
    %53 = arith.addf %52, %51 : vector<8x128xf32>
    %54 = arith.divf %52, %53 : vector<8x128xf32>
    %55 = vector.extract_strided_slice %44 {offsets = [0, 128], sizes = [8, 128], strides = [1, 1]} : vector<8x384xf32> to vector<8x128xf32>
    %56 = vector.extract_strided_slice %46 {offsets = [0, 128], sizes = [8, 128], strides = [1, 1]} : vector<8x384xf32> to vector<8x128xf32>
    %57 = arith.addf %55, %56 : vector<8x128xf32>
    %58 = arith.negf %57 : vector<8x128xf32>
    %59 = math.exp %58 : vector<8x128xf32>
    %cst_20 = arith.constant 1.000000e+00 : f32
    %60 = vector.broadcast %cst_20 : f32 to vector<8x128xf32>
    %61 = arith.addf %60, %59 : vector<8x128xf32>
    %62 = arith.divf %60, %61 : vector<8x128xf32>
    %63 = vector.extract_strided_slice %44 {offsets = [0, 256], sizes = [8, 128], strides = [1, 1]} : vector<8x384xf32> to vector<8x128xf32>
    %64 = vector.extract_strided_slice %46 {offsets = [0, 256], sizes = [8, 128], strides = [1, 1]} : vector<8x384xf32> to vector<8x128xf32>
    %65 = vector.broadcast %3 : vector<1x128xf32> to vector<8x128xf32>
    %66 = arith.addf %64, %65 : vector<8x128xf32>
    %67 = arith.mulf %54, %66 : vector<8x128xf32>
    %68 = arith.addf %63, %67 : vector<8x128xf32>
    %69 = math.tanh %68 : vector<8x128xf32>
    %cst_21 = arith.constant 1.000000e+00 : f32
    %70 = vector.broadcast %cst_21 : f32 to vector<8x128xf32>
    %71 = arith.subf %70, %62 : vector<8x128xf32>
    %72 = arith.mulf %71, %69 : vector<8x128xf32>
    %73 = arith.mulf %62, %37 : vector<8x128xf32>
    %74 = arith.addf %72, %73 : vector<8x128xf32>
    %75 = arith.index_cast %c1_i32 : i32 to index
    %c0_22 = arith.constant 0 : index
    %c0_23 = arith.constant 0 : index
    %76 = vector.load %arg6[%75, %c0_22, %c0_23] : memref<8x8x128xf32, #tpu.memory_space<vmem>>, vector<1x8x128xf32>
    %77 = vector.shape_cast %76 : vector<1x8x128xf32> to vector<8x128xf32>
    %78 = vector.shape_cast %74 : vector<8x128xf32> to vector<1x8x128xf32>
    tpu.vector_store %arg6[%75, %c0_22, %c0_23], %78 {strides = array<i32>} : memref<8x8x128xf32, #tpu.memory_space<vmem>>, vector<1x8x128xf32>,
    %c2_i32 = arith.constant 2 : i32
    %79 = arith.index_cast %c2_i32 : i32 to index
    %c0_24 = arith.constant 0 : index
    %c0_25 = arith.constant 0 : index
    %80 = vector.load %arg2[%79, %c0_24, %c0_25] : memref<8x8x384xf32, #tpu.memory_space<vmem>>, vector<1x8x384xf32>
    %81 = vector.shape_cast %80 : vector<1x8x384xf32> to vector<8x384xf32>
    %c0_26 = arith.constant 0 : index
    %c0_27 = arith.constant 0 : index
    %82 = vector.load %arg3[%c0_26, %c0_27] : memref<128x384xf32, #tpu.memory_space<vmem>>, vector<128x384xf32>
    %cst_28 = arith.constant dense<0.000000e+00> : vector<8x384xf32>
    %83 = tpu.matmul %74, %82, %cst_28 {dimension_numbers = #tpu.dot_dimension_numbers<[1], [0], [0], [1], [0, 0, 1, 1], [], []>} : vector<8x128xf32>, vector<128x384xf32>, vector<8x384xf32> -> vector<8x384xf32>
    %84 = vector.extract_strided_slice %81 {offsets = [0, 0], sizes = [8, 128], strides = [1, 1]} : vector<8x384xf32> to vector<8x128xf32>
    %85 = vector.extract_strided_slice %83 {offsets = [0, 0], sizes = [8, 128], strides = [1, 1]} : vector<8x384xf32> to vector<8x128xf32>
    %86 = arith.addf %84, %85 : vector<8x128xf32>
    %87 = arith.negf %86 : vector<8x128xf32>
    %88 = math.exp %87 : vector<8x128xf32>
    %cst_29 = arith.constant 1.000000e+00 : f32
    %89 = vector.broadcast %cst_29 : f32 to vector<8x128xf32>
    %90 = arith.addf %89, %88 : vector<8x128xf32>
    %91 = arith.divf %89, %90 : vector<8x128xf32>
    %92 = vector.extract_strided_slice %81 {offsets = [0, 128], sizes = [8, 128], strides = [1, 1]} : vector<8x384xf32> to vector<8x128xf32>
    %93 = vector.extract_strided_slice %83 {offsets = [0, 128], sizes = [8, 128], strides = [1, 1]} : vector<8x384xf32> to vector<8x128xf32>
    %94 = arith.addf %92, %93 : vector<8x128xf32>
    %95 = arith.negf %94 : vector<8x128xf32>
    %96 = math.exp %95 : vector<8x128xf32>
    %cst_30 = arith.constant 1.000000e+00 : f32
    %97 = vector.broadcast %cst_30 : f32 to vector<8x128xf32>
    %98 = arith.addf %97, %96 : vector<8x128xf32>
    %99 = arith.divf %97, %98 : vector<8x128xf32>
    %100 = vector.extract_strided_slice %81 {offsets = [0, 256], sizes = [8, 128], strides = [1, 1]} : vector<8x384xf32> to vector<8x128xf32>
    %101 = vector.extract_strided_slice %83 {offsets = [0, 256], sizes = [8, 128], strides = [1, 1]} : vector<8x384xf32> to vector<8x128xf32>
    %102 = vector.broadcast %3 : vector<1x128xf32> to vector<8x128xf32>
    %103 = arith.addf %101, %102 : vector<8x128xf32>
    %104 = arith.mulf %91, %103 : vector<8x128xf32>
    %105 = arith.addf %100, %104 : vector<8x128xf32>
    %106 = math.tanh %105 : vector<8x128xf32>
    %cst_31 = arith.constant 1.000000e+00 : f32
    %107 = vector.broadcast %cst_31 : f32 to vector<8x128xf32>
    %108 = arith.subf %107, %99 : vector<8x128xf32>
    %109 = arith.mulf %108, %106 : vector<8x128xf32>
    %110 = arith.mulf %99, %74 : vector<8x128xf32>
    %111 = arith.addf %109, %110 : vector<8x128xf32>
    %112 = arith.index_cast %c2_i32 : i32 to index
    %c0_32 = arith.constant 0 : index
    %c0_33 = arith.constant 0 : index
    %113 = vector.load %arg6[%112, %c0_32, %c0_33] : memref<8x8x128xf32, #tpu.memory_space<vmem>>, vector<1x8x128xf32>
    %114 = vector.shape_cast %113 : vector<1x8x128xf32> to vector<8x128xf32>
    %115 = vector.shape_cast %111 : vector<8x128xf32> to vector<1x8x128xf32>
    tpu.vector_store %arg6[%112, %c0_32, %c0_33], %115 {strides = array<i32>} : memref<8x8x128xf32, #tpu.memory_space<vmem>>, vector<1x8x128xf32>,
    %c3_i32 = arith.constant 3 : i32
    %116 = arith.index_cast %c3_i32 : i32 to index
    %c0_34 = arith.constant 0 : index
    %c0_35 = arith.constant 0 : index
    %117 = vector.load %arg2[%116, %c0_34, %c0_35] : memref<8x8x384xf32, #tpu.memory_space<vmem>>, vector<1x8x384xf32>
    %118 = vector.shape_cast %117 : vector<1x8x384xf32> to vector<8x384xf32>
    %c0_36 = arith.constant 0 : index
    %c0_37 = arith.constant 0 : index
    %119 = vector.load %arg3[%c0_36, %c0_37] : memref<128x384xf32, #tpu.memory_space<vmem>>, vector<128x384xf32>
    %cst_38 = arith.constant dense<0.000000e+00> : vector<8x384xf32>
    %120 = tpu.matmul %111, %119, %cst_38 {dimension_numbers = #tpu.dot_dimension_numbers<[1], [0], [0], [1], [0, 0, 1, 1], [], []>} : vector<8x128xf32>, vector<128x384xf32>, vector<8x384xf32> -> vector<8x384xf32>
    %121 = vector.extract_strided_slice %118 {offsets = [0, 0], sizes = [8, 128], strides = [1, 1]} : vector<8x384xf32> to vector<8x128xf32>
    %122 = vector.extract_strided_slice %120 {offsets = [0, 0], sizes = [8, 128], strides = [1, 1]} : vector<8x384xf32> to vector<8x128xf32>
    %123 = arith.addf %121, %122 : vector<8x128xf32>
    %124 = arith.negf %123 : vector<8x128xf32>
    %125 = math.exp %124 : vector<8x128xf32>
    %cst_39 = arith.constant 1.000000e+00 : f32
    %126 = vector.broadcast %cst_39 : f32 to vector<8x128xf32>
    %127 = arith.addf %126, %125 : vector<8x128xf32>
    %128 = arith.divf %126, %127 : vector<8x128xf32>
    %129 = vector.extract_strided_slice %118 {offsets = [0, 128], sizes = [8, 128], strides = [1, 1]} : vector<8x384xf32> to vector<8x128xf32>
    %130 = vector.extract_strided_slice %120 {offsets = [0, 128], sizes = [8, 128], strides = [1, 1]} : vector<8x384xf32> to vector<8x128xf32>
    %131 = arith.addf %129, %130 : vector<8x128xf32>
    %132 = arith.negf %131 : vector<8x128xf32>
    %133 = math.exp %132 : vector<8x128xf32>
    %cst_40 = arith.constant 1.000000e+00 : f32
    %134 = vector.broadcast %cst_40 : f32 to vector<8x128xf32>
    %135 = arith.addf %134, %133 : vector<8x128xf32>
    %136 = arith.divf %134, %135 : vector<8x128xf32>
    %137 = vector.extract_strided_slice %118 {offsets = [0, 256], sizes = [8, 128], strides = [1, 1]} : vector<8x384xf32> to vector<8x128xf32>
    %138 = vector.extract_strided_slice %120 {offsets = [0, 256], sizes = [8, 128], strides = [1, 1]} : vector<8x384xf32> to vector<8x128xf32>
    %139 = vector.broadcast %3 : vector<1x128xf32> to vector<8x128xf32>
    %140 = arith.addf %138, %139 : vector<8x128xf32>
    %141 = arith.mulf %128, %140 : vector<8x128xf32>
    %142 = arith.addf %137, %141 : vector<8x128xf32>
    %143 = math.tanh %142 : vector<8x128xf32>
    %cst_41 = arith.constant 1.000000e+00 : f32
    %144 = vector.broadcast %cst_41 : f32 to vector<8x128xf32>
    %145 = arith.subf %144, %136 : vector<8x128xf32>
    %146 = arith.mulf %145, %143 : vector<8x128xf32>
    %147 = arith.mulf %136, %111 : vector<8x128xf32>
    %148 = arith.addf %146, %147 : vector<8x128xf32>
    %149 = arith.index_cast %c3_i32 : i32 to index
    %c0_42 = arith.constant 0 : index
    %c0_43 = arith.constant 0 : index
    %150 = vector.load %arg6[%149, %c0_42, %c0_43] : memref<8x8x128xf32, #tpu.memory_space<vmem>>, vector<1x8x128xf32>
    %151 = vector.shape_cast %150 : vector<1x8x128xf32> to vector<8x128xf32>
    %152 = vector.shape_cast %148 : vector<8x128xf32> to vector<1x8x128xf32>
    tpu.vector_store %arg6[%149, %c0_42, %c0_43], %152 {strides = array<i32>} : memref<8x8x128xf32, #tpu.memory_space<vmem>>, vector<1x8x128xf32>,
    %c4_i32 = arith.constant 4 : i32
    %153 = arith.index_cast %c4_i32 : i32 to index
    %c0_44 = arith.constant 0 : index
    %c0_45 = arith.constant 0 : index
    %154 = vector.load %arg2[%153, %c0_44, %c0_45] : memref<8x8x384xf32, #tpu.memory_space<vmem>>, vector<1x8x384xf32>
    %155 = vector.shape_cast %154 : vector<1x8x384xf32> to vector<8x384xf32>
    %c0_46 = arith.constant 0 : index
    %c0_47 = arith.constant 0 : index
    %156 = vector.load %arg3[%c0_46, %c0_47] : memref<128x384xf32, #tpu.memory_space<vmem>>, vector<128x384xf32>
    %cst_48 = arith.constant dense<0.000000e+00> : vector<8x384xf32>
    %157 = tpu.matmul %148, %156, %cst_48 {dimension_numbers = #tpu.dot_dimension_numbers<[1], [0], [0], [1], [0, 0, 1, 1], [], []>} : vector<8x128xf32>, vector<128x384xf32>, vector<8x384xf32> -> vector<8x384xf32>
    %158 = vector.extract_strided_slice %155 {offsets = [0, 0], sizes = [8, 128], strides = [1, 1]} : vector<8x384xf32> to vector<8x128xf32>
    %159 = vector.extract_strided_slice %157 {offsets = [0, 0], sizes = [8, 128], strides = [1, 1]} : vector<8x384xf32> to vector<8x128xf32>
    %160 = arith.addf %158, %159 : vector<8x128xf32>
    %161 = arith.negf %160 : vector<8x128xf32>
    %162 = math.exp %161 : vector<8x128xf32>
    %cst_49 = arith.constant 1.000000e+00 : f32
    %163 = vector.broadcast %cst_49 : f32 to vector<8x128xf32>
    %164 = arith.addf %163, %162 : vector<8x128xf32>
    %165 = arith.divf %163, %164 : vector<8x128xf32>
    %166 = vector.extract_strided_slice %155 {offsets = [0, 128], sizes = [8, 128], strides = [1, 1]} : vector<8x384xf32> to vector<8x128xf32>
    %167 = vector.extract_strided_slice %157 {offsets = [0, 128], sizes = [8, 128], strides = [1, 1]} : vector<8x384xf32> to vector<8x128xf32>
    %168 = arith.addf %166, %167 : vector<8x128xf32>
    %169 = arith.negf %168 : vector<8x128xf32>
    %170 = math.exp %169 : vector<8x128xf32>
    %cst_50 = arith.constant 1.000000e+00 : f32
    %171 = vector.broadcast %cst_50 : f32 to vector<8x128xf32>
    %172 = arith.addf %171, %170 : vector<8x128xf32>
    %173 = arith.divf %171, %172 : vector<8x128xf32>
    %174 = vector.extract_strided_slice %155 {offsets = [0, 256], sizes = [8, 128], strides = [1, 1]} : vector<8x384xf32> to vector<8x128xf32>
    %175 = vector.extract_strided_slice %157 {offsets = [0, 256], sizes = [8, 128], strides = [1, 1]} : vector<8x384xf32> to vector<8x128xf32>
    %176 = vector.broadcast %3 : vector<1x128xf32> to vector<8x128xf32>
    %177 = arith.addf %175, %176 : vector<8x128xf32>
    %178 = arith.mulf %165, %177 : vector<8x128xf32>
    %179 = arith.addf %174, %178 : vector<8x128xf32>
    %180 = math.tanh %179 : vector<8x128xf32>
    %cst_51 = arith.constant 1.000000e+00 : f32
    %181 = vector.broadcast %cst_51 : f32 to vector<8x128xf32>
    %182 = arith.subf %181, %173 : vector<8x128xf32>
    %183 = arith.mulf %182, %180 : vector<8x128xf32>
    %184 = arith.mulf %173, %148 : vector<8x128xf32>
    %185 = arith.addf %183, %184 : vector<8x128xf32>
    %186 = arith.index_cast %c4_i32 : i32 to index
    %c0_52 = arith.constant 0 : index
    %c0_53 = arith.constant 0 : index
    %187 = vector.load %arg6[%186, %c0_52, %c0_53] : memref<8x8x128xf32, #tpu.memory_space<vmem>>, vector<1x8x128xf32>
    %188 = vector.shape_cast %187 : vector<1x8x128xf32> to vector<8x128xf32>
    %189 = vector.shape_cast %185 : vector<8x128xf32> to vector<1x8x128xf32>
    tpu.vector_store %arg6[%186, %c0_52, %c0_53], %189 {strides = array<i32>} : memref<8x8x128xf32, #tpu.memory_space<vmem>>, vector<1x8x128xf32>,
    %c5_i32 = arith.constant 5 : i32
    %190 = arith.index_cast %c5_i32 : i32 to index
    %c0_54 = arith.constant 0 : index
    %c0_55 = arith.constant 0 : index
    %191 = vector.load %arg2[%190, %c0_54, %c0_55] : memref<8x8x384xf32, #tpu.memory_space<vmem>>, vector<1x8x384xf32>
    %192 = vector.shape_cast %191 : vector<1x8x384xf32> to vector<8x384xf32>
    %c0_56 = arith.constant 0 : index
    %c0_57 = arith.constant 0 : index
    %193 = vector.load %arg3[%c0_56, %c0_57] : memref<128x384xf32, #tpu.memory_space<vmem>>, vector<128x384xf32>
    %cst_58 = arith.constant dense<0.000000e+00> : vector<8x384xf32>
    %194 = tpu.matmul %185, %193, %cst_58 {dimension_numbers = #tpu.dot_dimension_numbers<[1], [0], [0], [1], [0, 0, 1, 1], [], []>} : vector<8x128xf32>, vector<128x384xf32>, vector<8x384xf32> -> vector<8x384xf32>
    %195 = vector.extract_strided_slice %192 {offsets = [0, 0], sizes = [8, 128], strides = [1, 1]} : vector<8x384xf32> to vector<8x128xf32>
    %196 = vector.extract_strided_slice %194 {offsets = [0, 0], sizes = [8, 128], strides = [1, 1]} : vector<8x384xf32> to vector<8x128xf32>
    %197 = arith.addf %195, %196 : vector<8x128xf32>
    %198 = arith.negf %197 : vector<8x128xf32>
    %199 = math.exp %198 : vector<8x128xf32>
    %cst_59 = arith.constant 1.000000e+00 : f32
    %200 = vector.broadcast %cst_59 : f32 to vector<8x128xf32>
    %201 = arith.addf %200, %199 : vector<8x128xf32>
    %202 = arith.divf %200, %201 : vector<8x128xf32>
    %203 = vector.extract_strided_slice %192 {offsets = [0, 128], sizes = [8, 128], strides = [1, 1]} : vector<8x384xf32> to vector<8x128xf32>
    %204 = vector.extract_strided_slice %194 {offsets = [0, 128], sizes = [8, 128], strides = [1, 1]} : vector<8x384xf32> to vector<8x128xf32>
    %205 = arith.addf %203, %204 : vector<8x128xf32>
    %206 = arith.negf %205 : vector<8x128xf32>
    %207 = math.exp %206 : vector<8x128xf32>
    %cst_60 = arith.constant 1.000000e+00 : f32
    %208 = vector.broadcast %cst_60 : f32 to vector<8x128xf32>
    %209 = arith.addf %208, %207 : vector<8x128xf32>
    %210 = arith.divf %208, %209 : vector<8x128xf32>
    %211 = vector.extract_strided_slice %192 {offsets = [0, 256], sizes = [8, 128], strides = [1, 1]} : vector<8x384xf32> to vector<8x128xf32>
    %212 = vector.extract_strided_slice %194 {offsets = [0, 256], sizes = [8, 128], strides = [1, 1]} : vector<8x384xf32> to vector<8x128xf32>
    %213 = vector.broadcast %3 : vector<1x128xf32> to vector<8x128xf32>
    %214 = arith.addf %212, %213 : vector<8x128xf32>
    %215 = arith.mulf %202, %214 : vector<8x128xf32>
    %216 = arith.addf %211, %215 : vector<8x128xf32>
    %217 = math.tanh %216 : vector<8x128xf32>
    %cst_61 = arith.constant 1.000000e+00 : f32
    %218 = vector.broadcast %cst_61 : f32 to vector<8x128xf32>
    %219 = arith.subf %218, %210 : vector<8x128xf32>
    %220 = arith.mulf %219, %217 : vector<8x128xf32>
    %221 = arith.mulf %210, %185 : vector<8x128xf32>
    %222 = arith.addf %220, %221 : vector<8x128xf32>
    %223 = arith.index_cast %c5_i32 : i32 to index
    %c0_62 = arith.constant 0 : index
    %c0_63 = arith.constant 0 : index
    %224 = vector.load %arg6[%223, %c0_62, %c0_63] : memref<8x8x128xf32, #tpu.memory_space<vmem>>, vector<1x8x128xf32>
    %225 = vector.shape_cast %224 : vector<1x8x128xf32> to vector<8x128xf32>
    %226 = vector.shape_cast %222 : vector<8x128xf32> to vector<1x8x128xf32>
    tpu.vector_store %arg6[%223, %c0_62, %c0_63], %226 {strides = array<i32>} : memref<8x8x128xf32, #tpu.memory_space<vmem>>, vector<1x8x128xf32>,
    %c6_i32 = arith.constant 6 : i32
    %227 = arith.index_cast %c6_i32 : i32 to index
    %c0_64 = arith.constant 0 : index
    %c0_65 = arith.constant 0 : index
    %228 = vector.load %arg2[%227, %c0_64, %c0_65] : memref<8x8x384xf32, #tpu.memory_space<vmem>>, vector<1x8x384xf32>
    %229 = vector.shape_cast %228 : vector<1x8x384xf32> to vector<8x384xf32>
    %c0_66 = arith.constant 0 : index
    %c0_67 = arith.constant 0 : index
    %230 = vector.load %arg3[%c0_66, %c0_67] : memref<128x384xf32, #tpu.memory_space<vmem>>, vector<128x384xf32>
    %cst_68 = arith.constant dense<0.000000e+00> : vector<8x384xf32>
    %231 = tpu.matmul %222, %230, %cst_68 {dimension_numbers = #tpu.dot_dimension_numbers<[1], [0], [0], [1], [0, 0, 1, 1], [], []>} : vector<8x128xf32>, vector<128x384xf32>, vector<8x384xf32> -> vector<8x384xf32>
    %232 = vector.extract_strided_slice %229 {offsets = [0, 0], sizes = [8, 128], strides = [1, 1]} : vector<8x384xf32> to vector<8x128xf32>
    %233 = vector.extract_strided_slice %231 {offsets = [0, 0], sizes = [8, 128], strides = [1, 1]} : vector<8x384xf32> to vector<8x128xf32>
    %234 = arith.addf %232, %233 : vector<8x128xf32>
    %235 = arith.negf %234 : vector<8x128xf32>
    %236 = math.exp %235 : vector<8x128xf32>
    %cst_69 = arith.constant 1.000000e+00 : f32
    %237 = vector.broadcast %cst_69 : f32 to vector<8x128xf32>
    %238 = arith.addf %237, %236 : vector<8x128xf32>
    %239 = arith.divf %237, %238 : vector<8x128xf32>
    %240 = vector.extract_strided_slice %229 {offsets = [0, 128], sizes = [8, 128], strides = [1, 1]} : vector<8x384xf32> to vector<8x128xf32>
    %241 = vector.extract_strided_slice %231 {offsets = [0, 128], sizes = [8, 128], strides = [1, 1]} : vector<8x384xf32> to vector<8x128xf32>
    %242 = arith.addf %240, %241 : vector<8x128xf32>
    %243 = arith.negf %242 : vector<8x128xf32>
    %244 = math.exp %243 : vector<8x128xf32>
    %cst_70 = arith.constant 1.000000e+00 : f32
    %245 = vector.broadcast %cst_70 : f32 to vector<8x128xf32>
    %246 = arith.addf %245, %244 : vector<8x128xf32>
    %247 = arith.divf %245, %246 : vector<8x128xf32>
    %248 = vector.extract_strided_slice %229 {offsets = [0, 256], sizes = [8, 128], strides = [1, 1]} : vector<8x384xf32> to vector<8x128xf32>
    %249 = vector.extract_strided_slice %231 {offsets = [0, 256], sizes = [8, 128], strides = [1, 1]} : vector<8x384xf32> to vector<8x128xf32>
    %250 = vector.broadcast %3 : vector<1x128xf32> to vector<8x128xf32>
    %251 = arith.addf %249, %250 : vector<8x128xf32>
    %252 = arith.mulf %239, %251 : vector<8x128xf32>
    %253 = arith.addf %248, %252 : vector<8x128xf32>
    %254 = math.tanh %253 : vector<8x128xf32>
    %cst_71 = arith.constant 1.000000e+00 : f32
    %255 = vector.broadcast %cst_71 : f32 to vector<8x128xf32>
    %256 = arith.subf %255, %247 : vector<8x128xf32>
    %257 = arith.mulf %256, %254 : vector<8x128xf32>
    %258 = arith.mulf %247, %222 : vector<8x128xf32>
    %259 = arith.addf %257, %258 : vector<8x128xf32>
    %260 = arith.index_cast %c6_i32 : i32 to index
    %c0_72 = arith.constant 0 : index
    %c0_73 = arith.constant 0 : index
    %261 = vector.load %arg6[%260, %c0_72, %c0_73] : memref<8x8x128xf32, #tpu.memory_space<vmem>>, vector<1x8x128xf32>
    %262 = vector.shape_cast %261 : vector<1x8x128xf32> to vector<8x128xf32>
    %263 = vector.shape_cast %259 : vector<8x128xf32> to vector<1x8x128xf32>
    tpu.vector_store %arg6[%260, %c0_72, %c0_73], %263 {strides = array<i32>} : memref<8x8x128xf32, #tpu.memory_space<vmem>>, vector<1x8x128xf32>,
    %c7_i32 = arith.constant 7 : i32
    %264 = arith.index_cast %c7_i32 : i32 to index
    %c0_74 = arith.constant 0 : index
    %c0_75 = arith.constant 0 : index
    %265 = vector.load %arg2[%264, %c0_74, %c0_75] : memref<8x8x384xf32, #tpu.memory_space<vmem>>, vector<1x8x384xf32>
    %266 = vector.shape_cast %265 : vector<1x8x384xf32> to vector<8x384xf32>
    %c0_76 = arith.constant 0 : index
    %c0_77 = arith.constant 0 : index
    %267 = vector.load %arg3[%c0_76, %c0_77] : memref<128x384xf32, #tpu.memory_space<vmem>>, vector<128x384xf32>
    %cst_78 = arith.constant dense<0.000000e+00> : vector<8x384xf32>
    %268 = tpu.matmul %259, %267, %cst_78 {dimension_numbers = #tpu.dot_dimension_numbers<[1], [0], [0], [1], [0, 0, 1, 1], [], []>} : vector<8x128xf32>, vector<128x384xf32>, vector<8x384xf32> -> vector<8x384xf32>
    %269 = vector.extract_strided_slice %266 {offsets = [0, 0], sizes = [8, 128], strides = [1, 1]} : vector<8x384xf32> to vector<8x128xf32>
    %270 = vector.extract_strided_slice %268 {offsets = [0, 0], sizes = [8, 128], strides = [1, 1]} : vector<8x384xf32> to vector<8x128xf32>
    %271 = arith.addf %269, %270 : vector<8x128xf32>
    %272 = arith.negf %271 : vector<8x128xf32>
    %273 = math.exp %272 : vector<8x128xf32>
    %cst_79 = arith.constant 1.000000e+00 : f32
    %274 = vector.broadcast %cst_79 : f32 to vector<8x128xf32>
    %275 = arith.addf %274, %273 : vector<8x128xf32>
    %276 = arith.divf %274, %275 : vector<8x128xf32>
    %277 = vector.extract_strided_slice %266 {offsets = [0, 128], sizes = [8, 128], strides = [1, 1]} : vector<8x384xf32> to vector<8x128xf32>
    %278 = vector.extract_strided_slice %268 {offsets = [0, 128], sizes = [8, 128], strides = [1, 1]} : vector<8x384xf32> to vector<8x128xf32>
    %279 = arith.addf %277, %278 : vector<8x128xf32>
    %280 = arith.negf %279 : vector<8x128xf32>
    %281 = math.exp %280 : vector<8x128xf32>
    %cst_80 = arith.constant 1.000000e+00 : f32
    %282 = vector.broadcast %cst_80 : f32 to vector<8x128xf32>
    %283 = arith.addf %282, %281 : vector<8x128xf32>
    %284 = arith.divf %282, %283 : vector<8x128xf32>
    %285 = vector.extract_strided_slice %266 {offsets = [0, 256], sizes = [8, 128], strides = [1, 1]} : vector<8x384xf32> to vector<8x128xf32>
    %286 = vector.extract_strided_slice %268 {offsets = [0, 256], sizes = [8, 128], strides = [1, 1]} : vector<8x384xf32> to vector<8x128xf32>
    %287 = vector.broadcast %3 : vector<1x128xf32> to vector<8x128xf32>
    %288 = arith.addf %286, %287 : vector<8x128xf32>
    %289 = arith.mulf %276, %288 : vector<8x128xf32>
    %290 = arith.addf %285, %289 : vector<8x128xf32>
    %291 = math.tanh %290 : vector<8x128xf32>
    %cst_81 = arith.constant 1.000000e+00 : f32
    %292 = vector.broadcast %cst_81 : f32 to vector<8x128xf32>
    %293 = arith.subf %292, %284 : vector<8x128xf32>
    %294 = arith.mulf %293, %291 : vector<8x128xf32>
    %295 = arith.mulf %284, %259 : vector<8x128xf32>
    %296 = arith.addf %294, %295 : vector<8x128xf32>
    %297 = arith.index_cast %c7_i32 : i32 to index
    %c0_82 = arith.constant 0 : index
    %c0_83 = arith.constant 0 : index
    %298 = vector.load %arg6[%297, %c0_82, %c0_83] : memref<8x8x128xf32, #tpu.memory_space<vmem>>, vector<1x8x128xf32>
    %299 = vector.shape_cast %298 : vector<1x8x128xf32> to vector<8x128xf32>
    %300 = vector.shape_cast %296 : vector<8x128xf32> to vector<1x8x128xf32>
    tpu.vector_store %arg6[%297, %c0_82, %c0_83], %300 {strides = array<i32>} : memref<8x8x128xf32, #tpu.memory_space<vmem>>, vector<1x8x128xf32>,
    %c8_i32 = arith.constant 8 : i32
    %c0_84 = arith.constant 0 : index
    %c0_85 = arith.constant 0 : index
    %301 = vector.load %arg7[%c0_84, %c0_85] : memref<8x128xf32, #tpu.memory_space<vmem>>, vector<8x128xf32>
    tpu.vector_store %arg7[%c0_84, %c0_85], %296 {strides = array<i32>} : memref<8x128xf32, #tpu.memory_space<vmem>>, vector<8x128xf32>,
    return
  }
  func.func @transform_0(%arg0: i32, %arg1: i32) -> (i32, i32, i32) {
    %c0_i32 = arith.constant 0 : i32
    %c0_i32_0 = arith.constant 0 : i32
    return %arg1, %arg0, %c0_i32 : i32, i32, i32
  }
  func.func @transform_1(%arg0: i32, %arg1: i32) -> (i32, i32) {
    %c0_i32 = arith.constant 0 : i32
    %c0_i32_0 = arith.constant 0 : i32
    %c0_i32_1 = arith.constant 0 : i32
    return %c0_i32, %c0_i32_0 : i32, i32
  }
  func.func @transform_2(%arg0: i32, %arg1: i32) -> (i32, i32) {
    %c0_i32 = arith.constant 0 : i32
    %c0_i32_0 = arith.constant 0 : i32
    %c0_i32_1 = arith.constant 0 : i32
    return %c0_i32, %c0_i32_0 : i32, i32
  }
  func.func @transform_3(%arg0: i32, %arg1: i32) -> (i32, i32) {
    %c0_i32 = arith.constant 0 : i32
    %c0_i32_0 = arith.constant 0 : i32
    return %arg0, %c0_i32 : i32, i32
  }
  func.func @transform_4(%arg0: i32, %arg1: i32) -> (i32, i32, i32) {
    %c0_i32 = arith.constant 0 : i32
    %c0_i32_0 = arith.constant 0 : i32
    return %arg1, %arg0, %c0_i32 : i32, i32, i32
  }
  func.func @transform_5(%arg0: i32, %arg1: i32) -> (i32, i32) {
    %c0_i32 = arith.constant 0 : i32
    %c0_i32_0 = arith.constant 0 : i32
    return %arg0, %c0_i32 : i32, i32
  }
}

</mosaic_0001>

<bundles_post_ra>
// kernel: tpu_custom_call.1
= control target key start
LH: loop header
LB: loop body
LE: loop exit
PB: predicated region body
PF: predicated region fallthrough
CT: control target
= control target key end

     0   :  { %6 = vsyncpa [#allocation3], 0  ;;  %s341_s0 = inlined_call_operand.hbm [shape: f32[8,128], index: 0, kind: input, shape index: {}]   ;;  %s342_s1 = inlined_call_operand.hbm [shape: f32[8,128], index: 1, kind: output, shape index: {}]  }
   0x1   :  { %7 = vsyncpa [#allocation4], 0  ;;  %s262_s6 = smov 0  }
   0x2 LB: > { %s145_s7 = sadd.s32 4294967295, %s248_s6   ;;  %p146_p0 = scmp.ge.s32.totalorder %s248_s6, 1  ;;  %s248_s6 = sphi %s262_s6, %s13_s6  }
   0x3   : > { %p60_p1 = scmp.lt.s32.totalorder %s248_s6, 3  ;;  %p276_p3 = scmp.eq.s32.totalorder %s145_s7, 0 }
   0x4   : > { %s250_s10 = smov [#allocation2]   ;;  %s180_s15 = scalar_lea.hbm %s341_s0, 128 }
   0x5   : > { %p270_p2 = pnand %p146_p0, %p60_p1  ;;  %s73_s11 = sshll.u32 %s250_s10, 4  ;;  %s74_s11 = int_to_ptr.vmem [resolvable:$true] %s73_s11 }
   0x6   : > { %s347_s9 = scalar_select %p276_p3, 1, 0 }
   0x7   : > { %s346_s8 = scalar_select %p270_p2, 1, 0 }
   0x8   : > { %p162_p4 = pneg %p270_p2  ;;  %p181_p6 = scmp.ne.s32.totalorder %s341_s0, %s180_s15 }
   0x9   : > { %p187_p10 = scmp.lt.u32.totalorder %s180_s15, %s341_s0 }
   0xa   : > { %p284_p5 = pnand %p276_p3, %p162_p4 }
   0xc   : > { %p182_p7 = pneg %p284_p5 }
   0xe   : > { %p183_p8 = pnand %p182_p7, %p181_p6 }
  0x10   : > { %p184_p9 = pneg %p183_p8 }
  0x12   : > { %p189_p11 = pnand %p187_p10, %p184_p9 }
  0x14   : > { %192 = shalt.err (!%p189_p11)
}
  0x15   : > { %s193_s20 = scalar_lea.vmem %s74_s11, 128  ;;  %p201_p1 = scmp.lt.s32.totalorder %s74_s11, %s74_s11 }
  0x16   : > { %p194_p12 = scmp.ne.s32.totalorder %s74_s11, %s193_s20  ;;  %p202_p4 = scmp.lt.s32.totalorder %s193_s20, %s193_s20 }
  0x18   : > { %p196_p13 = pnand %p194_p12, %p182_p7  ;;  %p203_p3 = por %p202_p4, %p201_p1 }
  0x1a   : > { %p197_p0 = pneg %p196_p13 }
  0x1c   : > { %p204_p2 = pnand %p203_p3, %p197_p0 }
  0x1e   : > { %207 = shalt.err (!%p204_p2)
}
  0x1f   : > { %165 = dma.hbm_to_vmem [thread:$0]  (!%p284_p5), %s341_s0, 128, %s74_s11, [#allocation3]  }
  0x20   : > { %p349_p6 = scmp.ne.s32.totalorder %s346_s8, 0 }
  0x21   : > { %p350_p8 = scmp.ne.s32.totalorder (!%p349_p6), %s347_s9, 0 }
  0x22   : > { %86 = sbr.rel (%p349_p6) target bundleno = 67 (0x43), region = 24 }
  0x29   : > { %239 = dma.done.wait (%p350_p8), [#allocation3], 128  }
  0x2a   : > { %241 = vsyncadd (%p350_p8), [#allocation3], 4294967168  ;;  %s251_s23 = smov [#allocation5]   ;;  %v96_v0 = vld [vmem:[#allocation2] sm:$0xff]  ;;  %p312_p2 = scmp.eq.s32.totalorder %s145_s7, 1 }
  0x2b   : > { %s106_s24 = sshll.u32 %s251_s23, 4  ;;  %v97_v1 = vadd.f32 1.0, %v96_v0  ;;  %s107_s24 = int_to_ptr.vmem [resolvable:$true] %s106_s24 }
  0x2c   : > { %s208_s26 = scalar_lea.vmem %s107_s24, 128  ;;  %p215_p9 = scmp.lt.s32.totalorder %s107_s24, %s107_s24 }
  0x2d   : > { %98 = vst [vmem:[#allocation5] sm:$0xff] %v97_v1  ;;  %p209_p3 = scmp.ne.s32.totalorder %s107_s24, %s208_s26  ;;  %p216_p10 = scmp.lt.s32.totalorder %s208_s26, %s208_s26 }
  0x2f   : > { %p210_p5 = pnand %p209_p3, %p312_p2  ;;  %p217_p11 = por %p216_p10, %p215_p9 }
  0x31   : > { %p211_p7 = pneg %p210_p5 }
  0x33   : > { %p218_p12 = pnand %p217_p11, %p211_p7 }
  0x35   : > { %221 = shalt.err (!%p218_p12)
}
  0x36   : > { %s222_s29 = scalar_lea.hbm %s342_s1, 128 }
  0x37   : > { %p223_p13 = scmp.ne.s32.totalorder %s342_s1, %s222_s29  ;;  %p228_p4 = scmp.lt.u32.totalorder %s222_s29, %s342_s1 }
  0x39   : > { %p224_p0 = pnand %p223_p13, %p312_p2 }
  0x3b   : > { %p225_p1 = pneg %p224_p0 }
  0x3d   : > { %p230_p6 = pnand %p228_p4, %p225_p1 }
  0x3f   : > { %233 = shalt.err (!%p230_p6)
}
  0x40   : > { %159 = dma.vmem_to_hbm [thread:$0]  (%p312_p2), %s107_s24, 128, %s342_s1, [#allocation4]  }
  0x41   : > { %243 = dma.done.wait (%p312_p2), [#allocation4], 128  }
  0x42   : > { %245 = vsyncadd (%p312_p2), [#allocation4], 4294967168 }
  0x43 PF: > { %s13_s6 = sadd.s32 1, %s248_s6  }
  0x44   : > { %p10_p8 = scmp.ge.s32.totalorder %s13_s6, 4  }
  0x46   :  { %12 = sbr.rel (!%p10_p8) target bundleno = 2 (0x2), region = 53 }
  0x4d   :  { %119 = vsyncpa [#allocation3], 1 }
  0x4e   :  { %121 = vsyncpa [#allocation3 + $0x1], 1 }
  0x4f   :  { %122 = vsyncpa [#allocation4], 1 }
  0x50   :  { %124 = vsyncpa [#allocation4 + $0x1], 1 }

// kernel: decoder_gru_forward.5
= control target key start
LH: loop header
LB: loop body
LE: loop exit
PB: predicated region body
PF: predicated region fallthrough
CT: control target
= control target key end

     0   :  { %8 = vsyncpa [#allocation4], 0  ;;  %s1130_s0 = inlined_call_operand.vmem [shape: f32[64,128], index: 0, kind: input, shape index: {}]   ;;  %s1131_s1 = inlined_call_operand.hbm [shape: f32[128,384], index: 1, kind: input, shape index: {}]   ;;  %s1132_s2 = inlined_call_operand.vmem [shape: f32[1,384], index: 2, kind: input, shape index: {}]   ;;  %s1133_s3 = inlined_call_operand.vmem [shape: f32[64,384], index: 3, kind: output, shape index: {}]  }
   0x1   :  { %10 = vsyncpa [#allocation4 + $0x1], 0  ;;  %s929_s12 = smov 0   ;;  %s931_s13 = smov 0  }
   0x2   :  { %s933_s14 = smov 0   ;;  %s935_s15 = smov 0  }
   0x3   :  { %s937_s16 = smov 0   ;;  %s939_s17 = smov 0  }
   0x4 LB: > { %s634_s18 = sadd.s32 4294967295, %s903_s17   ;;  %s31_s19 = sadd.s32 1, %s899_s16  ;;  %s903_s17 = sphi %s939_s17, %s16_s17   ;;  %s899_s16 = sphi %s937_s16, %s1144_s16   ;;  %s895_s15 = sphi %s935_s15, %s1143_s15   ;;  %s891_s14 = sphi %s933_s14, %s1142_s14   ;;  %s887_s13 = sphi %s931_s13, %s1141_s13   ;;  %s883_s12 = sphi %s929_s12, %s1140_s12  }
   0x5   : > { %p33_p0 = scmp.ge.s32.totalorder %s31_s19, 3  ;;  %s72_s20 = sadd.s32 1, %s891_s14 }
   0x6   : > { %p79_p1 = scmp.ne.s32.totalorder %s891_s14, %s887_s13  ;;  %p80_p2 = scmp.eq.s32.totalorder %s903_s17, 0 }
   0x7   : > { %s1146_s19 = smov (%p33_p0, %s31_s19), 0  ;;  %p85_p4 = scmp.ne.s32.totalorder %s887_s13, %s883_s12 }
   0x8   : > { %p965_p3 = por %p80_p2, %p79_p1  ;;  %s68_s22 = ssub.s32 %s899_s16, %s1146_s19 }
   0x9   : > { %p86_p5 = scmp.eq.s32.totalorder %s634_s18, 0  ;;  %p70_p6 = scmp.eq.s32.totalorder %s68_s22, 0 }
   0xa   : > { %p137_p7 = scmp.eq.s32.totalorder %s634_s18, 2  ;;  %p771_p10 = scmp.lt.s32.totalorder %s903_s17, 3 }
   0xb   : > { %p972_p8 = por %p86_p5, %p85_p4  ;;  %s175_s26 = sand.u32 1, %s891_s14  }
   0xc   : > { %s977_s24 = scalar_select %p70_p6, %s891_s14, %s72_s20  }
   0xd   : > { %p979_p9 = por %p137_p7, %p79_p1  ;;  %s640_s27 = sshll.u32 %s899_s16, 7 }
   0xe   : > { %s639_s28 = sshll.u32 %s175_s26, 7  ;;  %s989_s4 = scalar_lea.hbm %s1131_s1, %s640_s27 }
   0xf   : > { %s1136_s25 = scalar_select %p979_p9, 1, 0 }
  0x10   : > { %s179_s5 = scalar_lea.vmem [#allocation3], %s639_s28  ;;  %p993_p11 = pnand %p771_p10, %p965_p3 }
  0x11   : > { %s188_s6 = sshll.u32 %s179_s5, 4  ;;  %s1000_s8 = scalar_lea.sflag [#allocation4], %s175_s26  ;;  %s997_s6 = int_to_ptr.vmem [resolvable:$true] %s188_s6 }
  0x12   : > { %s823_s9 = scalar_lea.hbm %s989_s4, 2048  ;;  %p825_p0 = pneg %p993_p11 }
  0x13   : > { %p824_p13 = scmp.ne.s32.totalorder %s989_s4, %s823_s9  ;;  %s828_s12 = scalar_lea.hbm %s1131_s1, 6144 }
  0x14   : > { %p829_p3 = scmp.lt.u32.totalorder %s989_s4, %s1131_s1  ;;  %p830_p4 = scmp.lt.u32.totalorder %s828_s12, %s823_s9 }
  0x15   : > { %p826_p1 = pnand %p825_p0, %p824_p13  ;;  %p832_p6 = scmp.lt.u32.totalorder %s823_s9, %s989_s4 }
  0x16   : > { %p831_p5 = por %p830_p4, %p829_p3 }
  0x17   : > { %p827_p2 = pneg %p826_p1 }
  0x18   : > { %p833_p7 = por %p832_p6, %p831_p5 }
  0x1a   : > { %p834_p10 = pnand %p833_p7, %p827_p2 }
  0x1c   : > { %837 = shalt.err (!%p834_p10)
}
  0x1d   : > { %s838_s21 = scalar_lea.vmem %s997_s6, 2048  ;;  %s905_s22 = smov [#allocation3]  }
  0x1e   : > { %p839_p13 = scmp.ne.s32.totalorder %s997_s6, %s838_s21  ;;  %s843_s26 = sshll.u32 %s905_s22, 4  ;;  %s844_s26 = int_to_ptr.vmem [resolvable:$false] %s843_s26 }
  0x1f   : > { %s845_s27 = scalar_lea.vmem %s844_s26, 4096  ;;  %p846_p9 = scmp.lt.s32.totalorder %s997_s6, %s844_s26 }
  0x20   : > { %p841_p1 = pnand %p839_p13, %p825_p0  ;;  %p847_p3 = scmp.lt.s32.totalorder %s845_s27, %s838_s21 }
  0x22   : > { %p842_p12 = pneg %p841_p1  ;;  %p848_p4 = por %p847_p3, %p846_p9 }
  0x24   : > { %p849_p5 = pnand %p848_p4, %p842_p12 }
  0x26   : > { %852 = shalt.err (!%p849_p5)
}
  0x27   : > { %s906_s28 = smov 384   ;;  %s907_s29 = smov 128  }
  0x28   : > { %s908_s30 = smov 8   ;;  %p202_p0 = scmp.lt.s32.totalorder %s903_s17, 4 }
  0x29   : > { %770 = dma.hbm_to_vmem [thread:$0]  (!%p993_p11), %s989_s4, 2048, %s997_s6, %s1000_s8, %s906_s28, %s907_s29, %s908_s30  }
  0x2a   : > { %p1138_p2 = scmp.ge.s32.totalorder %s903_s17, 1 }
  0x2c   : > { %p203_p6 = pnand %p1138_p2, %p202_p0 }
  0x2d   : > { %s1032_s5 = sand.u32 (!%p203_p6), 1, %s887_s13  }
  0x2e   : > { %206 = sbr.rel (%p203_p6) target bundleno = 318 (0x13e), region = 32  ;;  %s642_s9 = sshll.u32 (!%p203_p6), %s1032_s5, 7 }
  0x2f   : > { %s209_s10 = scalar_lea.sflag (!%p203_p6), [#allocation4], %s1032_s5  ;;  %s1036_s11 = scalar_lea.vmem (!%p203_p6), [#allocation3], %s642_s9 }
  0x35   : > { %878 = dma.done.wait (%p972_p8), %s209_s10, 2048  }
  0x36   : > { %880 = vsyncadd (%p972_p8), %s209_s10, 4294965248  ;;  %v287_v0 = vld [vmem:[%s1036_s11] sm:$0xff]  ;;  %v288_v1 = vld [vmem:[%s1036_s11 + $0x8] sm:$0xff]  ;;  %p255_p8 = scmp.lt.s32.totalorder %s895_s15, 2  ;;  %s643_s6 = sshll.u32 %s1032_s5, 6 }
  0x37   : > { %v289_v2 = vld [vmem:[%s1036_s11 + $0x10] sm:$0xff]  ;;  %v717_v3 = vpack.c.bf16 %v288_v1, %v287_v0  ;;  %v290_v4 = vld [vmem:[%s1036_s11 + $0x18] sm:$0xff]  ;;  %v291_v6 = vld [vmem:[%s1036_s11 + $0x20] sm:$0xff]  ;;  %s1088_s7 = scalar_lea.vmem [#allocation5], %s643_s6  ;;  %p1139_p9 = scmp.ne.s32.totalorder %s1136_s25, 0 }
  0x38   : > { %v721_v5 = vpack.c.bf16 %v290_v4, %v289_v2  ;;  %v292_v7 = vld [vmem:[%s1036_s11 + $0x28] sm:$0xff]  ;;  %v279_v9 = vld [vmem:[%s1130_s0] sm:$0xff]  ;;  %v293_v11 = vld [vmem:[%s1036_s11 + $0x30] sm:$0xff]  ;;  %s256_s10 = scalar_select %p255_p8, %s895_s15, 2 }
  0x39   : > { %718 = vmatprep.subr.bf16.mxu0 %v717_v3  ;;  %749 = vmatprep.subr.bf16.mxu1 %v717_v3  ;;  %v725_v8 = vpack.c.bf16 %v292_v7, %v291_v6  ;;  %v283_v10 = vld [vmem:[%s1130_s0 + $0x20] sm:$0xff]  ;;  %v294_v12 = vld [vmem:[%s1036_s11 + $0x38] sm:$0xff]  ;;  %v296_v15 = vld [vmem:[%s1036_s11 + $0x48] sm:$0xff]  ;;  %s646_s5 = sshll.u32 (%p1139_p9), %s895_s15, 3 }
  0x3a   : > { %720 = vmatpush3.bf16.msra.mxu0 %v717_v3  ;;  %757 = vmatpush3.bf16.msra.mxu1 %v717_v3  ;;  %v729_v13 = vpack.c.bf16 %v294_v12, %v293_v11  ;;  %v295_v14 = vld [vmem:[%s1036_s11 + $0x40] sm:$0xff]  ;;  %v297_v17 = vld [vmem:[%s1036_s11 + $0x50] sm:$0xff]  ;;  %v298_v18 = vld [vmem:[%s1036_s11 + $0x58] sm:$0xff]  ;;  %s257_s4 = scalar_lea.vmem %s1132_s2, %s256_s10  ;;  %s469_s18 = scalar_lea.vmem (%p1139_p9), %s1133_s3, %s646_s5 }
  0x3b   : > { %722 = vmatprep.subr.bf16.mxu0 %v721_v5  ;;  %750 = vmatprep.subr.bf16.mxu1 %v721_v5  ;;  %v733_v16 = vpack.c.bf16 %v296_v15, %v295_v14  ;;  %v737_v19 = vpack.c.bf16 %v298_v18, %v297_v17  ;;  %v299_v20 = vld [vmem:[%s1036_s11 + $0x60] sm:$0xff]  ;;  %v300_v21 = vld [vmem:[%s1036_s11 + $0x68] sm:$0xff]  ;;  %v301_v23 = vld [vmem:[%s1036_s11 + $0x70] sm:$0xff] }
  0x3c   : > { %705 = vmatprep.mubr.f32.mxu0 %v279_v9  ;;  %711 = vmatprep.mubr.f32.mxu1 %v283_v10  ;;  %v741_v22 = vpack.c.bf16 %v300_v21, %v299_v20  ;;  %v302_v24 = vld [vmem:[%s1036_s11 + $0x78] sm:$0xff]  ;;  %v280_v26 = vld [vmem:[%s1130_s0 + $0x8] sm:$0xff]  ;;  %v281_v28 = vld [vmem:[%s1130_s0 + $0x10] sm:$0xff] }
  0x3d   : > { %v745_v25 = vpack.c.bf16 %v302_v24, %v301_v23  ;;  %v284_v27 = vld [vmem:[%s1130_s0 + $0x28] sm:$0xff]  ;;  %v285_v29 = vld [vmem:[%s1130_s0 + $0x30] sm:$0xff]  ;;  %v282_v30 = vld [vmem:[%s1130_s0 + $0x18] sm:$0xff] }
  0x3e   : > { %724 = vmatpush3.bf16.msra.mxu0 %v721_v5  ;;  %758 = vmatpush3.bf16.msra.mxu1 %v721_v5  ;;  %v286_v31 = vld [vmem:[%s1130_s0 + $0x38] sm:$0xff]  ;;  %v644_v32 = vld [vmem:[%s257_s4] ss:$0 sm:$0xff] }
  0x3f   : > { %726 = vmatprep.subr.bf16.mxu0 %v725_v8  ;;  %751 = vmatprep.subr.bf16.mxu1 %v725_v8 }
  0x42   : > { %728 = vmatpush3.bf16.msra.mxu0 %v725_v8  ;;  %759 = vmatpush3.bf16.msra.mxu1 %v725_v8 }
  0x43   : > { %730 = vmatprep.subr.bf16.mxu0 %v729_v13  ;;  %752 = vmatprep.subr.bf16.mxu1 %v729_v13 }
  0x46   : > { %732 = vmatpush3.bf16.msra.mxu0 %v729_v13  ;;  %760 = vmatpush3.bf16.msra.mxu1 %v729_v13 }
  0x47   : > { %734 = vmatprep.subr.bf16.mxu0 %v733_v16  ;;  %753 = vmatprep.subr.bf16.mxu1 %v733_v16 }
  0x4a   : > { %736 = vmatpush3.bf16.msra.mxu0 %v733_v16  ;;  %761 = vmatpush3.bf16.msra.mxu1 %v733_v16 }
  0x4b   : > { %738 = vmatprep.subr.bf16.mxu0 %v737_v19  ;;  %754 = vmatprep.subr.bf16.mxu1 %v737_v19 }
  0x4e   : > { %740 = vmatpush3.bf16.msra.mxu0 %v737_v19  ;;  %762 = vmatpush3.bf16.msra.mxu1 %v737_v19 }
  0x4f   : > { %742 = vmatprep.subr.bf16.mxu0 %v741_v22  ;;  %755 = vmatprep.subr.bf16.mxu1 %v741_v22 }
  0x52   : > { %744 = vmatpush3.bf16.msra.mxu0 %v741_v22  ;;  %763 = vmatpush3.bf16.msra.mxu1 %v741_v22 }
  0x53   : > { %746 = vmatprep.subr.bf16.mxu0 %v745_v25  ;;  %756 = vmatprep.subr.bf16.mxu1 %v745_v25 }
  0x56   : > { %748 = vmatpush3.bf16.msra.mxu0 %v745_v25  ;;  %764 = vmatpush3.bf16.msra.mxu1 %v745_v25 }
  0x59   : > { %706 = vmatmul.mubr.f32.vlgmr.msra.gmra.mrb[0].mxu0 %v280_v26  ;;  %712 = vmatmul.mubr.f32.vlgmr.msra.gmra.mrb[0].mxu1 %v284_v27 }
  0x5a   : > { %708 = vmatprep.mubr.f32.mxu0 %v281_v28  ;;  %714 = vmatprep.mubr.f32.mxu1 %v285_v29 }
  0x5d   : > { %709 = vmatmul.mubr.f32.gmra.mrb[2].mxu0 %v282_v30  ;;  %715 = vmatmul.mubr.f32.gmra.mrb[2].mxu1 %v286_v31 }
 0x12c   : > { %v707_v33 = vpop.f32.mrb[0].mxu0  ;;  %v713_v34 = vpop.f32.mrb[0].mxu1 }
 0x12d   : > { %v443_v35 = vadd.f32 %v707_v33, %v644_v32  ;;  %v447_v36 = vadd.f32 %v713_v34, %v644_v32  ;;  %v369_v37 = vpop.f32.mrb[1].mxu0  ;;  %v389_v38 = vpop.f32.mrb[1].mxu1 }
 0x12e   : > { %v442_v39 = vadd.f32 %v644_v32, %v369_v37  ;;  %v446_v40 = vadd.f32 %v644_v32, %v389_v38  ;;  %464 = sbr.rel (!%p1139_p9) target bundleno = 318 (0x13e), region = 48 }
 0x12f   : > { %451 = vst [vmem:[%s1088_s7 + $0x8] sm:$0xff] %v443_v35  ;;  %455 = vst [vmem:[%s1088_s7 + $0x28] sm:$0xff] %v447_v36 }
 0x130   : > { %450 = vst [vmem:[%s1088_s7] sm:$0xff] %v442_v39  ;;  %454 = vst [vmem:[%s1088_s7 + $0x20] sm:$0xff] %v446_v40  ;;  %v710_v41 = vpop.f32.mrb[2].mxu0  ;;  %v716_v42 = vpop.f32.mrb[2].mxu1 }
 0x131   : > { %v445_v43 = vadd.f32 %v710_v41, %v644_v32  ;;  %v449_v44 = vadd.f32 %v716_v42, %v644_v32  ;;  %v379_v45 = vpop.f32.mrb[3].mxu0  ;;  %v399_v46 = vpop.f32.mrb[3].mxu1 }
 0x132   : > { %v444_v47 = vadd.f32 %v644_v32, %v379_v45  ;;  %v448_v48 = vadd.f32 %v644_v32, %v399_v46 }
 0x133   : > { %453 = vst [vmem:[%s1088_s7 + $0x18] sm:$0xff] %v445_v43  ;;  %457 = vst [vmem:[%s1088_s7 + $0x38] sm:$0xff] %v449_v44 }
 0x134   : > { %452 = vst [vmem:[%s1088_s7 + $0x10] sm:$0xff] %v444_v47  ;;  %456 = vst [vmem:[%s1088_s7 + $0x30] sm:$0xff] %v448_v48 }
 0x136   : > { %v513_v50 = vld [vmem:[%s1088_s7 + $0x8] sm:$0xff] }
 0x137   : > { %v511_v49 = vld [vmem:[%s1088_s7] sm:$0xff]  ;;  %v521_v54 = vld [vmem:[%s1088_s7 + $0x28] sm:$0xff]  ;;  %514 = vst [vmem:[%s469_s18 + $0x18] sm:$0xff] %v513_v50 }
 0x138   : > { %v519_v53 = vld [vmem:[%s1088_s7 + $0x20] sm:$0xff]  ;;  %512 = vst [vmem:[%s469_s18] sm:$0xff] %v511_v49  ;;  %522 = vst [vmem:[%s469_s18 + $0x78] sm:$0xff] %v521_v54 }
 0x139   : > { %520 = vst [vmem:[%s469_s18 + $0x60] sm:$0xff] %v519_v53 }
 0x13a   : > { %v517_v52 = vld [vmem:[%s1088_s7 + $0x18] sm:$0xff] }
 0x13b   : > { %v515_v51 = vld [vmem:[%s1088_s7 + $0x10] sm:$0xff]  ;;  %518 = vst [vmem:[%s469_s18 + $0x48] sm:$0xff] %v517_v52  ;;  %v525_v56 = vld [vmem:[%s1088_s7 + $0x38] sm:$0xff] }
 0x13c   : > { %516 = vst [vmem:[%s469_s18 + $0x30] sm:$0xff] %v515_v51  ;;  %v523_v55 = vld [vmem:[%s1088_s7 + $0x30] sm:$0xff]  ;;  %526 = vst [vmem:[%s469_s18 + $0xa8] sm:$0xff] %v525_v56 }
 0x13d   : > { %524 = vst [vmem:[%s469_s18 + $0x90] sm:$0xff] %v523_v55 }
 0x13e PF: > { %s16_s17 = sadd.s32 1, %s903_s17   ;;  %s1140_s12 = smov %s887_s13 }
 0x13f   : > { %p13_p11 = scmp.ge.s32.totalorder %s16_s17, 5   ;;  %s1141_s13 = smov %s891_s14 }
 0x140   : > { %s1142_s14 = smov %s977_s24  ;;  %s1143_s15 = smov %s899_s16 }
 0x141   : > { %s1144_s16 = smov %s1146_s19  ;;  %15 = sbr.rel (!%p13_p11) target bundleno = 4 (0x4), region = 124 }
 0x148   :  { %542 = vsyncpa [#allocation4], 1 }
 0x149   :  { %544 = vsyncpa [#allocation4 + $0x1], 1 }

// kernel: decoder_gru_forward.9
= control target key start
LH: loop header
LB: loop body
LE: loop exit
PB: predicated region body
PF: predicated region fallthrough
CT: control target
= control target key end

     0   :  { %s453_s1 = inlined_call_operand.vmem [shape: f32[128,128], index: 1, kind: input, shape index: {}]   ;;  %s454_s0 = inlined_call_operand.vmem [shape: f32[64,128], index: 0, kind: input, shape index: {}]   ;;  %s455_s2 = inlined_call_operand.vmem [shape: f32[1,128], index: 2, kind: input, shape index: {}]   ;;  %s456_s3 = inlined_call_operand.vmem [shape: f32[64,128], index: 3, kind: output, shape index: {}]  }
   0x1   :  { %v42_v0 = vld [vmem:[%s453_s1] sm:$0xff]  ;;  %v43_v1 = vld [vmem:[%s453_s1 + $0x8] sm:$0xff]  ;;  %v44_v2 = vld [vmem:[%s453_s1 + $0x10] sm:$0xff] }
   0x2   :  { %v286_v3 = vpack.c.bf16 %v43_v1, %v42_v0  ;;  %v45_v4 = vld [vmem:[%s453_s1 + $0x18] sm:$0xff]  ;;  %v46_v6 = vld [vmem:[%s453_s1 + $0x20] sm:$0xff]  ;;  %v47_v7 = vld [vmem:[%s453_s1 + $0x28] sm:$0xff] }
   0x3   :  { %v290_v5 = vpack.c.bf16 %v45_v4, %v44_v2  ;;  %v294_v8 = vpack.c.bf16 %v47_v7, %v46_v6  ;;  %v34_v9 = vld [vmem:[%s454_s0] sm:$0xff]  ;;  %v48_v11 = vld [vmem:[%s453_s1 + $0x30] sm:$0xff]  ;;  %v49_v12 = vld [vmem:[%s453_s1 + $0x38] sm:$0xff] }
   0x4   :  { %287 = vmatprep.subr.bf16.mxu0 %v286_v3  ;;  %318 = vmatprep.subr.bf16.mxu1 %v286_v3  ;;  %v38_v10 = vld [vmem:[%s454_s0 + $0x20] sm:$0xff]  ;;  %v298_v13 = vpack.c.bf16 %v49_v12, %v48_v11  ;;  %v51_v15 = vld [vmem:[%s453_s1 + $0x48] sm:$0xff]  ;;  %v52_v17 = vld [vmem:[%s453_s1 + $0x50] sm:$0xff] }
   0x5   :  { %289 = vmatpush3.bf16.msra.mxu0 %v286_v3  ;;  %326 = vmatpush3.bf16.msra.mxu1 %v286_v3  ;;  %v50_v14 = vld [vmem:[%s453_s1 + $0x40] sm:$0xff]  ;;  %v53_v18 = vld [vmem:[%s453_s1 + $0x58] sm:$0xff]  ;;  %v55_v21 = vld [vmem:[%s453_s1 + $0x68] sm:$0xff] }
   0x6   :  { %291 = vmatprep.subr.bf16.mxu0 %v290_v5  ;;  %319 = vmatprep.subr.bf16.mxu1 %v290_v5  ;;  %v302_v16 = vpack.c.bf16 %v51_v15, %v50_v14  ;;  %v306_v19 = vpack.c.bf16 %v53_v18, %v52_v17  ;;  %v54_v20 = vld [vmem:[%s453_s1 + $0x60] sm:$0xff]  ;;  %v56_v23 = vld [vmem:[%s453_s1 + $0x70] sm:$0xff]  ;;  %v57_v24 = vld [vmem:[%s453_s1 + $0x78] sm:$0xff] }
   0x7   :  { %274 = vmatprep.mubr.f32.mxu0 %v34_v9  ;;  %280 = vmatprep.mubr.f32.mxu1 %v38_v10  ;;  %v310_v22 = vpack.c.bf16 %v55_v21, %v54_v20  ;;  %v314_v25 = vpack.c.bf16 %v57_v24, %v56_v23  ;;  %v35_v26 = vld [vmem:[%s454_s0 + $0x8] sm:$0xff]  ;;  %v36_v28 = vld [vmem:[%s454_s0 + $0x10] sm:$0xff]  ;;  %v37_v30 = vld [vmem:[%s454_s0 + $0x18] sm:$0xff] }
   0x8   :  { %v39_v27 = vld [vmem:[%s454_s0 + $0x28] sm:$0xff]  ;;  %v40_v29 = vld [vmem:[%s454_s0 + $0x30] sm:$0xff]  ;;  %v41_v31 = vld [vmem:[%s454_s0 + $0x38] sm:$0xff] }
   0x9   :  { %293 = vmatpush3.bf16.msra.mxu0 %v290_v5  ;;  %327 = vmatpush3.bf16.msra.mxu1 %v290_v5  ;;  %v217_v32 = vld [vmem:[%s455_s2] ss:$0 sm:$0xff] }
   0xa   :  { %295 = vmatprep.subr.bf16.mxu0 %v294_v8  ;;  %320 = vmatprep.subr.bf16.mxu1 %v294_v8 }
   0xd   :  { %297 = vmatpush3.bf16.msra.mxu0 %v294_v8  ;;  %328 = vmatpush3.bf16.msra.mxu1 %v294_v8 }
   0xe   :  { %299 = vmatprep.subr.bf16.mxu0 %v298_v13  ;;  %321 = vmatprep.subr.bf16.mxu1 %v298_v13 }
  0x11   :  { %301 = vmatpush3.bf16.msra.mxu0 %v298_v13  ;;  %329 = vmatpush3.bf16.msra.mxu1 %v298_v13 }
  0x12   :  { %303 = vmatprep.subr.bf16.mxu0 %v302_v16  ;;  %322 = vmatprep.subr.bf16.mxu1 %v302_v16 }
  0x15   :  { %305 = vmatpush3.bf16.msra.mxu0 %v302_v16  ;;  %330 = vmatpush3.bf16.msra.mxu1 %v302_v16 }
  0x16   :  { %307 = vmatprep.subr.bf16.mxu0 %v306_v19  ;;  %323 = vmatprep.subr.bf16.mxu1 %v306_v19 }
  0x19   :  { %309 = vmatpush3.bf16.msra.mxu0 %v306_v19  ;;  %331 = vmatpush3.bf16.msra.mxu1 %v306_v19 }
  0x1a   :  { %311 = vmatprep.subr.bf16.mxu0 %v310_v22  ;;  %324 = vmatprep.subr.bf16.mxu1 %v310_v22 }
  0x1d   :  { %313 = vmatpush3.bf16.msra.mxu0 %v310_v22  ;;  %332 = vmatpush3.bf16.msra.mxu1 %v310_v22 }
  0x1e   :  { %315 = vmatprep.subr.bf16.mxu0 %v314_v25  ;;  %325 = vmatprep.subr.bf16.mxu1 %v314_v25 }
  0x21   :  { %317 = vmatpush3.bf16.msra.mxu0 %v314_v25  ;;  %333 = vmatpush3.bf16.msra.mxu1 %v314_v25 }
  0x24   :  { %275 = vmatmul.mubr.f32.vlgmr.msra.gmra.mrb[0].mxu0 %v35_v26  ;;  %281 = vmatmul.mubr.f32.vlgmr.msra.gmra.mrb[0].mxu1 %v39_v27 }
  0x25   :  { %277 = vmatprep.mubr.f32.mxu0 %v36_v28  ;;  %283 = vmatprep.mubr.f32.mxu1 %v40_v29 }
  0x28   :  { %278 = vmatmul.mubr.f32.gmra.mrb[2].mxu0 %v37_v30  ;;  %284 = vmatmul.mubr.f32.gmra.mrb[2].mxu1 %v41_v31 }
  0xf7   :  { %v276_v33 = vpop.f32.mrb[0].mxu0  ;;  %v282_v34 = vpop.f32.mrb[0].mxu1 }
  0xf8   :  { %v198_v35 = vadd.f32 %v276_v33, %v217_v32  ;;  %v202_v36 = vadd.f32 %v282_v34, %v217_v32  ;;  %v124_v37 = vpop.f32.mrb[1].mxu0  ;;  %v144_v38 = vpop.f32.mrb[1].mxu1 }
  0xf9   :  { %v197_v39 = vadd.f32 %v217_v32, %v124_v37  ;;  %v201_v40 = vadd.f32 %v217_v32, %v144_v38 }
  0xfa   :  { %206 = vst [vmem:[%s456_s3 + $0x8] sm:$0xff] %v198_v35  ;;  %210 = vst [vmem:[%s456_s3 + $0x28] sm:$0xff] %v202_v36 }
  0xfb   :  { %205 = vst [vmem:[%s456_s3] sm:$0xff] %v197_v39  ;;  %209 = vst [vmem:[%s456_s3 + $0x20] sm:$0xff] %v201_v40  ;;  %v279_v41 = vpop.f32.mrb[2].mxu0  ;;  %v285_v42 = vpop.f32.mrb[2].mxu1 }
  0xfc   :  { %v200_v43 = vadd.f32 %v279_v41, %v217_v32  ;;  %v204_v44 = vadd.f32 %v285_v42, %v217_v32  ;;  %v134_v45 = vpop.f32.mrb[3].mxu0  ;;  %v154_v46 = vpop.f32.mrb[3].mxu1 }
  0xfd   :  { %v199_v47 = vadd.f32 %v217_v32, %v134_v45  ;;  %v203_v48 = vadd.f32 %v217_v32, %v154_v46 }
  0xfe   :  { %208 = vst [vmem:[%s456_s3 + $0x18] sm:$0xff] %v200_v43  ;;  %212 = vst [vmem:[%s456_s3 + $0x38] sm:$0xff] %v204_v44 }
  0xff   :  { %207 = vst [vmem:[%s456_s3 + $0x10] sm:$0xff] %v199_v47  ;;  %211 = vst [vmem:[%s456_s3 + $0x30] sm:$0xff] %v203_v48 }

// kernel: decoder_gru_forward.7
= control target key start
LH: loop header
LB: loop body
LE: loop exit
PB: predicated region body
PF: predicated region fallthrough
CT: control target
= control target key end

     0   :  { %s935_s12 = smov 0   ;;  %s937_s13 = smov 0   ;;  %s1094_s0 = inlined_call_operand.vmem [shape: f32[64,128], index: 0, kind: input, shape index: {}]   ;;  %s1095_s1 = inlined_call_operand.vmem [shape: f32[128,384], index: 1, kind: input, shape index: {}]   ;;  %s1096_s2 = inlined_call_operand.vmem [shape: f32[1,384], index: 2, kind: input, shape index: {}]   ;;  %s1097_s3 = inlined_call_operand.vmem [shape: f32[64,384], index: 3, kind: output, shape index: {}]  }
   0x1   :  { %s939_s14 = smov 0   ;;  %s941_s15 = smov 0  }
   0x2   :  { %s943_s16 = smov 0  }
   0x3 LB: > { %s28_s17 = sadd.s32 1, %s909_s15  ;;  %s704_s18 = sadd.s32 4294967295, %s913_s16   ;;  %s913_s16 = sphi %s943_s16, %s13_s16   ;;  %s909_s15 = sphi %s941_s15, %s1102_s15   ;;  %s905_s14 = sphi %s939_s14, %s1101_s14   ;;  %s901_s13 = sphi %s937_s13, %s1100_s13   ;;  %s897_s12 = sphi %s935_s12, %s1099_s12  }
   0x4   : > { %p30_p0 = scmp.ge.s32.totalorder %s28_s17, 3  ;;  %p76_p1 = scmp.ne.s32.totalorder %s901_s13, %s897_s12 }
   0x5   : > { %p77_p2 = scmp.eq.s32.totalorder %s913_s16, 0  ;;  %p134_p4 = scmp.eq.s32.totalorder %s704_s18, 2 }
   0x6   : > { %s1104_s17 = smov (%p30_p0, %s28_s17), 0  ;;  %s69_s20 = sadd.s32 1, %s901_s13 }
   0x7   : > { %p78_p3 = por %p77_p2, %p76_p1  ;;  %s65_s19 = ssub.s32 %s909_s15, %s1104_s17 }
   0x8   : > { %p67_p5 = scmp.eq.s32.totalorder %s65_s19, 0  ;;  %p970_p6 = por %p134_p4, %p76_p1 }
   0x9   : > { %p708_p7 = scmp.ge.s32.totalorder %s913_s16, 3 }
   0xa   : > { %s975_s22 = scalar_select %p67_p5, %s901_s13, %s69_s20  }
   0xb   : > { %168 = sbr.rel (%p708_p7) target bundleno = 30 (0x1e), region = 20 }
  0x12   : > { %171 = sbr.rel (!%p78_p3) target bundleno = 30 (0x1e), region = 24  ;;  %s173_s23 = sand.u32 (%p78_p3), 1, %s901_s13  }
  0x13   : > { %s710_s24 = sshll.u32 (%p78_p3), %s909_s15, 3  ;;  %s709_s25 = sshll.u32 (%p78_p3), %s173_s23, 7 }
  0x14   : > { %s983_s28 = scalar_lea.vmem (%p78_p3), %s1095_s1, %s710_s24  ;;  %s175_s29 = scalar_lea.vmem (%p78_p3), [#allocation3], %s709_s25 }
  0x15   : > { %v238_v0 = vld [vmem:[%s983_s28] sm:$0xff] (%p78_p3)  ;;  %v240_v1 = vld [vmem:[%s983_s28 + $0x18] sm:$0xff] (%p78_p3)  ;;  %v242_v2 = vld [vmem:[%s983_s28 + $0x30] sm:$0xff] (%p78_p3) }
  0x16   : > { %239 = vst [vmem:[%s175_s29] sm:$0xff] (%p78_p3), %v238_v0  ;;  %241 = vst [vmem:[%s175_s29 + $0x8] sm:$0xff] (%p78_p3), %v240_v1  ;;  %v244_v3 = vld [vmem:[%s983_s28 + $0x48] sm:$0xff] (%p78_p3)  ;;  %v246_v4 = vld [vmem:[%s983_s28 + $0x60] sm:$0xff] (%p78_p3) }
  0x17   : > { %243 = vst [vmem:[%s175_s29 + $0x10] sm:$0xff] (%p78_p3), %v242_v2  ;;  %v248_v5 = vld [vmem:[%s983_s28 + $0x78] sm:$0xff] (%p78_p3)  ;;  %245 = vst [vmem:[%s175_s29 + $0x18] sm:$0xff] (%p78_p3), %v244_v3  ;;  %v250_v6 = vld [vmem:[%s983_s28 + $0x90] sm:$0xff] (%p78_p3) }
  0x18   : > { %247 = vst [vmem:[%s175_s29 + $0x20] sm:$0xff] (%p78_p3), %v246_v4  ;;  %249 = vst [vmem:[%s175_s29 + $0x28] sm:$0xff] (%p78_p3), %v248_v5  ;;  %v252_v7 = vld [vmem:[%s983_s28 + $0xa8] sm:$0xff] (%p78_p3)  ;;  %v254_v8 = vld [vmem:[%s983_s28 + $0xc0] sm:$0xff] (%p78_p3) }
  0x19   : > { %251 = vst [vmem:[%s175_s29 + $0x30] sm:$0xff] %v250_v6  ;;  %253 = vst [vmem:[%s175_s29 + $0x38] sm:$0xff] %v252_v7  ;;  %v256_v9 = vld [vmem:[%s983_s28 + $0xd8] sm:$0xff]  ;;  %v258_v10 = vld [vmem:[%s983_s28 + $0xf0] sm:$0xff] }
  0x1a   : > { %255 = vst [vmem:[%s175_s29 + $0x40] sm:$0xff] %v254_v8  ;;  %v260_v11 = vld [vmem:[%s983_s28 + $0x108] sm:$0xff]  ;;  %257 = vst [vmem:[%s175_s29 + $0x48] sm:$0xff] %v256_v9  ;;  %v262_v12 = vld [vmem:[%s983_s28 + $0x120] sm:$0xff] }
  0x1b   : > { %259 = vst [vmem:[%s175_s29 + $0x50] sm:$0xff] %v258_v10  ;;  %261 = vst [vmem:[%s175_s29 + $0x58] sm:$0xff] %v260_v11  ;;  %v264_v13 = vld [vmem:[%s983_s28 + $0x138] sm:$0xff]  ;;  %v266_v14 = vld [vmem:[%s983_s28 + $0x150] sm:$0xff] }
  0x1c   : > { %263 = vst [vmem:[%s175_s29 + $0x60] sm:$0xff] %v262_v12  ;;  %265 = vst [vmem:[%s175_s29 + $0x68] sm:$0xff] %v264_v13  ;;  %v268_v15 = vld [vmem:[%s983_s28 + $0x168] sm:$0xff] }
  0x1d   : > { %267 = vst [vmem:[%s175_s29 + $0x70] sm:$0xff] %v266_v14  ;;  %269 = vst [vmem:[%s175_s29 + $0x78] sm:$0xff] %v268_v15 }
  0x1e PF: > { %p711_p8 = scmp.ge.s32.totalorder %s913_s16, 1  ;;  %p280_p9 = scmp.lt.s32.totalorder %s913_s16, 4 }
  0x20   : > { %p281_p10 = pnand %p711_p8, %p280_p9 }
  0x21   : > { %s287_s30 = sand.u32 (!%p281_p10), 1, %s897_s12   ;;  %v354_v16 = vld [vmem:[%s1094_s0] sm:$0xff] (!%p281_p10)  ;;  %v355_v42 = vld [vmem:[%s1094_s0 + $0x8] sm:$0xff] (!%p281_p10)  ;;  %v356_v44 = vld [vmem:[%s1094_s0 + $0x10] sm:$0xff] (!%p281_p10)  ;;  %p330_p11 = scmp.lt.s32.totalorder (!%p281_p10), %s905_s14, 2 }
  0x22   : > { %284 = sbr.rel (%p281_p10) target bundleno = 300 (0x12c), region = 66  ;;  %v358_v17 = vld [vmem:[%s1094_s0 + $0x20] sm:$0xff] (!%p281_p10)  ;;  %s712_s8 = sshll.u32 (!%p281_p10), %s287_s30, 7  ;;  %775 = vmatprep.mubr.f32.mxu0 (!%p281_p10), %v354_v16  ;;  %v359_v43 = vld [vmem:[%s1094_s0 + $0x28] sm:$0xff] (!%p281_p10)  ;;  %v360_v45 = vld [vmem:[%s1094_s0 + $0x30] sm:$0xff] (!%p281_p10) }
  0x23   : > { %781 = vmatprep.mubr.f32.mxu1 (!%p281_p10), %v358_v17  ;;  %s1012_s9 = scalar_lea.vmem (!%p281_p10), [#allocation3], %s712_s8  ;;  %v357_v46 = vld [vmem:[%s1094_s0 + $0x18] sm:$0xff] (!%p281_p10)  ;;  %s713_s8 = sshll.u32 (!%p281_p10), %s287_s30, 6 }
  0x24   : > { %v362_v18 = vld [vmem:[%s1012_s9] sm:$0xff] (!%p281_p10)  ;;  %v363_v19 = vld [vmem:[%s1012_s9 + $0x8] sm:$0xff] (!%p281_p10)  ;;  %v364_v20 = vld [vmem:[%s1012_s9 + $0x10] sm:$0xff] (!%p281_p10) }
  0x25   : > { %v787_v21 = vpack.c.bf16 (!%p281_p10), %v363_v19, %v362_v18  ;;  %v365_v22 = vld [vmem:[%s1012_s9 + $0x18] sm:$0xff] (!%p281_p10)  ;;  %v366_v24 = vld [vmem:[%s1012_s9 + $0x20] sm:$0xff] (!%p281_p10)  ;;  %v367_v25 = vld [vmem:[%s1012_s9 + $0x28] sm:$0xff] (!%p281_p10) }
  0x26   : > { %v791_v23 = vpack.c.bf16 (!%p281_p10), %v365_v22, %v364_v20  ;;  %v795_v26 = vpack.c.bf16 (!%p281_p10), %v367_v25, %v366_v24  ;;  %v368_v27 = vld [vmem:[%s1012_s9 + $0x30] sm:$0xff] (!%p281_p10)  ;;  %v369_v28 = vld [vmem:[%s1012_s9 + $0x38] sm:$0xff] (!%p281_p10)  ;;  %v370_v30 = vld [vmem:[%s1012_s9 + $0x40] sm:$0xff] (!%p281_p10) }
  0x27   : > { %788 = vmatprep.subr.bf16.mxu0 (!%p281_p10), %v787_v21  ;;  %819 = vmatprep.subr.bf16.mxu1 (!%p281_p10), %v787_v21  ;;  %v799_v29 = vpack.c.bf16 (!%p281_p10), %v369_v28, %v368_v27  ;;  %v371_v31 = vld [vmem:[%s1012_s9 + $0x48] sm:$0xff] (!%p281_p10)  ;;  %v372_v33 = vld [vmem:[%s1012_s9 + $0x50] sm:$0xff] (!%p281_p10)  ;;  %v373_v34 = vld [vmem:[%s1012_s9 + $0x58] sm:$0xff] (!%p281_p10) }
  0x28   : > { %790 = vmatpush3.bf16.msra.mxu0 (!%p281_p10), %v787_v21  ;;  %827 = vmatpush3.bf16.msra.mxu1 (!%p281_p10), %v787_v21  ;;  %v803_v32 = vpack.c.bf16 (!%p281_p10), %v371_v31, %v370_v30  ;;  %v807_v35 = vpack.c.bf16 (!%p281_p10), %v373_v34, %v372_v33  ;;  %v374_v36 = vld [vmem:[%s1012_s9 + $0x60] sm:$0xff] (!%p281_p10)  ;;  %v375_v37 = vld [vmem:[%s1012_s9 + $0x68] sm:$0xff] (!%p281_p10)  ;;  %v376_v39 = vld [vmem:[%s1012_s9 + $0x70] sm:$0xff] (!%p281_p10) }
  0x29   : > { %792 = vmatprep.subr.bf16.mxu0 %v791_v23  ;;  %820 = vmatprep.subr.bf16.mxu1 %v791_v23  ;;  %v811_v38 = vpack.c.bf16 %v375_v37, %v374_v36  ;;  %v377_v40 = vld [vmem:[%s1012_s9 + $0x78] sm:$0xff]  ;;  %s331_s4 = scalar_select %p330_p11, %s905_s14, 2 }
  0x2a   : > { %v815_v41 = vpack.c.bf16 %v377_v40, %v376_v39  ;;  %v361_v47 = vld [vmem:[%s1094_s0 + $0x38] sm:$0xff]  ;;  %s1055_s9 = scalar_lea.vmem [#allocation4], %s713_s8  ;;  %s716_s12 = sshll.u32 (%p970_p6), %s905_s14, 3 }
  0x2b   : > { %s332_s7 = scalar_lea.vmem %s1096_s2, %s331_s4  ;;  %s544_s11 = scalar_lea.vmem (%p970_p6), %s1097_s3, %s716_s12 }
  0x2c   : > { %794 = vmatpush3.bf16.msra.mxu0 %v791_v23  ;;  %828 = vmatpush3.bf16.msra.mxu1 %v791_v23  ;;  %v714_v48 = vld [vmem:[%s332_s7] ss:$0 sm:$0xff] }
  0x2d   : > { %796 = vmatprep.subr.bf16.mxu0 %v795_v26  ;;  %821 = vmatprep.subr.bf16.mxu1 %v795_v26 }
  0x30   : > { %798 = vmatpush3.bf16.msra.mxu0 %v795_v26  ;;  %829 = vmatpush3.bf16.msra.mxu1 %v795_v26 }
  0x31   : > { %800 = vmatprep.subr.bf16.mxu0 %v799_v29  ;;  %822 = vmatprep.subr.bf16.mxu1 %v799_v29 }
  0x34   : > { %802 = vmatpush3.bf16.msra.mxu0 %v799_v29  ;;  %830 = vmatpush3.bf16.msra.mxu1 %v799_v29 }
  0x35   : > { %804 = vmatprep.subr.bf16.mxu0 %v803_v32  ;;  %823 = vmatprep.subr.bf16.mxu1 %v803_v32 }
  0x38   : > { %806 = vmatpush3.bf16.msra.mxu0 %v803_v32  ;;  %831 = vmatpush3.bf16.msra.mxu1 %v803_v32 }
  0x39   : > { %808 = vmatprep.subr.bf16.mxu0 %v807_v35  ;;  %824 = vmatprep.subr.bf16.mxu1 %v807_v35 }
  0x3c   : > { %810 = vmatpush3.bf16.msra.mxu0 %v807_v35  ;;  %832 = vmatpush3.bf16.msra.mxu1 %v807_v35 }
  0x3d   : > { %812 = vmatprep.subr.bf16.mxu0 %v811_v38  ;;  %825 = vmatprep.subr.bf16.mxu1 %v811_v38 }
  0x40   : > { %814 = vmatpush3.bf16.msra.mxu0 %v811_v38  ;;  %833 = vmatpush3.bf16.msra.mxu1 %v811_v38 }
  0x41   : > { %816 = vmatprep.subr.bf16.mxu0 %v815_v41  ;;  %826 = vmatprep.subr.bf16.mxu1 %v815_v41 }
  0x44   : > { %818 = vmatpush3.bf16.msra.mxu0 %v815_v41  ;;  %834 = vmatpush3.bf16.msra.mxu1 %v815_v41 }
  0x47   : > { %776 = vmatmul.mubr.f32.vlgmr.msra.gmra.mrb[0].mxu0 %v355_v42  ;;  %782 = vmatmul.mubr.f32.vlgmr.msra.gmra.mrb[0].mxu1 %v359_v43 }
  0x48   : > { %778 = vmatprep.mubr.f32.mxu0 %v356_v44  ;;  %784 = vmatprep.mubr.f32.mxu1 %v360_v45 }
  0x4b   : > { %779 = vmatmul.mubr.f32.gmra.mrb[2].mxu0 %v357_v46  ;;  %785 = vmatmul.mubr.f32.gmra.mrb[2].mxu1 %v361_v47 }
 0x11a   : > { %v777_v49 = vpop.f32.mrb[0].mxu0  ;;  %v783_v50 = vpop.f32.mrb[0].mxu1 }
 0x11b   : > { %v518_v51 = vadd.f32 %v777_v49, %v714_v48  ;;  %v522_v52 = vadd.f32 %v783_v50, %v714_v48  ;;  %v444_v53 = vpop.f32.mrb[1].mxu0  ;;  %v464_v54 = vpop.f32.mrb[1].mxu1 }
 0x11c   : > { %v517_v55 = vadd.f32 %v714_v48, %v444_v53  ;;  %v521_v56 = vadd.f32 %v714_v48, %v464_v54  ;;  %539 = sbr.rel (!%p970_p6) target bundleno = 300 (0x12c), region = 82 }
 0x11d   : > { %526 = vst [vmem:[%s1055_s9 + $0x8] sm:$0xff] %v518_v51  ;;  %530 = vst [vmem:[%s1055_s9 + $0x28] sm:$0xff] %v522_v52 }
 0x11e   : > { %525 = vst [vmem:[%s1055_s9] sm:$0xff] %v517_v55  ;;  %529 = vst [vmem:[%s1055_s9 + $0x20] sm:$0xff] %v521_v56  ;;  %v780_v57 = vpop.f32.mrb[2].mxu0  ;;  %v786_v58 = vpop.f32.mrb[2].mxu1 }
 0x11f   : > { %v520_v59 = vadd.f32 %v780_v57, %v714_v48  ;;  %v524_v60 = vadd.f32 %v786_v58, %v714_v48  ;;  %v454_v61 = vpop.f32.mrb[3].mxu0  ;;  %v474_v62 = vpop.f32.mrb[3].mxu1 }
 0x120   : > { %v519_v63 = vadd.f32 %v714_v48, %v454_v61  ;;  %v523_v0 = vadd.f32 %v714_v48, %v474_v62 }
 0x121   : > { %528 = vst [vmem:[%s1055_s9 + $0x18] sm:$0xff] %v520_v59  ;;  %532 = vst [vmem:[%s1055_s9 + $0x38] sm:$0xff] %v524_v60 }
 0x122   : > { %527 = vst [vmem:[%s1055_s9 + $0x10] sm:$0xff] %v519_v63  ;;  %531 = vst [vmem:[%s1055_s9 + $0x30] sm:$0xff] %v523_v0 }
 0x124   : > { %v588_v2 = vld [vmem:[%s1055_s9 + $0x8] sm:$0xff] }
 0x125   : > { %v586_v1 = vld [vmem:[%s1055_s9] sm:$0xff]  ;;  %v596_v6 = vld [vmem:[%s1055_s9 + $0x28] sm:$0xff]  ;;  %589 = vst [vmem:[%s544_s11 + $0x18] sm:$0xff] %v588_v2 }
 0x126   : > { %v594_v5 = vld [vmem:[%s1055_s9 + $0x20] sm:$0xff]  ;;  %587 = vst [vmem:[%s544_s11] sm:$0xff] %v586_v1  ;;  %597 = vst [vmem:[%s544_s11 + $0x78] sm:$0xff] %v596_v6 }
 0x127   : > { %595 = vst [vmem:[%s544_s11 + $0x60] sm:$0xff] %v594_v5 }
 0x128   : > { %v592_v4 = vld [vmem:[%s1055_s9 + $0x18] sm:$0xff] }
 0x129   : > { %v590_v3 = vld [vmem:[%s1055_s9 + $0x10] sm:$0xff]  ;;  %593 = vst [vmem:[%s544_s11 + $0x48] sm:$0xff] %v592_v4  ;;  %v600_v8 = vld [vmem:[%s1055_s9 + $0x38] sm:$0xff] }
 0x12a   : > { %591 = vst [vmem:[%s544_s11 + $0x30] sm:$0xff] %v590_v3  ;;  %v598_v7 = vld [vmem:[%s1055_s9 + $0x30] sm:$0xff]  ;;  %601 = vst [vmem:[%s544_s11 + $0xa8] sm:$0xff] %v600_v8 }
 0x12b   : > { %599 = vst [vmem:[%s544_s11 + $0x90] sm:$0xff] %v598_v7 }
 0x12c PF: > { %s13_s16 = sadd.s32 1, %s913_s16   ;;  %s1099_s12 = smov %s901_s13 }
 0x12d   : > { %p10_p12 = scmp.ge.s32.totalorder %s13_s16, 5   ;;  %s1100_s13 = smov %s975_s22 }
 0x12e   : > { %s1101_s14 = smov %s909_s15  ;;  %s1102_s15 = smov %s1104_s17 }
 0x12f   :  { %12 = sbr.rel (!%p10_p12) target bundleno = 3 (0x3), region = 157 }

// kernel: decoder_gru_forward.6
= control target key start
LH: loop header
LB: loop body
LE: loop exit
PB: predicated region body
PF: predicated region fallthrough
CT: control target
= control target key end

     0   :  { %v2768_v3 = vmov 0.0|0.0   ;;  %v2769_v4 = vmov 0.0   ;;  %vm2770_vm0 = vmmov 0   ;;  %s3621_s1 = inlined_call_operand.vmem [shape: f32[128,384], index: 1, kind: input, shape index: {}]   ;;  %s3622_s3 = inlined_call_operand.vmem [shape: f32[8,128], index: 3, kind: input, shape index: {}]   ;;  %s3623_s0 = inlined_call_operand.vmem [shape: f32[8,8,384], index: 0, kind: input, shape index: {}]   ;;  %s3624_s2 = inlined_call_operand.vmem [shape: f32[1,128], index: 2, kind: input, shape index: {}]   ;;  %s3625_s4 = inlined_call_operand.vmem [shape: f32[8,8,128], index: 4, kind: output, shape index: {0}]   ;;  %s3626_s5 = inlined_call_operand.vmem [shape: f32[8,128], index: 5, kind: output, shape index: {1}]  }
   0x1   :  { %v31_v0 = vld [vmem:[%s3621_s1 + $0x8] sm:$0xff]  ;;  %v34_v1 = vld [vmem:[%s3621_s1 + $0x20] sm:$0xff]  ;;  %2269 = vmatprep.subr.bf16.mxu1 %v2768_v3  ;;  %142 = vmatprep.mubr.f32.mxu0 %v2769_v4  ;;  %v33_v6 = vld [vmem:[%s3621_s1 + $0x18] sm:$0xff] }
   0x2   :  { %v30_v2 = vld [vmem:[%s3621_s1] sm:$0xff]  ;;  %v2812_v5 = vpack.c.bf16 %v34_v1, %v31_v0  ;;  %v37_v7 = vld [vmem:[%s3621_s1 + $0x38] sm:$0xff]  ;;  %v40_v8 = vld [vmem:[%s3621_s1 + $0x50] sm:$0xff]  ;;  %1989 = vmatprep.mubr.msk.f32.mxu1 %vm2770_vm0, %v2769_v4 }
   0x3   :  { %v2825_v9 = vpack.c.bf16 %v33_v6, %v30_v2  ;;  %v2827_v10 = vpack.c.bf16 %v40_v8, %v37_v7  ;;  %v36_v11 = vld [vmem:[%s3621_s1 + $0x30] sm:$0xff]  ;;  %v39_v12 = vld [vmem:[%s3621_s1 + $0x48] sm:$0xff]  ;;  %v46_v14 = vld [vmem:[%s3621_s1 + $0x80] sm:$0xff] }
   0x4   :  { %v43_v13 = vld [vmem:[%s3621_s1 + $0x68] sm:$0xff]  ;;  %2238 = vmatprep.subr.bf16.mxu0 %v2812_v5  ;;  %v2843_v15 = vpack.c.bf16 %v39_v12, %v36_v11  ;;  %v42_v17 = vld [vmem:[%s3621_s1 + $0x60] sm:$0xff]  ;;  %v45_v18 = vld [vmem:[%s3621_s1 + $0x78] sm:$0xff] }
   0x5   :  { %2240 = vmatpush1.bf16.msra.mxu0 %v2825_v9  ;;  %v2846_v16 = vpack.c.bf16 %v46_v14, %v43_v13  ;;  %v49_v19 = vld [vmem:[%s3621_s1 + $0x98] sm:$0xff]  ;;  %v52_v20 = vld [vmem:[%s3621_s1 + $0xb0] sm:$0xff]  ;;  %v2861_v21 = vpack.c.bf16 %v45_v18, %v42_v17  ;;  %v51_v24 = vld [vmem:[%s3621_s1 + $0xa8] sm:$0xff] }
   0x6   :  { %2242 = vmatprep.subr.bf16.mxu0 %v2827_v10  ;;  %v48_v22 = vld [vmem:[%s3621_s1 + $0x90] sm:$0xff]  ;;  %v2867_v23 = vpack.c.bf16 %v52_v20, %v49_v19  ;;  %v35_v26 = vld [vmem:[%s3621_s1 + $0x28] sm:$0xff]  ;;  %v58_v28 = vld [vmem:[%s3621_s1 + $0xe0] sm:$0xff] }
   0x7   :  { %v32_v25 = vld [vmem:[%s3621_s1 + $0x10] sm:$0xff]  ;;  %v55_v27 = vld [vmem:[%s3621_s1 + $0xc8] sm:$0xff]  ;;  %v38_v30 = vld [vmem:[%s3621_s1 + $0x40] sm:$0xff]  ;;  %v2893_v32 = vpack.c.bf16 %v51_v24, %v48_v22 }
   0x8   :  { %v2884_v29 = vpack.c.bf16 %v35_v26, %v32_v25  ;;  %v41_v31 = vld [vmem:[%s3621_s1 + $0x58] sm:$0xff]  ;;  %v54_v33 = vld [vmem:[%s3621_s1 + $0xc0] sm:$0xff]  ;;  %v2902_v35 = vpack.c.bf16 %v58_v28, %v55_v27  ;;  %v44_v37 = vld [vmem:[%s3621_s1 + $0x70] sm:$0xff] }
   0x9   :  { %2244 = vmatpush1.bf16.msra.mxu0 %v2843_v15  ;;  %v2899_v34 = vpack.c.bf16 %v41_v31, %v38_v30  ;;  %v57_v36 = vld [vmem:[%s3621_s1 + $0xd8] sm:$0xff]  ;;  %v47_v38 = vld [vmem:[%s3621_s1 + $0x88] sm:$0xff]  ;;  %v64_v40 = vld [vmem:[%s3621_s1 + $0x110] sm:$0xff] }
   0xa   :  { %2246 = vmatprep.subr.bf16.mxu0 %v2846_v16  ;;  %2271 = vmatpush3.bf16.msra.mxu1 %v2884_v29  ;;  %v61_v39 = vld [vmem:[%s3621_s1 + $0xf8] sm:$0xff]  ;;  %v2921_v41 = vpack.c.bf16 %v57_v36, %v54_v33  ;;  %v60_v42 = vld [vmem:[%s3621_s1 + $0xf0] sm:$0xff]  ;;  %v2927_v43 = vpack.c.bf16 %v47_v38, %v44_v37  ;;  %v63_v45 = vld [vmem:[%s3621_s1 + $0x108] sm:$0xff] }
   0xb   :  { %2272 = vmatprep.subr.bf16.mxu1 %v2768_v3  ;;  %v2930_v44 = vpack.c.bf16 %v64_v40, %v61_v39  ;;  %v50_v46 = vld [vmem:[%s3621_s1 + $0xa0] sm:$0xff]  ;;  %v53_v47 = vld [vmem:[%s3621_s1 + $0xb8] sm:$0xff]  ;;  %v67_v48 = vld [vmem:[%s3621_s1 + $0x128] sm:$0xff]  ;;  %v2949_v50 = vpack.c.bf16 %v63_v45, %v60_v42 }
   0xc   :  { %v70_v49 = vld [vmem:[%s3621_s1 + $0x140] sm:$0xff]  ;;  %v2955_v52 = vpack.c.bf16 %v53_v47, %v50_v46  ;;  %v69_v54 = vld [vmem:[%s3621_s1 + $0x138] sm:$0xff]  ;;  %v56_v55 = vld [vmem:[%s3621_s1 + $0xd0] sm:$0xff] }
   0xd   :  { %2248 = vmatpush1.bf16.msra.mxu0 %v2861_v21  ;;  %v66_v51 = vld [vmem:[%s3621_s1 + $0x120] sm:$0xff]  ;;  %v2958_v53 = vpack.c.bf16 %v70_v49, %v67_v48  ;;  %v59_v56 = vld [vmem:[%s3621_s1 + $0xe8] sm:$0xff]  ;;  %v73_v57 = vld [vmem:[%s3621_s1 + $0x158] sm:$0xff] }
   0xe   :  { %2250 = vmatprep.subr.bf16.mxu0 %v2867_v23  ;;  %2274 = vmatpush3.bf16.msra.mxu1 %v2899_v34  ;;  %v76_v58 = vld [vmem:[%s3621_s1 + $0x170] sm:$0xff]  ;;  %v2977_v59 = vpack.c.bf16 %v69_v54, %v66_v51  ;;  %v2983_v61 = vpack.c.bf16 %v59_v56, %v56_v55  ;;  %v75_v63 = vld [vmem:[%s3621_s1 + $0x168] sm:$0xff]  ;;  %v62_v0 = vld [vmem:[%s3621_s1 + $0x100] sm:$0xff] }
   0xf   :  { %2275 = vmatprep.subr.bf16.mxu1 %v2768_v3  ;;  %v72_v60 = vld [vmem:[%s3621_s1 + $0x150] sm:$0xff]  ;;  %v2986_v62 = vpack.c.bf16 %v76_v58, %v73_v57  ;;  %v65_v1 = vld [vmem:[%s3621_s1 + $0x118] sm:$0xff]  ;;  %v71_v8 = vld [vmem:[%s3621_s1 + $0x148] sm:$0xff] }
  0x10   :  { %v2999_v2 = vpack.c.bf16 %v75_v63, %v72_v60  ;;  %v3002_v6 = vpack.c.bf16 %v65_v1, %v62_v0  ;;  %v68_v7 = vld [vmem:[%s3621_s1 + $0x130] sm:$0xff]  ;;  %v3016_v11 = vld [vmem:[%s3622_s3] sm:$0xff]  ;;  %v77_v14 = vld [vmem:[%s3621_s1 + $0x178] sm:$0xff] }
  0x11   :  { %2252 = vmatpush1.bf16.msra.mxu0 %v2893_v32  ;;  %v3019_v12 = vpack.c.bf16 %v71_v8, %v68_v7  ;;  %v74_v13 = vld [vmem:[%s3621_s1 + $0x160] sm:$0xff]  ;;  %v28_v22 = vld [vmem:[%s3623_s0 + $0x8] sm:$0xff]  ;;  %v29_v42 = vld [vmem:[%s3623_s0 + $0x10] sm:$0xff] }
  0x12   :  { %2254 = vmatprep.subr.bf16.mxu0 %v2902_v35  ;;  %2277 = vmatpush3.bf16.msra.mxu1 %v2927_v43  ;;  %v3031_v17 = vpack.c.bf16 %v77_v14, %v74_v13  ;;  %v27_v18 = vld [vmem:[%s3623_s0] sm:$0xff]  ;;  %v1779_v56 = vld [vmem:[%s3623_s0 + $0x18] sm:$0xff] }
  0x13   :  { %2278 = vmatprep.subr.bf16.mxu1 %v2768_v3  ;;  %v3081_v37 = vld [vmem:[%s3624_s2] ss:$0 sm:$0xff] }
  0x14   :  { %v1780_v63 = vld [vmem:[%s3623_s0 + $0x20] sm:$0xff] }
  0x15   :  { %2256 = vmatpush1.bf16.msra.mxu0 %v2921_v41 }
  0x16   :  { %2258 = vmatprep.subr.bf16.mxu0 %v2930_v44  ;;  %2280 = vmatpush3.bf16.msra.mxu1 %v2955_v52 }
  0x17   :  { %2281 = vmatprep.subr.bf16.mxu1 %v2768_v3 }
  0x19   :  { %2260 = vmatpush1.bf16.msra.mxu0 %v2949_v50 }
  0x1a   :  { %2262 = vmatprep.subr.bf16.mxu0 %v2958_v53  ;;  %2283 = vmatpush3.bf16.msra.mxu1 %v2983_v61 }
  0x1b   :  { %2284 = vmatprep.subr.bf16.mxu1 %v2768_v3 }
  0x1d   :  { %2264 = vmatpush1.bf16.msra.mxu0 %v2977_v59 }
  0x1e   :  { %2266 = vmatprep.subr.bf16.mxu0 %v2986_v62  ;;  %2286 = vmatpush3.bf16.msra.mxu1 %v3002_v6 }
  0x1f   :  { %2287 = vmatprep.subr.bf16.mxu1 %v2768_v3 }
  0x21   :  { %2268 = vmatpush1.bf16.msra.mxu0 %v2999_v2 }
  0x22   :  { %2294 = vmatprep.subr.bf16.mxu0 %v2812_v5  ;;  %2289 = vmatpush3.bf16.msra.mxu1 %v3019_v12 }
  0x23   :  { %2290 = vmatprep.subr.bf16.mxu1 %v2768_v3 }
  0x24   :  { %143 = vmatmul.mubr.f32.vlgmr.msra.gmra.mrb[0].mxu0 %v3016_v11 }
  0x25   :  { %2296 = vmatpush1.bf16.msra.mxu0 %v2825_v9  ;;  %364 = vmatprep.mubr.f32.mxu0 %v2769_v4 }
  0x26   :  { %2298 = vmatprep.subr.bf16.mxu0 %v2827_v10  ;;  %2292 = vmatpush3.bf16.msra.mxu1 %v3031_v17 }
  0x27   :  { %2325 = vmatprep.subr.bf16.mxu1 %v2768_v3 }
  0x29   :  { %2300 = vmatpush1.bf16.msra.mxu0 %v2843_v15  ;;  %1990 = vmatmul.mubr.f32.vlgmr.msra.gmra.mrb[0].mxu1 %v3016_v11 }
  0x2a   :  { %2302 = vmatprep.subr.bf16.mxu0 %v2846_v16  ;;  %2327 = vmatpush3.bf16.msra.mxu1 %v2884_v29 }
  0x2b   :  { %2328 = vmatprep.subr.bf16.mxu1 %v2768_v3  ;;  %2024 = vmatprep.mubr.msk.f32.mxu1 %vm2770_vm0, %v2769_v4 }
  0x2d   :  { %2304 = vmatpush1.bf16.msra.mxu0 %v2861_v21 }
  0x2e   :  { %2306 = vmatprep.subr.bf16.mxu0 %v2867_v23  ;;  %2330 = vmatpush3.bf16.msra.mxu1 %v2899_v34 }
  0x2f   :  { %2331 = vmatprep.subr.bf16.mxu1 %v2768_v3 }
  0x31   :  { %2308 = vmatpush1.bf16.msra.mxu0 %v2893_v32 }
  0x32   :  { %2310 = vmatprep.subr.bf16.mxu0 %v2902_v35  ;;  %2333 = vmatpush3.bf16.msra.mxu1 %v2927_v43 }
  0x33   :  { %2334 = vmatprep.subr.bf16.mxu1 %v2768_v3 }
  0x35   :  { %2312 = vmatpush1.bf16.msra.mxu0 %v2921_v41 }
  0x36   :  { %2314 = vmatprep.subr.bf16.mxu0 %v2930_v44  ;;  %2336 = vmatpush3.bf16.msra.mxu1 %v2955_v52 }
  0x37   :  { %2337 = vmatprep.subr.bf16.mxu1 %v2768_v3 }
  0x39   :  { %2316 = vmatpush1.bf16.msra.mxu0 %v2949_v50 }
  0x3a   :  { %2318 = vmatprep.subr.bf16.mxu0 %v2958_v53  ;;  %2339 = vmatpush3.bf16.msra.mxu1 %v2983_v61 }
  0x3b   :  { %2340 = vmatprep.subr.bf16.mxu1 %v2768_v3 }
  0x3d   :  { %2320 = vmatpush1.bf16.msra.mxu0 %v2977_v59 }
  0x3e   :  { %2322 = vmatprep.subr.bf16.mxu0 %v2986_v62  ;;  %2342 = vmatpush3.bf16.msra.mxu1 %v3002_v6 }
  0x3f   :  { %2343 = vmatprep.subr.bf16.mxu1 %v2768_v3 }
  0x41   :  { %2324 = vmatpush1.bf16.msra.mxu0 %v2999_v2 }
  0x42   :  { %2350 = vmatprep.subr.bf16.mxu0 %v2812_v5  ;;  %2345 = vmatpush3.bf16.msra.mxu1 %v3019_v12 }
  0x43   :  { %2346 = vmatprep.subr.bf16.mxu1 %v2768_v3 }
  0x46   :  { %2348 = vmatpush3.bf16.msra.mxu1 %v3031_v17 }
  0x47   :  { %2381 = vmatprep.subr.bf16.mxu1 %v2768_v3 }
  0xf7   :  { %v144_v19 = vpop.f32.mrb[0].mxu0 }
  0xf8   :  { %v219_v20 = vadd.f32 %v144_v19, %v27_v18  ;;  %v146_v24 = vpop.f32.mrb[1].mxu0 }
  0xf9   :  { %v226_v26 = vadd.f32 %v146_v24, %v28_v22  ;;  %v1781_v22 = vld [vmem:[%s3623_s0 + $0x28] sm:$0xff] }
  0xfa   :  { %v1776_v25 = vmul.f32 -1.442695, %v219_v20 }
  0xfb   :  { %v1777_v27 = vmul.f32 -1.442695, %v226_v26 }
  0xfc   :  { %2688 = vpow2.f32 %v1776_v25  ;;  %v215_v28 = vpop.f32.mrb[0].mxu1 }
  0xfd   :  { %v1991_v30 = vpop.f32.mrb[1].mxu1  ;;  %2690 = vpow2.f32 %v1777_v27  ;;  %v239_v39 = vadd.f32 %v3081_v37, %v215_v28 }
 0x106   :  { %v2689_v31 = vpop.eup %2688 }
 0x107   :  { %v223_v33 = vadd.f32 1.0, %v2689_v31  ;;  %v2691_v36 = vpop.eup %2690 }
 0x108   :  { %v230_v38 = vadd.f32 1.0, %v2691_v36 }
 0x109   :  { %2692 = vrcp.f32 %v223_v33 }
 0x10a   :  { %2694 = vrcp.f32 %v230_v38 }
 0x113   :  { %v2693_v40 = vpop.eup %2692 }
 0x114   :  { %v240_v45 = vmul.f32 %v2693_v40, %v239_v39  ;;  %v2695_v47 = vpop.eup %2694 }
 0x115   :  { %v243_v48 = vsub.f32 1.0, %v2695_v47  ;;  %v245_v54 = vmul.f32 %v2695_v47, %v3016_v11 }
 0x116   :  { %v241_v46 = vadd.f32 %v240_v45, %v29_v42 }
 0x118   :  { %2696 = vtanh.f32 %v241_v46 }
 0x122   :  { %v2697_v49 = vpop.eup %2696 }
 0x123   :  { %v244_v51 = vmul.f32 %v2697_v49, %v243_v48  ;;  %v910_v48 = vld [vmem:[%s3621_s1 + $0x38] sm:$0xff]  ;;  %v913_v49 = vld [vmem:[%s3621_s1 + $0x50] sm:$0xff] }
 0x125   :  { %v3088_v55 = vadd.f32 %v245_v54, %v244_v51  ;;  %v3240_v51 = vpack.c.bf16 %v913_v49, %v910_v48  ;;  %v909_v54 = vld [vmem:[%s3621_s1 + $0x30] sm:$0xff] }
 0x127   :  { %247 = vst [vmem:[%s3625_s4] sm:$0xff] %v3088_v55  ;;  %365 = vmatmul.mubr.f32.vlgmr.msra.gmra.mrb[2].mxu0 %v3088_v55  ;;  %2025 = vmatmul.mubr.f32.vlgmr.msra.gmra.mrb[2].mxu1 %v3088_v55 }
 0x128   :  { %2352 = vmatpush1.bf16.msra.mxu0 %v2825_v9  ;;  %2383 = vmatpush3.bf16.msra.mxu1 %v2884_v29 }
 0x129   :  { %2354 = vmatprep.subr.bf16.mxu0 %v2827_v10  ;;  %2384 = vmatprep.subr.bf16.mxu1 %v2768_v3 }
 0x12a   :  { %581 = vmatprep.mubr.f32.mxu0 %v2769_v4  ;;  %2059 = vmatprep.mubr.msk.f32.mxu1 %vm2770_vm0, %v2769_v4 }
 0x12c   :  { %2356 = vmatpush1.bf16.msra.mxu0 %v2843_v15  ;;  %2386 = vmatpush3.bf16.msra.mxu1 %v2899_v34 }
 0x12d   :  { %2358 = vmatprep.subr.bf16.mxu0 %v2846_v16  ;;  %2387 = vmatprep.subr.bf16.mxu1 %v2768_v3 }
 0x130   :  { %2360 = vmatpush1.bf16.msra.mxu0 %v2861_v21  ;;  %2389 = vmatpush3.bf16.msra.mxu1 %v2927_v43 }
 0x131   :  { %2362 = vmatprep.subr.bf16.mxu0 %v2867_v23  ;;  %2390 = vmatprep.subr.bf16.mxu1 %v2768_v3 }
 0x134   :  { %2364 = vmatpush1.bf16.msra.mxu0 %v2893_v32  ;;  %2392 = vmatpush3.bf16.msra.mxu1 %v2955_v52 }
 0x135   :  { %2366 = vmatprep.subr.bf16.mxu0 %v2902_v35  ;;  %2393 = vmatprep.subr.bf16.mxu1 %v2768_v3 }
 0x138   :  { %2368 = vmatpush1.bf16.msra.mxu0 %v2921_v41  ;;  %2395 = vmatpush3.bf16.msra.mxu1 %v2983_v61 }
 0x139   :  { %2370 = vmatprep.subr.bf16.mxu0 %v2930_v44  ;;  %2396 = vmatprep.subr.bf16.mxu1 %v2768_v3 }
 0x13c   :  { %2372 = vmatpush1.bf16.msra.mxu0 %v2949_v50  ;;  %2398 = vmatpush3.bf16.msra.mxu1 %v3002_v6 }
 0x13d   :  { %2374 = vmatprep.subr.bf16.mxu0 %v2958_v53  ;;  %2399 = vmatprep.subr.bf16.mxu1 %v2768_v3 }
 0x140   :  { %2376 = vmatpush1.bf16.msra.mxu0 %v2977_v59  ;;  %2401 = vmatpush3.bf16.msra.mxu1 %v3019_v12 }
 0x141   :  { %2378 = vmatprep.subr.bf16.mxu0 %v2986_v62  ;;  %2402 = vmatprep.subr.bf16.mxu1 %v2768_v3 }
 0x144   :  { %2380 = vmatpush1.bf16.msra.mxu0 %v2999_v2  ;;  %2404 = vmatpush3.bf16.msra.mxu1 %v3031_v17 }
 0x145   :  { %2406 = vmatprep.subr.bf16.mxu0 %v2812_v5  ;;  %2437 = vmatprep.subr.bf16.mxu1 %v2768_v3 }
 0x1fa   :  { %v366_v57 = vpop.f32.mrb[2].mxu0  ;;  %v437_v58 = vpop.f32.mrb[2].mxu1 }
 0x1fb   :  { %v441_v60 = vadd.f32 %v1779_v56, %v366_v57  ;;  %v368_v0 = vpop.f32.mrb[3].mxu0  ;;  %v2026_v1 = vpop.f32.mrb[3].mxu1  ;;  %v455_v19 = vadd.f32 %v3081_v37, %v437_v58  ;;  %v916_v57 = vld [vmem:[%s3621_s1 + $0x68] sm:$0xff]  ;;  %v919_v58 = vld [vmem:[%s3621_s1 + $0x80] sm:$0xff] }
 0x1fc   :  { %v448_v8 = vadd.f32 %v1780_v63, %v368_v0  ;;  %v915_v63 = vld [vmem:[%s3621_s1 + $0x60] sm:$0xff]  ;;  %v918_v0 = vld [vmem:[%s3621_s1 + $0x78] sm:$0xff] }
 0x1fd   :  { %v1782_v7 = vmul.f32 -1.442695, %v441_v60  ;;  %v3258_v60 = vpack.c.bf16 %v919_v58, %v916_v57  ;;  %v3266_v1 = vpack.c.bf16 %v918_v0, %v915_v63 }
 0x1fe   :  { %v1783_v11 = vmul.f32 -1.442695, %v448_v8  ;;  %v925_v8 = vld [vmem:[%s3621_s1 + $0xb0] sm:$0xff] }
 0x1ff   :  { %2698 = vpow2.f32 %v1782_v7  ;;  %v922_v7 = vld [vmem:[%s3621_s1 + $0x98] sm:$0xff] }
 0x200   :  { %2700 = vpow2.f32 %v1783_v11  ;;  %v3276_v11 = vpack.c.bf16 %v925_v8, %v922_v7  ;;  %v1793_v8 = vld [vmem:[%s3623_s0 + $0x58] sm:$0xff] }
 0x209   :  { %v2699_v5 = vpop.eup %2698 }
 0x20a   :  { %v445_v13 = vadd.f32 1.0, %v2699_v5  ;;  %v2701_v14 = vpop.eup %2700  ;;  %v921_v5 = vld [vmem:[%s3621_s1 + $0x90] sm:$0xff] }
 0x20b   :  { %v452_v18 = vadd.f32 1.0, %v2701_v14 }
 0x20c   :  { %2702 = vrcp.f32 %v445_v13  ;;  %v924_v13 = vld [vmem:[%s3621_s1 + $0xa8] sm:$0xff] }
 0x20d   :  { %2704 = vrcp.f32 %v452_v18  ;;  %v3284_v14 = vpack.c.bf16 %v924_v13, %v921_v5  ;;  %v928_v18 = vld [vmem:[%s3621_s1 + $0xc8] sm:$0xff] }
 0x216   :  { %v2703_v20 = vpop.eup %2702 }
 0x217   :  { %v456_v24 = vmul.f32 %v2703_v20, %v455_v19  ;;  %v2705_v26 = vpop.eup %2704  ;;  %v931_v19 = vld [vmem:[%s3621_s1 + $0xe0] sm:$0xff] }
 0x218   :  { %v459_v27 = vsub.f32 1.0, %v2705_v26  ;;  %v461_v31 = vmul.f32 %v2705_v26, %v3088_v55  ;;  %v912_v55 = vld [vmem:[%s3621_s1 + $0x48] sm:$0xff]  ;;  %v3294_v20 = vpack.c.bf16 %v931_v19, %v928_v18  ;;  %v934_v26 = vld [vmem:[%s3621_s1 + $0xf8] sm:$0xff] }
 0x219   :  { %v457_v25 = vadd.f32 %v1781_v22, %v456_v24  ;;  %v3248_v56 = vpack.c.bf16 %v912_v55, %v909_v54  ;;  %v927_v22 = vld [vmem:[%s3621_s1 + $0xc0] sm:$0xff]  ;;  %v930_v24 = vld [vmem:[%s3621_s1 + $0xd8] sm:$0xff] }
 0x21b   :  { %2706 = vtanh.f32 %v457_v25  ;;  %v3302_v25 = vpack.c.bf16 %v930_v24, %v927_v22 }
 0x225   :  { %v2707_v28 = vpop.eup %2706 }
 0x226   :  { %v460_v30 = vmul.f32 %v2707_v28, %v459_v27  ;;  %v937_v27 = vld [vmem:[%s3621_s1 + $0x110] sm:$0xff] }
 0x227   :  { %v933_v28 = vld [vmem:[%s3621_s1 + $0xf0] sm:$0xff] }
 0x228   :  { %v3142_v33 = vadd.f32 %v461_v31, %v460_v30  ;;  %v3315_v30 = vpack.c.bf16 %v937_v27, %v934_v26  ;;  %v936_v31 = vld [vmem:[%s3621_s1 + $0x108] sm:$0xff] }
 0x22a   :  { %1784 = vst [vmem:[%s3625_s4 + $0x8] sm:$0xff] %v3142_v33  ;;  %582 = vmatmul.mubr.f32.vlgmr.msra.gmra.mrb[4].mxu0 %v3142_v33  ;;  %2060 = vmatmul.mubr.f32.vlgmr.msra.gmra.mrb[4].mxu1 %v3142_v33 }
 0x22b   :  { %2408 = vmatpush1.bf16.msra.mxu0 %v2825_v9  ;;  %2439 = vmatpush3.bf16.msra.mxu1 %v2884_v29  ;;  %v1785_v9 = vld [vmem:[%s3623_s0 + $0x30] sm:$0xff] }
 0x22c   :  { %2410 = vmatprep.subr.bf16.mxu0 %v2827_v10  ;;  %2440 = vmatprep.subr.bf16.mxu1 %v2768_v3 }
 0x22d   :  { %798 = vmatprep.mubr.f32.mxu0 %v2769_v4  ;;  %2094 = vmatprep.mubr.msk.f32.mxu1 %vm2770_vm0, %v2769_v4 }
 0x22f   :  { %2412 = vmatpush1.bf16.msra.mxu0 %v2843_v15  ;;  %2442 = vmatpush3.bf16.msra.mxu1 %v2899_v34 }
 0x230   :  { %2414 = vmatprep.subr.bf16.mxu0 %v2846_v16  ;;  %2443 = vmatprep.subr.bf16.mxu1 %v2768_v3 }
 0x233   :  { %2416 = vmatpush1.bf16.msra.mxu0 %v2861_v21  ;;  %2445 = vmatpush3.bf16.msra.mxu1 %v2927_v43  ;;  %v1786_v21 = vld [vmem:[%s3623_s0 + $0x38] sm:$0xff] }
 0x234   :  { %2418 = vmatprep.subr.bf16.mxu0 %v2867_v23  ;;  %2446 = vmatprep.subr.bf16.mxu1 %v2768_v3 }
 0x237   :  { %2420 = vmatpush1.bf16.msra.mxu0 %v2893_v32  ;;  %2448 = vmatpush3.bf16.msra.mxu1 %v2955_v52 }
 0x238   :  { %2422 = vmatprep.subr.bf16.mxu0 %v2902_v35  ;;  %2449 = vmatprep.subr.bf16.mxu1 %v2768_v3 }
 0x23b   :  { %2424 = vmatpush1.bf16.msra.mxu0 %v2921_v41  ;;  %2451 = vmatpush3.bf16.msra.mxu1 %v2983_v61 }
 0x23c   :  { %2426 = vmatprep.subr.bf16.mxu0 %v2930_v44  ;;  %2452 = vmatprep.subr.bf16.mxu1 %v2768_v3 }
 0x23f   :  { %2428 = vmatpush1.bf16.msra.mxu0 %v2949_v50  ;;  %2454 = vmatpush3.bf16.msra.mxu1 %v3002_v6 }
 0x240   :  { %2430 = vmatprep.subr.bf16.mxu0 %v2958_v53  ;;  %2455 = vmatprep.subr.bf16.mxu1 %v2768_v3 }
 0x243   :  { %2432 = vmatpush1.bf16.msra.mxu0 %v2977_v59  ;;  %2457 = vmatpush3.bf16.msra.mxu1 %v3019_v12  ;;  %v1787_v12 = vld [vmem:[%s3623_s0 + $0x40] sm:$0xff] }
 0x244   :  { %2434 = vmatprep.subr.bf16.mxu0 %v2986_v62  ;;  %2458 = vmatprep.subr.bf16.mxu1 %v2768_v3 }
 0x247   :  { %2436 = vmatpush1.bf16.msra.mxu0 %v2999_v2  ;;  %2460 = vmatpush3.bf16.msra.mxu1 %v3031_v17 }
 0x248   :  { %2493 = vmatprep.subr.bf16.mxu1 %v2768_v3 }
 0x2fd   :  { %v583_v10 = vpop.f32.mrb[4].mxu0  ;;  %v654_v15 = vpop.f32.mrb[4].mxu1 }
 0x2fe   :  { %v658_v16 = vadd.f32 %v1785_v9, %v583_v10  ;;  %v585_v23 = vpop.f32.mrb[5].mxu0  ;;  %v2061_v32 = vpop.f32.mrb[5].mxu1  ;;  %v672_v2 = vadd.f32 %v3081_v37, %v654_v15  ;;  %v938_v9 = vld [vmem:[%s3621_s1 + $0x118] sm:$0xff]  ;;  %v3326_v10 = vpack.c.bf16 %v936_v31, %v933_v28  ;;  %v1125_v28 = vld [vmem:[%s3621_s1 + $0x28] sm:$0xff] }
 0x2ff   :  { %v665_v41 = vadd.f32 %v1786_v21, %v585_v23  ;;  %v943_v21 = vld [vmem:[%s3621_s1 + $0x140] sm:$0xff] }
 0x300   :  { %v1788_v35 = vmul.f32 -1.442695, %v658_v16  ;;  %v940_v16 = vld [vmem:[%s3621_s1 + $0x128] sm:$0xff]  ;;  %v939_v23 = vld [vmem:[%s3621_s1 + $0x120] sm:$0xff] }
 0x301   :  { %v1789_v44 = vmul.f32 -1.442695, %v665_v41  ;;  %v3340_v32 = vpack.c.bf16 %v943_v21, %v940_v16  ;;  %v941_v41 = vld [vmem:[%s3621_s1 + $0x130] sm:$0xff] }
 0x302   :  { %2708 = vpow2.f32 %v1788_v35  ;;  %v942_v35 = vld [vmem:[%s3621_s1 + $0x138] sm:$0xff]  ;;  %v1134_v21 = vld [vmem:[%s3621_s1 + $0x70] sm:$0xff] }
 0x303   :  { %2710 = vpow2.f32 %v1789_v44  ;;  %v944_v44 = vld [vmem:[%s3621_s1 + $0x148] sm:$0xff] }
 0x30c   :  { %v2709_v50 = vpop.eup %2708 }
 0x30d   :  { %v662_v53 = vadd.f32 1.0, %v2709_v50  ;;  %v2711_v59 = vpop.eup %2710  ;;  %v3353_v50 = vpack.c.bf16 %v942_v35, %v939_v23  ;;  %v1137_v23 = vld [vmem:[%s3621_s1 + $0x88] sm:$0xff] }
 0x30e   :  { %v669_v62 = vadd.f32 1.0, %v2711_v59  ;;  %v946_v59 = vld [vmem:[%s3621_s1 + $0x158] sm:$0xff]  ;;  %v3455_v35 = vpack.c.bf16 %v1137_v23, %v1134_v21 }
 0x30f   :  { %2712 = vrcp.f32 %v662_v53  ;;  %v3355_v53 = vpack.c.bf16 %v944_v44, %v941_v41  ;;  %v1140_v41 = vld [vmem:[%s3621_s1 + $0xa0] sm:$0xff]  ;;  %v1143_v44 = vld [vmem:[%s3621_s1 + $0xb8] sm:$0xff] }
 0x310   :  { %2714 = vrcp.f32 %v669_v62  ;;  %v949_v62 = vld [vmem:[%s3621_s1 + $0x170] sm:$0xff] }
 0x319   :  { %v2713_v6 = vpop.eup %2712 }
 0x31a   :  { %v673_v17 = vmul.f32 %v2713_v6, %v672_v2  ;;  %v2715_v38 = vpop.eup %2714  ;;  %v945_v2 = vld [vmem:[%s3621_s1 + $0x150] sm:$0xff]  ;;  %v3368_v6 = vpack.c.bf16 %v949_v62, %v946_v59  ;;  %v3465_v59 = vpack.c.bf16 %v1143_v44, %v1140_v41 }
 0x31b   :  { %v676_v39 = vsub.f32 1.0, %v2715_v38  ;;  %v678_v45 = vmul.f32 %v2715_v38, %v3142_v33  ;;  %v935_v33 = vld [vmem:[%s3621_s1 + $0x100] sm:$0xff]  ;;  %v1146_v62 = vld [vmem:[%s3621_s1 + $0xd0] sm:$0xff] }
 0x31c   :  { %v674_v36 = vadd.f32 %v1787_v12, %v673_v17  ;;  %v3328_v15 = vpack.c.bf16 %v938_v9, %v935_v33  ;;  %v948_v12 = vld [vmem:[%s3621_s1 + $0x168] sm:$0xff]  ;;  %v947_v17 = vld [vmem:[%s3621_s1 + $0x160] sm:$0xff]  ;;  %v1131_v9 = vld [vmem:[%s3621_s1 + $0x58] sm:$0xff] }
 0x31d   :  { %v3381_v38 = vpack.c.bf16 %v948_v12, %v945_v2  ;;  %v1128_v33 = vld [vmem:[%s3621_s1 + $0x40] sm:$0xff]  ;;  %v1149_v2 = vld [vmem:[%s3621_s1 + $0xe8] sm:$0xff] }
 0x31e   :  { %2716 = vtanh.f32 %v674_v36  ;;  %v950_v36 = vld [vmem:[%s3621_s1 + $0x178] sm:$0xff]  ;;  %v3445_v16 = vpack.c.bf16 %v1131_v9, %v1128_v33  ;;  %v3475_v12 = vpack.c.bf16 %v1149_v2, %v1146_v62  ;;  %v1804_v33 = vld [vmem:[%s3623_s0 + $0x80] sm:$0xff] }
 0x328   :  { %v2717_v40 = vpop.eup %2716 }
 0x329   :  { %v677_v42 = vmul.f32 %v2717_v40, %v676_v39  ;;  %v3383_v39 = vpack.c.bf16 %v950_v36, %v947_v17  ;;  %v1791_v40 = vld [vmem:[%s3623_s0 + $0x48] sm:$0xff]  ;;  %v1797_v17 = vld [vmem:[%s3623_s0 + $0x60] sm:$0xff] }
 0x32b   :  { %v3195_v46 = vadd.f32 %v678_v45, %v677_v42 }
 0x32d   :  { %1790 = vst [vmem:[%s3625_s4 + $0x10] sm:$0xff] %v3195_v46  ;;  %799 = vmatmul.mubr.f32.vlgmr.msra.gmra.mrb[6].mxu0 %v3195_v46  ;;  %2095 = vmatmul.mubr.f32.vlgmr.msra.gmra.mrb[6].mxu1 %v3195_v46 }
 0x32e   :  { %2495 = vmatpush3.bf16.msra.mxu1 %v2884_v29  ;;  %1015 = vmatprep.mubr.f32.mxu0 %v2769_v4  ;;  %v904_v29 = vld [vmem:[%s3621_s1 + $0x8] sm:$0xff] }
 0x32f   :  { %2496 = vmatprep.subr.bf16.mxu1 %v2768_v3  ;;  %2129 = vmatprep.mubr.msk.f32.mxu1 %vm2770_vm0, %v2769_v4 }
 0x332   :  { %2498 = vmatpush3.bf16.msra.mxu1 %v2899_v34  ;;  %v907_v34 = vld [vmem:[%s3621_s1 + $0x20] sm:$0xff] }
 0x333   :  { %2499 = vmatprep.subr.bf16.mxu1 %v2768_v3  ;;  %v3222_v47 = vpack.c.bf16 %v907_v34, %v904_v29  ;;  %v1792_v34 = vld [vmem:[%s3623_s0 + $0x50] sm:$0xff] }
 0x335   :  { %2462 = vmatprep.subr.bf16.mxu0 %v3222_v47 }
 0x336   :  { %2501 = vmatpush3.bf16.msra.mxu1 %v2927_v43  ;;  %v903_v43 = vld [vmem:[%s3621_s1] sm:$0xff] }
 0x337   :  { %2502 = vmatprep.subr.bf16.mxu1 %v2768_v3 }
 0x33a   :  { %2504 = vmatpush3.bf16.msra.mxu1 %v2955_v52  ;;  %v906_v52 = vld [vmem:[%s3621_s1 + $0x18] sm:$0xff] }
 0x33b   :  { %2505 = vmatprep.subr.bf16.mxu1 %v2768_v3 }
 0x33e   :  { %2507 = vmatpush3.bf16.msra.mxu1 %v2983_v61  ;;  %v3230_v61 = vpack.c.bf16 %v906_v52, %v903_v43 }
 0x33f   :  { %2508 = vmatprep.subr.bf16.mxu1 %v2768_v3 }
 0x340   :  { %2464 = vmatpush1.bf16.msra.mxu0 %v3230_v61 }
 0x341   :  { %2466 = vmatprep.subr.bf16.mxu0 %v3240_v51 }
 0x342   :  { %2510 = vmatpush3.bf16.msra.mxu1 %v3328_v15 }
 0x343   :  { %2511 = vmatprep.subr.bf16.mxu1 %v2768_v3 }
 0x344   :  { %2468 = vmatpush1.bf16.msra.mxu0 %v3248_v56 }
 0x345   :  { %2470 = vmatprep.subr.bf16.mxu0 %v3258_v60 }
 0x346   :  { %2513 = vmatpush3.bf16.msra.mxu1 %v3355_v53 }
 0x347   :  { %2514 = vmatprep.subr.bf16.mxu1 %v2768_v3 }
 0x348   :  { %2472 = vmatpush1.bf16.msra.mxu0 %v3266_v1 }
 0x349   :  { %2474 = vmatprep.subr.bf16.mxu0 %v3276_v11 }
 0x34a   :  { %2516 = vmatpush3.bf16.msra.mxu1 %v3383_v39 }
 0x34b   :  { %2549 = vmatprep.subr.bf16.mxu1 %v2768_v3 }
 0x34c   :  { %2476 = vmatpush1.bf16.msra.mxu0 %v3284_v14 }
 0x34d   :  { %2478 = vmatprep.subr.bf16.mxu0 %v3294_v20 }
 0x350   :  { %2480 = vmatpush1.bf16.msra.mxu0 %v3302_v25 }
 0x351   :  { %2482 = vmatprep.subr.bf16.mxu0 %v3315_v30 }
 0x354   :  { %2484 = vmatpush1.bf16.msra.mxu0 %v3326_v10 }
 0x355   :  { %2486 = vmatprep.subr.bf16.mxu0 %v3340_v32 }
 0x358   :  { %2488 = vmatpush1.bf16.msra.mxu0 %v3353_v50 }
 0x359   :  { %2490 = vmatprep.subr.bf16.mxu0 %v3368_v6 }
 0x35c   :  { %2492 = vmatpush1.bf16.msra.mxu0 %v3381_v38 }
 0x35d   :  { %2518 = vmatprep.subr.bf16.mxu0 %v3222_v47 }
 0x400   :  { %v800_v42 = vpop.f32.mrb[6].mxu0  ;;  %v871_v45 = vpop.f32.mrb[6].mxu1 }
 0x401   :  { %v875_v29 = vadd.f32 %v1791_v40, %v800_v42  ;;  %v802_v43 = vpop.f32.mrb[7].mxu0  ;;  %v2096_v52 = vpop.f32.mrb[7].mxu1  ;;  %v889_v0 = vadd.f32 %v3081_v37, %v871_v45  ;;  %v1798_v45 = vld [vmem:[%s3623_s0 + $0x68] sm:$0xff] }
 0x402   :  { %v882_v49 = vadd.f32 %v1792_v34, %v802_v43 }
 0x403   :  { %v1794_v48 = vmul.f32 -1.442695, %v875_v29 }
 0x404   :  { %v1795_v54 = vmul.f32 -1.442695, %v882_v49 }
 0x405   :  { %2718 = vpow2.f32 %v1794_v48 }
 0x406   :  { %2720 = vpow2.f32 %v1795_v54 }
 0x40f   :  { %v2719_v55 = vpop.eup %2718 }
 0x410   :  { %v879_v57 = vadd.f32 1.0, %v2719_v55  ;;  %v2721_v58 = vpop.eup %2720 }
 0x411   :  { %v886_v63 = vadd.f32 1.0, %v2721_v58 }
 0x412   :  { %2722 = vrcp.f32 %v879_v57 }
 0x413   :  { %2724 = vrcp.f32 %v886_v63 }
 0x41c   :  { %v2723_v7 = vpop.eup %2722 }
 0x41d   :  { %v890_v5 = vmul.f32 %v2723_v7, %v889_v0  ;;  %v2725_v18 = vpop.eup %2724  ;;  %v1799_v0 = vld [vmem:[%s3623_s0 + $0x70] sm:$0xff] }
 0x41e   :  { %v893_v19 = vsub.f32 1.0, %v2725_v18  ;;  %v895_v26 = vmul.f32 %v2725_v18, %v3195_v46  ;;  %v1122_v46 = vld [vmem:[%s3621_s1 + $0x10] sm:$0xff] }
 0x41f   :  { %v891_v13 = vadd.f32 %v1793_v8, %v890_v5  ;;  %v3435_v31 = vpack.c.bf16 %v1125_v28, %v1122_v46 }
 0x421   :  { %2726 = vtanh.f32 %v891_v13 }
 0x42b   :  { %v2727_v22 = vpop.eup %2726 }
 0x42c   :  { %v894_v24 = vmul.f32 %v2727_v22, %v893_v19 }
 0x42e   :  { %v3402_v27 = vadd.f32 %v895_v26, %v894_v24  ;;  %v1803_v26 = vld [vmem:[%s3623_s0 + $0x78] sm:$0xff] }
 0x430   :  { %1796 = vst [vmem:[%s3625_s4 + $0x18] sm:$0xff] %v3402_v27  ;;  %1016 = vmatmul.mubr.f32.vlgmr.msra.gmra.mrb[8].mxu0 %v3402_v27  ;;  %2130 = vmatmul.mubr.f32.vlgmr.msra.gmra.mrb[8].mxu1 %v3402_v27 }
 0x431   :  { %2520 = vmatpush1.bf16.msra.mxu0 %v3230_v61  ;;  %1232 = vmatprep.mubr.f32.mxu0 %v2769_v4 }
 0x432   :  { %2522 = vmatprep.subr.bf16.mxu0 %v3240_v51  ;;  %2164 = vmatprep.mubr.msk.f32.mxu1 %vm2770_vm0, %v2769_v4 }
 0x433   :  { %2551 = vmatpush3.bf16.msra.mxu1 %v3435_v31 }
 0x434   :  { %2552 = vmatprep.subr.bf16.mxu1 %v2768_v3 }
 0x435   :  { %2524 = vmatpush1.bf16.msra.mxu0 %v3248_v56 }
 0x436   :  { %2526 = vmatprep.subr.bf16.mxu0 %v3258_v60 }
 0x437   :  { %2554 = vmatpush3.bf16.msra.mxu1 %v3445_v16 }
 0x438   :  { %2555 = vmatprep.subr.bf16.mxu1 %v2768_v3 }
 0x439   :  { %2528 = vmatpush1.bf16.msra.mxu0 %v3266_v1 }
 0x43a   :  { %2530 = vmatprep.subr.bf16.mxu0 %v3276_v11 }
 0x43b   :  { %2557 = vmatpush3.bf16.msra.mxu1 %v3455_v35 }
 0x43c   :  { %2558 = vmatprep.subr.bf16.mxu1 %v2768_v3 }
 0x43d   :  { %2532 = vmatpush1.bf16.msra.mxu0 %v3284_v14 }
 0x43e   :  { %2534 = vmatprep.subr.bf16.mxu0 %v3294_v20 }
 0x43f   :  { %2560 = vmatpush3.bf16.msra.mxu1 %v3465_v59 }
 0x440   :  { %2561 = vmatprep.subr.bf16.mxu1 %v2768_v3 }
 0x441   :  { %2536 = vmatpush1.bf16.msra.mxu0 %v3302_v25 }
 0x442   :  { %2538 = vmatprep.subr.bf16.mxu0 %v3315_v30 }
 0x443   :  { %2563 = vmatpush3.bf16.msra.mxu1 %v3475_v12 }
 0x444   :  { %2564 = vmatprep.subr.bf16.mxu1 %v2768_v3 }
 0x445   :  { %2540 = vmatpush1.bf16.msra.mxu0 %v3326_v10 }
 0x446   :  { %2542 = vmatprep.subr.bf16.mxu0 %v3340_v32 }
 0x447   :  { %2566 = vmatpush3.bf16.msra.mxu1 %v3328_v15 }
 0x448   :  { %2567 = vmatprep.subr.bf16.mxu1 %v2768_v3 }
 0x449   :  { %2544 = vmatpush1.bf16.msra.mxu0 %v3353_v50 }
 0x44a   :  { %2546 = vmatprep.subr.bf16.mxu0 %v3368_v6 }
 0x44b   :  { %2569 = vmatpush3.bf16.msra.mxu1 %v3355_v53 }
 0x44c   :  { %2570 = vmatprep.subr.bf16.mxu1 %v2768_v3 }
 0x44d   :  { %2548 = vmatpush1.bf16.msra.mxu0 %v3381_v38 }
 0x44e   :  { %2574 = vmatprep.subr.bf16.mxu0 %v3222_v47 }
 0x44f   :  { %2572 = vmatpush3.bf16.msra.mxu1 %v3383_v39 }
 0x450   :  { %2605 = vmatprep.subr.bf16.mxu1 %v2768_v3 }
 0x503   :  { %v1017_v36 = vpop.f32.mrb[8].mxu0  ;;  %v1088_v40 = vpop.f32.mrb[8].mxu1 }
 0x504   :  { %v1092_v42 = vadd.f32 %v1797_v17, %v1017_v36  ;;  %v1019_v29 = vpop.f32.mrb[9].mxu0  ;;  %v2131_v34 = vpop.f32.mrb[9].mxu1  ;;  %v1106_v58 = vadd.f32 %v3081_v37, %v1088_v40 }
 0x505   :  { %v1099_v52 = vadd.f32 %v1798_v45, %v1019_v29 }
 0x506   :  { %v1800_v43 = vmul.f32 -1.442695, %v1092_v42  ;;  %v1805_v42 = vld [vmem:[%s3623_s0 + $0x88] sm:$0xff] }
 0x507   :  { %v1801_v48 = vmul.f32 -1.442695, %v1099_v52 }
 0x508   :  { %2728 = vpow2.f32 %v1800_v43 }
 0x509   :  { %2730 = vpow2.f32 %v1801_v48 }
 0x512   :  { %v2729_v49 = vpop.eup %2728 }
 0x513   :  { %v1096_v54 = vadd.f32 1.0, %v2729_v49  ;;  %v2731_v55 = vpop.eup %2730 }
 0x514   :  { %v1103_v57 = vadd.f32 1.0, %v2731_v55  ;;  %v1815_v55 = vld [vmem:[%s3623_s0 + $0xa8] sm:$0xff] }
 0x515   :  { %2732 = vrcp.f32 %v1096_v54 }
 0x516   :  { %2734 = vrcp.f32 %v1103_v57 }
 0x51f   :  { %v2733_v63 = vpop.eup %2732 }
 0x520   :  { %v1107_v7 = vmul.f32 %v2733_v63, %v1106_v58  ;;  %v2735_v5 = vpop.eup %2734 }
 0x521   :  { %v1110_v13 = vsub.f32 1.0, %v2735_v5  ;;  %v1112_v22 = vmul.f32 %v2735_v5, %v3402_v27 }
 0x522   :  { %v1108_v8 = vadd.f32 %v1799_v0, %v1107_v7  ;;  %v1816_v0 = vld [vmem:[%s3623_s0 + $0xb0] sm:$0xff] }
 0x524   :  { %2736 = vtanh.f32 %v1108_v8 }
 0x52e   :  { %v2737_v18 = vpop.eup %2736 }
 0x52f   :  { %v1111_v19 = vmul.f32 %v2737_v18, %v1110_v13 }
 0x531   :  { %v3496_v24 = vadd.f32 %v1112_v22, %v1111_v19 }
 0x533   :  { %1802 = vst [vmem:[%s3625_s4 + $0x20] sm:$0xff] %v3496_v24  ;;  %1233 = vmatmul.mubr.f32.vlgmr.msra.gmra.mrb[10].mxu0 %v3496_v24  ;;  %2165 = vmatmul.mubr.f32.vlgmr.msra.gmra.mrb[10].mxu1 %v3496_v24 }
 0x534   :  { %2576 = vmatpush1.bf16.msra.mxu0 %v3230_v61  ;;  %2607 = vmatpush3.bf16.msra.mxu1 %v3435_v31 }
 0x535   :  { %2578 = vmatprep.subr.bf16.mxu0 %v3240_v51  ;;  %2608 = vmatprep.subr.bf16.mxu1 %v2768_v3 }
 0x536   :  { %1449 = vmatprep.mubr.f32.mxu0 %v2769_v4  ;;  %2199 = vmatprep.mubr.msk.f32.mxu1 %vm2770_vm0, %v2769_v4 }
 0x538   :  { %2580 = vmatpush1.bf16.msra.mxu0 %v3248_v56  ;;  %2610 = vmatpush3.bf16.msra.mxu1 %v3445_v16 }
 0x539   :  { %2582 = vmatprep.subr.bf16.mxu0 %v3258_v60  ;;  %2611 = vmatprep.subr.bf16.mxu1 %v2768_v3 }
 0x53c   :  { %2584 = vmatpush1.bf16.msra.mxu0 %v3266_v1  ;;  %2613 = vmatpush3.bf16.msra.mxu1 %v3455_v35 }
 0x53d   :  { %2586 = vmatprep.subr.bf16.mxu0 %v3276_v11  ;;  %2614 = vmatprep.subr.bf16.mxu1 %v2768_v3 }
 0x540   :  { %2588 = vmatpush1.bf16.msra.mxu0 %v3284_v14  ;;  %2616 = vmatpush3.bf16.msra.mxu1 %v3465_v59 }
 0x541   :  { %2590 = vmatprep.subr.bf16.mxu0 %v3294_v20  ;;  %2617 = vmatprep.subr.bf16.mxu1 %v2768_v3 }
 0x544   :  { %2592 = vmatpush1.bf16.msra.mxu0 %v3302_v25  ;;  %2619 = vmatpush3.bf16.msra.mxu1 %v3475_v12 }
 0x545   :  { %2594 = vmatprep.subr.bf16.mxu0 %v3315_v30  ;;  %2620 = vmatprep.subr.bf16.mxu1 %v2768_v3 }
 0x548   :  { %2596 = vmatpush1.bf16.msra.mxu0 %v3326_v10  ;;  %2622 = vmatpush3.bf16.msra.mxu1 %v3328_v15 }
 0x549   :  { %2598 = vmatprep.subr.bf16.mxu0 %v3340_v32  ;;  %2623 = vmatprep.subr.bf16.mxu1 %v2768_v3 }
 0x54c   :  { %2600 = vmatpush1.bf16.msra.mxu0 %v3353_v50  ;;  %2625 = vmatpush3.bf16.msra.mxu1 %v3355_v53 }
 0x54d   :  { %2602 = vmatprep.subr.bf16.mxu0 %v3368_v6  ;;  %2626 = vmatprep.subr.bf16.mxu1 %v2768_v3 }
 0x550   :  { %2604 = vmatpush1.bf16.msra.mxu0 %v3381_v38  ;;  %2628 = vmatpush3.bf16.msra.mxu1 %v3383_v39 }
 0x551   :  { %2630 = vmatprep.subr.bf16.mxu0 %v3222_v47  ;;  %2661 = vmatprep.subr.bf16.mxu1 %v2768_v3 }
 0x606   :  { %v1234_v27 = vpop.f32.mrb[10].mxu0  ;;  %v1305_v46 = vpop.f32.mrb[10].mxu1 }
 0x607   :  { %v1309_v28 = vadd.f32 %v1803_v26, %v1234_v27  ;;  %v1236_v9 = vpop.f32.mrb[11].mxu0  ;;  %v2166_v21 = vpop.f32.mrb[11].mxu1  ;;  %v1323_v36 = vadd.f32 %v3081_v37, %v1305_v46 }
 0x608   :  { %v1316_v41 = vadd.f32 %v1804_v33, %v1236_v9 }
 0x609   :  { %v1806_v23 = vmul.f32 -1.442695, %v1309_v28  ;;  %v1817_v28 = vld [vmem:[%s3623_s0 + $0xb8] sm:$0xff] }
 0x60a   :  { %v1807_v44 = vmul.f32 -1.442695, %v1316_v41 }
 0x60b   :  { %2738 = vpow2.f32 %v1806_v23 }
 0x60c   :  { %2740 = vpow2.f32 %v1807_v44 }
 0x615   :  { %v2739_v47 = vpop.eup %2738 }
 0x616   :  { %v1313_v62 = vadd.f32 1.0, %v2739_v47  ;;  %v2741_v2 = vpop.eup %2740 }
 0x617   :  { %v1320_v17 = vadd.f32 1.0, %v2741_v2 }
 0x618   :  { %2742 = vrcp.f32 %v1313_v62 }
 0x619   :  { %2744 = vrcp.f32 %v1320_v17 }
 0x622   :  { %v2743_v40 = vpop.eup %2742 }
 0x623   :  { %v1324_v45 = vmul.f32 %v2743_v40, %v1323_v36  ;;  %v2745_v34 = vpop.eup %2744 }
 0x624   :  { %v1327_v43 = vsub.f32 1.0, %v2745_v34  ;;  %v1329_v49 = vmul.f32 %v2745_v34, %v3496_v24 }
 0x625   :  { %v1325_v29 = vadd.f32 %v1805_v42, %v1324_v45 }
 0x627   :  { %2746 = vtanh.f32 %v1325_v29 }
 0x631   :  { %v2747_v52 = vpop.eup %2746 }
 0x632   :  { %v1328_v48 = vmul.f32 %v2747_v52, %v1327_v43 }
 0x634   :  { %v3550_v54 = vadd.f32 %v1329_v49, %v1328_v48 }
 0x636   :  { %1808 = vst [vmem:[%s3625_s4 + $0x28] sm:$0xff] %v3550_v54  ;;  %1450 = vmatmul.mubr.f32.vlgmr.msra.gmra.mrb[12].mxu0 %v3550_v54  ;;  %2200 = vmatmul.mubr.f32.vlgmr.msra.gmra.mrb[12].mxu1 %v3550_v54 }
 0x637   :  { %2632 = vmatpush1.bf16.msra.mxu0 %v3230_v61  ;;  %2663 = vmatpush3.bf16.msra.mxu1 %v3435_v31 }
 0x638   :  { %2634 = vmatprep.subr.bf16.mxu0 %v3240_v51  ;;  %2664 = vmatprep.subr.bf16.mxu1 %v2768_v3 }
 0x639   :  { %1666 = vmatprep.mubr.f32.mxu0 %v2769_v4  ;;  %2234 = vmatprep.mubr.msk.f32.mxu1 %vm2770_vm0, %v2769_v4  ;;  %v1809_v4 = vld [vmem:[%s3623_s0 + $0x90] sm:$0xff] }
 0x63b   :  { %2636 = vmatpush1.bf16.msra.mxu0 %v3248_v56  ;;  %2666 = vmatpush3.bf16.msra.mxu1 %v3445_v16 }
 0x63c   :  { %2638 = vmatprep.subr.bf16.mxu0 %v3258_v60  ;;  %2667 = vmatprep.subr.bf16.mxu1 %v2768_v3  ;;  %v1810_v60 = vld [vmem:[%s3623_s0 + $0x98] sm:$0xff] }
 0x63f   :  { %2640 = vmatpush1.bf16.msra.mxu0 %v3266_v1  ;;  %2669 = vmatpush3.bf16.msra.mxu1 %v3455_v35 }
 0x640   :  { %2642 = vmatprep.subr.bf16.mxu0 %v3276_v11  ;;  %2670 = vmatprep.subr.bf16.mxu1 %v2768_v3 }
 0x643   :  { %2644 = vmatpush1.bf16.msra.mxu0 %v3284_v14  ;;  %2672 = vmatpush3.bf16.msra.mxu1 %v3465_v59 }
 0x644   :  { %2646 = vmatprep.subr.bf16.mxu0 %v3294_v20  ;;  %2673 = vmatprep.subr.bf16.mxu1 %v2768_v3 }
 0x647   :  { %2648 = vmatpush1.bf16.msra.mxu0 %v3302_v25  ;;  %2675 = vmatpush3.bf16.msra.mxu1 %v3475_v12 }
 0x648   :  { %2650 = vmatprep.subr.bf16.mxu0 %v3315_v30  ;;  %2676 = vmatprep.subr.bf16.mxu1 %v2768_v3 }
 0x64b   :  { %2652 = vmatpush1.bf16.msra.mxu0 %v3326_v10  ;;  %2678 = vmatpush3.bf16.msra.mxu1 %v3328_v15 }
 0x64c   :  { %2654 = vmatprep.subr.bf16.mxu0 %v3340_v32  ;;  %2679 = vmatprep.subr.bf16.mxu1 %v2768_v3 }
 0x64f   :  { %2656 = vmatpush1.bf16.msra.mxu0 %v3353_v50  ;;  %2681 = vmatpush3.bf16.msra.mxu1 %v3355_v53  ;;  %v1811_v53 = vld [vmem:[%s3623_s0 + $0xa0] sm:$0xff] }
 0x650   :  { %2658 = vmatprep.subr.bf16.mxu0 %v3368_v6  ;;  %2682 = vmatprep.subr.bf16.mxu1 %v2768_v3 }
 0x653   :  { %2660 = vmatpush1.bf16.msra.mxu0 %v3381_v38  ;;  %2684 = vmatpush3.bf16.msra.mxu1 %v3383_v39 }
 0x709   :  { %v1451_v61 = vpop.f32.mrb[12].mxu0  ;;  %v1522_v51 = vpop.f32.mrb[12].mxu1 }
 0x70a   :  { %v1526_v56 = vadd.f32 %v1809_v4, %v1451_v61  ;;  %v1453_v1 = vpop.f32.mrb[13].mxu0  ;;  %v2201_v11 = vpop.f32.mrb[13].mxu1  ;;  %v1540_v32 = vadd.f32 %v3081_v37, %v1522_v51 }
 0x70b   :  { %v1533_v20 = vadd.f32 %v1810_v60, %v1453_v1 }
 0x70c   :  { %v1812_v14 = vmul.f32 -1.442695, %v1526_v56 }
 0x70d   :  { %v1813_v3 = vmul.f32 -1.442695, %v1533_v20 }
 0x70e   :  { %2748 = vpow2.f32 %v1812_v14 }
 0x70f   :  { %2750 = vpow2.f32 %v1813_v3 }
 0x718   :  { %v2749_v25 = vpop.eup %2748 }
 0x719   :  { %v1530_v30 = vadd.f32 1.0, %v2749_v25  ;;  %v2751_v10 = vpop.eup %2750 }
 0x71a   :  { %v1537_v15 = vadd.f32 1.0, %v2751_v10 }
 0x71b   :  { %2752 = vrcp.f32 %v1530_v30 }
 0x71c   :  { %2754 = vrcp.f32 %v1537_v15 }
 0x725   :  { %v2753_v50 = vpop.eup %2752 }
 0x726   :  { %v1541_v6 = vmul.f32 %v2753_v50, %v1540_v32  ;;  %v2755_v39 = vpop.eup %2754 }
 0x727   :  { %v1544_v31 = vsub.f32 1.0, %v2755_v39  ;;  %v1546_v59 = vmul.f32 %v2755_v39, %v3550_v54 }
 0x728   :  { %v1542_v38 = vadd.f32 %v1811_v53, %v1541_v6 }
 0x72a   :  { %2756 = vtanh.f32 %v1542_v38 }
 0x734   :  { %v2757_v16 = vpop.eup %2756 }
 0x735   :  { %v1545_v35 = vmul.f32 %v2757_v16, %v1544_v31 }
 0x737   :  { %v1547_v12 = vadd.f32 %v1546_v59, %v1545_v35 }
 0x739   :  { %1814 = vst [vmem:[%s3625_s4 + $0x30] sm:$0xff] %v1547_v12  ;;  %1667 = vmatmul.mubr.f32.vlgmr.msra.gmra.mrb[14].mxu0 %v1547_v12  ;;  %2235 = vmatmul.mubr.f32.vlgmr.msra.gmra.mrb[14].mxu1 %v1547_v12 }
 0x80c   :  { %v1668_v57 = vpop.f32.mrb[14].mxu0  ;;  %v1739_v58 = vpop.f32.mrb[14].mxu1 }
 0x80d   :  { %v1743_v63 = vadd.f32 %v1815_v55, %v1668_v57  ;;  %v1670_v7 = vpop.f32.mrb[15].mxu0  ;;  %v2236_v8 = vpop.f32.mrb[15].mxu1  ;;  %v1757_v27 = vadd.f32 %v3081_v37, %v1739_v58 }
 0x80e   :  { %v1750_v13 = vadd.f32 %v1816_v0, %v1670_v7 }
 0x80f   :  { %v1818_v5 = vmul.f32 -1.442695, %v1743_v63 }
 0x810   :  { %v1819_v18 = vmul.f32 -1.442695, %v1750_v13 }
 0x811   :  { %2758 = vpow2.f32 %v1818_v5 }
 0x812   :  { %2760 = vpow2.f32 %v1819_v18 }
 0x81b   :  { %v2759_v19 = vpop.eup %2758 }
 0x81c   :  { %v1747_v22 = vadd.f32 1.0, %v2759_v19  ;;  %v2761_v24 = vpop.eup %2760 }
 0x81d   :  { %v1754_v26 = vadd.f32 1.0, %v2761_v24 }
 0x81e   :  { %2762 = vrcp.f32 %v1747_v22 }
 0x81f   :  { %2764 = vrcp.f32 %v1754_v26 }
 0x828   :  { %v2763_v46 = vpop.eup %2762 }
 0x829   :  { %v1758_v33 = vmul.f32 %v2763_v46, %v1757_v27  ;;  %v2765_v21 = vpop.eup %2764 }
 0x82a   :  { %v1761_v23 = vsub.f32 1.0, %v2765_v21  ;;  %v1763_v47 = vmul.f32 %v2765_v21, %v1547_v12 }
 0x82b   :  { %v1759_v9 = vadd.f32 %v1817_v28, %v1758_v33 }
 0x82d   :  { %2766 = vtanh.f32 %v1759_v9 }
 0x837   :  { %v2767_v41 = vpop.eup %2766 }
 0x838   :  { %v1762_v44 = vmul.f32 %v2767_v41, %v1761_v23 }
 0x83a   :  { %v1764_v62 = vadd.f32 %v1763_v47, %v1762_v44 }
 0x83c   :  { %1820 = vst [vmem:[%s3625_s4 + $0x38] sm:$0xff] %v1764_v62  ;;  %1767 = vst [vmem:[%s3626_s5] sm:$0xff] %v1764_v62 }

</bundles_post_ra>
